<compile_context>
chip_gen: v7x
topology: tpu7x:2x2x1
jax: 0.10.0
libtpu: 0.0.40
codegen_flags: <defaults>
</compile_context>

<pallas_src>
import numpy as np
import jax
import jax.numpy as jnp
from jax.experimental import pallas as pl
from jax.experimental.pallas import tpu as pltpu

# ---------------- small synthetic config (consistent with VaeLmConfig) ----------------
VOCAB = 64
HIDDEN = 32
MLP = 64
HEAD = 16
NHEADS = 2
NREG = 2
NLAYERS = 2
EPS = 1e-5
ROPE_FRACTION = 1            # rotate full head dim
ROPE_BASE = 10000.0
THOUGHT = 8
ZSIZE = 8
Z_OVER_SCALE = 1.0
ZL = ZSIZE // NLAYERS        # layer_z_size
Z_SCALE = float(np.sqrt(Z_OVER_SCALE / ZSIZE))
SP_BIAS = float(np.log(np.e - 1.0))
ROT = HEAD // ROPE_FRACTION
HALF = ROT // 2
NH_HD = NHEADS * HEAD
NEG_INF = -1e30
SCALE = 1.0 / float(np.sqrt(HEAD))

# rows inside the per-layer f32 pack lp32: (NLAYERS, LP_ROWS, HIDDEN)
LP_NORM = 0                      # 3 rows: attn / mlp / z RMSNorm weights
LP_FILT = 3                      # 3 rows: attn / mlp / z filters
LP_RK = 6                        # NHEADS*NREG rows: block-diag (un-rotated) register keys
LP_RV = LP_RK + NHEADS * NREG    # NREG rows: register values (heads lane-concatenated)
LP_ROWS = LP_RV + NREG

# columns inside the per-layer bf16 pack wa: (NLAYERS, HIDDEN, WA_COLS)
# (packing assumes NH_HD == HIDDEN so wo shares the row dim with the projections)
WA_QKV = 0                       # 5*NH_HD cols: [Wq | Wk | Wv | Wq@P | Wk@P]
WA_WO = 5 * NH_HD                # HIDDEN cols : attention output projection
WA_GU = WA_WO + HIDDEN           # 2*MLP cols  : fused gate/up
WA_ZU = WA_GU + 2 * MLP          # 2*ZL cols   : fused z_up (mu | log_sigma)
WA_COLS = WA_ZU + 2 * ZL

# rows inside the per-layer bf16 pack wb: (NLAYERS, WB_ROWS, HIDDEN)
WB_WD = 0                        # MLP rows: MLP down projection
WB_ZD = MLP                      # ZL rows : z_down
WB_ROWS = WB_ZD + ZL


# ---------------- in-kernel helpers (f32 elementwise) ----------------
def _rmsnorm(x, w):
    var = jnp.mean(x * x, axis=-1, keepdims=True)
    return x * jax.lax.rsqrt(var + EPS) * w


def _softplus(x):
    # single-exp stable softplus: max(x,0) + log(1 + exp(-|x|))
    return jnp.maximum(x, 0.0) + jnp.log(1.0 + jnp.exp(-jnp.abs(x)))


# ---------------- Pallas kernel: full VaeLmEncoder layer stack ----------------
def vaelm_encoder_kernel(rows_ref, lp_ref, wa_ref, wb_ref, out_ref):
    R = rows_ref.shape[0]                       # R = B*T flattened rows
    # static column offsets inside the row pack
    OMASK = HIDDEN
    OCOS = OMASK + R
    OSIN = OCOS + 2 * NH_HD
    ONOISE = OSIN + 2 * NH_HD

    x = rows_ref[:, 0:HIDDEN]                   # (R, H) residual stream, VMEM-resident
    mask = rows_ref[:, OMASK:OMASK + R]         # (R, R) block-diag causal mask
    cos2 = rows_ref[:, OCOS:OCOS + 2 * NH_HD]   # (R, 2*NH_HD) RoPE cos, tiled for [q|k]
    sin2 = rows_ref[:, OSIN:OSIN + 2 * NH_HD]   # (R, 2*NH_HD) RoPE sin, sign baked in

    for l in range(NLAYERS):                    # tiny static layer count: unrolled
        lp = lp_ref[l]                          # (LP_ROWS, H)  f32 small params
        wa = wa_ref[l]                          # (H, WA_COLS)  bf16 fused weights
        wb = wb_ref[l]                          # (WB_ROWS, H)  bf16 down projections

        # ---------------- attention block ----------------
        xn = _rmsnorm(x, lp[LP_NORM + 0:LP_NORM + 1])
        big = jnp.dot(xn.astype(jnp.bfloat16), wa[:, WA_QKV:WA_QKV + 5 * NH_HD],
                      preferred_element_type=jnp.float32)          # (R, 5*NH_HD)
        qk = big[:, 0:2 * NH_HD]
        v = big[:, 2 * NH_HD:3 * NH_HD]
        qk_sw = big[:, 3 * NH_HD:5 * NH_HD]     # half-swapped q|k (baked into the weights)
        qkrot = qk * cos2 + qk_sw * sin2        # slab-wide RoPE: one mul-add pair
        qrot = qkrot[:, 0:NH_HD]
        krot = qkrot[:, NH_HD:2 * NH_HD]

        # register scores for ALL heads in one matmul against block-diagonal keys
        rkT = lp[LP_RK:LP_RK + NHEADS * NREG, :].T                 # (NH_HD, NHEADS*NREG)
        s_reg_all = jnp.dot(qrot, rkT, preferred_element_type=jnp.float32) * SCALE

        o_heads = []
        for h in range(NHEADS):                 # 2 heads, unrolled
            o0 = h * HEAD
            qh = qrot[:, o0:o0 + HEAD]
            kh = krot[:, o0:o0 + HEAD]
            vh = v[:, o0:o0 + HEAD]
            # plain 2-D (R,R) scores; batch separation lives in the mask
            s_tok = jnp.dot(qh, kh.T, preferred_element_type=jnp.float32) * SCALE + mask
            s_reg = s_reg_all[:, h * NREG:(h + 1) * NREG]
            # joint softmax over [registers | tokens] without concatenation
            m = jnp.maximum(jnp.max(s_tok, axis=-1, keepdims=True),
                            jnp.max(s_reg, axis=-1, keepdims=True))
            p_tok = jnp.exp(s_tok - m)
            p_reg = jnp.exp(s_reg - m)
            inv = pl.reciprocal(jnp.sum(p_tok, axis=-1, keepdims=True)
                                + jnp.sum(p_reg, axis=-1, keepdims=True), approx=True)
            o_h = (jnp.dot(p_tok, vh, preferred_element_type=jnp.float32)
                   + jnp.dot(p_reg, lp[LP_RV:LP_RV + NREG, o0:o0 + HEAD],
                             preferred_element_type=jnp.float32)) * inv
            o_heads.append(o_h)

        # merged head output projection: single (R, NH_HD) @ (NH_HD, H) matmul
        o_all = jnp.concatenate(o_heads, axis=-1)
        attn_out = jnp.dot(o_all.astype(jnp.bfloat16), wa[:, WA_WO:WA_WO + HIDDEN],
                           preferred_element_type=jnp.float32)
        x = x + lp[LP_FILT + 0:LP_FILT + 1] * attn_out

        # ---------------- GLU MLP block ----------------
        xn = _rmsnorm(x, lp[LP_NORM + 1:LP_NORM + 2])
        gu = jnp.dot(xn.astype(jnp.bfloat16), wa[:, WA_GU:WA_GU + 2 * MLP],
                     preferred_element_type=jnp.float32)           # (R, 2*MLP)
        g = gu[:, 0:MLP]
        u = gu[:, MLP:2 * MLP]
        act = g * jax.nn.sigmoid(g) * u                            # SiLU(g) * u, single EUP op
        mlp_out = jnp.dot(act.astype(jnp.bfloat16), wb[WB_WD:WB_WD + MLP, :],
                          preferred_element_type=jnp.float32)
        x = x + lp[LP_FILT + 1:LP_FILT + 2] * mlp_out

        # ---------------- VAE z block (bf16 matmuls, f32 accumulation) ----------------
        xn = _rmsnorm(x, lp[LP_NORM + 2:LP_NORM + 3])
        zu = jnp.dot(xn.astype(jnp.bfloat16), wa[:, WA_ZU:WA_ZU + 2 * ZL],
                     preferred_element_type=jnp.float32)           # (R, 2*ZL)
        mu = zu[:, 0:ZL] * Z_SCALE
        sigma = _softplus(zu[:, ZL:2 * ZL] * Z_SCALE + SP_BIAS)
        noise_l = rows_ref[:, ONOISE + l * ZL:ONOISE + (l + 1) * ZL]   # zero on S rows
        z = mu + sigma * noise_l
        z_out = jnp.dot(z.astype(jnp.bfloat16), wb[WB_ZD:WB_ZD + ZL, :],
                        preferred_element_type=jnp.float32)
        x = x + lp[LP_FILT + 2:LP_FILT + 3] * z_out

        # direct lane sub-slice stores: no concatenate, no intermediate buffer
        out_ref[l, :, 0 * ZL:1 * ZL] = mu
        out_ref[l, :, 1 * ZL:2 * ZL] = sigma
        out_ref[l, :, 2 * ZL:3 * ZL] = z


# ---------------- parameters (deterministic synthetic init, pre-fused/packed) ----------------
def _rope_half_swap_perm():
    # column permutation implementing the NeoX per-head half swap: [x1|x2] -> [x2|x1]
    perm = np.arange(NH_HD)
    for h in range(NHEADS):
        o0 = h * HEAD
        perm[o0:o0 + HALF] = o0 + HALF + np.arange(HALF)
        perm[o0 + HALF:o0 + ROT] = o0 + np.arange(HALF)
    return perm


def init_params(key):
    ks = jax.random.split(key, 6 + NLAYERS)

    def nrm(k, shape, s=0.05):
        return (jax.random.normal(k, shape) * s).astype(jnp.float32)

    p = {
        'vocab_embs': nrm(ks[0], (VOCAB, HIDDEN), 0.02),
        'vocab_switch': nrm(ks[1], (1, 1, HIDDEN), 0.02),
        'in_proj': nrm(ks[2], (ZSIZE, HIDDEN), 0.02),   # applied as x @ W (== nn.Linear.weight.T)
        'thought_embs': nrm(ks[3], (1, THOUGHT, HIDDEN), 0.02),
        'thought_switch': nrm(ks[4], (1, 1, HIDDEN), 0.02),
    }

    perm = _rope_half_swap_perm()
    lp32, wa, wb = [], [], []
    for i in range(NLAYERS):
        lk = jax.random.split(ks[6 + i], 16)
        norm_w = jnp.ones((3, HIDDEN), jnp.float32)
        # torch inits filters to zero; random here so the kernel path is non-trivial.
        filters = jnp.stack([nrm(lk[0], (HIDDEN,)), nrm(lk[1], (HIDDEN,)), nrm(lk[2], (HIDDEN,))])
        wq = nrm(lk[3], (HIDDEN, NH_HD))
        wk = nrm(lk[4], (HIDDEN, NH_HD))
        wv = nrm(lk[5], (HIDDEN, NH_HD))
        wo = nrm(lk[6], (NH_HD, HIDDEN))
        reg_k = nrm(lk[7], (NREG, NH_HD))
        reg_v = nrm(lk[8], (NREG, NH_HD))
        w_gate = nrm(lk[9], (HIDDEN, MLP))
        w_up = nrm(lk[10], (HIDDEN, MLP))
        w_down = nrm(lk[11], (MLP, HIDDEN))
        wzu = nrm(lk[12], (HIDDEN, 2 * ZL))
        wzd = nrm(lk[13], (ZL, HIDDEN))

        # block-diagonal register keys: in-kernel one matmul scores every head's registers
        rk_bd = jnp.concatenate([
            jnp.zeros((NREG, NH_HD), jnp.float32)
               .at[:, h * HEAD:(h + 1) * HEAD].set(reg_k[:, h * HEAD:(h + 1) * HEAD])
            for h in range(NHEADS)], axis=0)

        lp32.append(jnp.concatenate([norm_w, filters, rk_bd, reg_v], axis=0))

        # fused projection with the RoPE half-swap baked in via a column permutation
        w_big = jnp.concatenate([wq, wk, wv, wq[:, perm], wk[:, perm]], axis=1)
        wa.append(jnp.concatenate(
            [w_big, wo, jnp.concatenate([w_gate, w_up], axis=1), wzu], axis=1))
        wb.append(jnp.concatenate([w_down, wzd], axis=0))

    p['lp32'] = jnp.stack(lp32)                       # (NLAYERS, LP_ROWS, H) f32
    p['wa'] = jnp.stack(wa).astype(jnp.bfloat16)      # (NLAYERS, H, WA_COLS) bf16
    p['wb'] = jnp.stack(wb).astype(jnp.bfloat16)      # (NLAYERS, WB_ROWS, H) bf16
    return p


# ---------------- VaeLmEncoder.forward ----------------
def encoder_forward(params, input_ids, noise, reparam_scale=None):
    # input_ids: (B, S) int32 ; noise: (B, THOUGHT, NLAYERS, ZL) float32
    B, S = input_ids.shape
    T = S + THOUGHT
    R = B * T

    vocab_tokens = (params['vocab_embs'][input_ids] + params['vocab_switch']) / np.sqrt(2.0)
    noise_flat = noise.reshape(B, THOUGHT, ZSIZE)
    shifted = jnp.concatenate(
        [jnp.zeros((B, 1, ZSIZE), noise.dtype), noise_flat[:, :-1]], axis=1)
    encoder_tokens = (params['thought_embs'] + params['thought_switch']
                      + shifted @ params['in_proj']) / np.sqrt(3.0)
    hidden = jnp.concatenate([vocab_tokens, encoder_tokens], axis=1).astype(jnp.float32)
    hidden_rows = hidden.reshape(R, HIDDEN)           # batch folded into matmul M dim

    # block-diagonal causal mask over flattened rows: 0 within-batch/causal, -inf otherwise
    bi = np.repeat(np.arange(B), T)
    ti = np.tile(np.arange(T), B)
    allowed = (bi[:, None] == bi[None, :]) & (ti[None, :] <= ti[:, None])
    mask_bd = jnp.asarray(np.where(allowed, 0.0, NEG_INF), np.float32)       # (R, R)

    # slab-wide RoPE tables (arange positions): per-row cos / sign-baked sin over all heads,
    # tiled once more so they cover the concatenated [q | k] slab.
    inv_freq = 1.0 / (ROPE_BASE ** (np.arange(HALF, dtype=np.float64) / HALF))
    ang = np.arange(T, dtype=np.float64)[:, None] * inv_freq[None, :]        # (T, HALF)
    cos_head = np.concatenate([np.cos(ang), np.cos(ang)], axis=1)            # (T, HEAD)
    sin_head = np.concatenate([-np.sin(ang), np.sin(ang)], axis=1)           # sign baked in
    cos_row = np.tile(np.tile(cos_head, (1, NHEADS)), (B, 1))                # (R, NH_HD)
    sin_row = np.tile(np.tile(sin_head, (1, NHEADS)), (B, 1))
    cos2 = jnp.asarray(np.concatenate([cos_row, cos_row], axis=1), jnp.float32)
    sin2 = jnp.asarray(np.concatenate([sin_row, sin_row], axis=1), jnp.float32)

    padded_noise = jnp.concatenate(
        [jnp.zeros((B, S, NLAYERS, ZL), noise.dtype), noise], axis=1).astype(jnp.float32)
    noise_rows = padded_noise.reshape(R, NLAYERS * ZL)                       # col = l*ZL + j

    # single packed row-wise operand -> one input DMA instead of six
    rowpack = jnp.concatenate([hidden_rows, mask_bd, cos2, sin2, noise_rows], axis=1)

    packed = pl.pallas_call(
        vaelm_encoder_kernel,
        out_shape=jax.ShapeDtypeStruct((NLAYERS, R, 3 * ZL), jnp.float32),
        compiler_params=pltpu.CompilerParams(vmem_limit_bytes=32 * 1024 * 1024),
    )(rowpack, params['lp32'], params['wa'], params['wb'])

    # keep thought rows only, unpack to (B, THOUGHT, NLAYERS, ZL)
    packed = packed.reshape(NLAYERS, B, T, 3 * ZL)[:, :, S:, :]
    mus = jnp.transpose(packed[..., 0 * ZL:1 * ZL], (1, 2, 0, 3))
    sigmas = jnp.transpose(packed[..., 1 * ZL:2 * ZL], (1, 2, 0, 3))
    z = jnp.transpose(packed[..., 2 * ZL:3 * ZL], (1, 2, 0, 3))

    if reparam_scale is not None:
        # detach() only affects gradients; forward value is identity
        z = z * reparam_scale + jax.lax.stop_gradient((1 - reparam_scale) * z)
        mus = mus * reparam_scale + jax.lax.stop_gradient((1 - reparam_scale) * mus)
        sigmas = sigmas * reparam_scale + jax.lax.stop_gradient((1 - reparam_scale) * sigmas)

    return z, mus, sigmas


if __name__ == "__main__":
    key = jax.random.PRNGKey(0)
    kp, kid, kn = jax.random.split(key, 3)
    params = init_params(kp)

    B, S = 2, 8
    input_ids = jax.random.randint(kid, (B, S), 0, VOCAB, dtype=jnp.int32)
    noise = jax.random.normal(kn, (B, THOUGHT, NLAYERS, ZL), jnp.float32)

    z, mus, sigmas = encoder_forward(params, input_ids, noise)
    (z, mus, sigmas) = jax.block_until_ready((z, mus, sigmas))

    assert z.shape == (B, THOUGHT, NLAYERS, ZL)
    assert mus.shape == (B, THOUGHT, NLAYERS, ZL)
    assert sigmas.shape == (B, THOUGHT, NLAYERS, ZL)
    assert bool(jnp.all(jnp.isfinite(z))) and bool(jnp.all(jnp.isfinite(mus)))
    assert bool(jnp.all(sigmas > 0))
    print("KERNEL_OK")
</pallas_src>

<mosaic_0001>
module attributes {stable_mosaic.version = 11 : i64} {
  func.func @vaelm_encoder_kernel(%arg0: memref<32x200xf32, #tpu.memory_space<vmem>>, %arg1: memref<2x12x32xf32, #tpu.memory_space<vmem>>, %arg2: memref<2x32x328xbf16, #tpu.memory_space<vmem>>, %arg3: memref<2x68x32xbf16, #tpu.memory_space<vmem>>, %arg4: memref<2x32x12xf32, #tpu.memory_space<vmem>>) attributes {dimension_semantics = [], scalar_prefetch = 0 : i64, scratch_operands = 0 : i64, tpu.core_type = #tpu.core_type<tc>} {
    %c0 = arith.constant 0 : index
    %c0_0 = arith.constant 0 : index
    %0 = vector.load %arg0[%c0, %c0_0] : memref<32x200xf32, #tpu.memory_space<vmem>>, vector<32x32xf32>
    %c0_1 = arith.constant 0 : index
    %c32 = arith.constant 32 : index
    %1 = vector.load %arg0[%c0_1, %c32] : memref<32x200xf32, #tpu.memory_space<vmem>>, vector<32x32xf32>
    %c0_2 = arith.constant 0 : index
    %c64 = arith.constant 64 : index
    %2 = vector.load %arg0[%c0_2, %c64] : memref<32x200xf32, #tpu.memory_space<vmem>>, vector<32x64xf32>
    %c0_3 = arith.constant 0 : index
    %c128 = arith.constant 128 : index
    %3 = vector.load %arg0[%c0_3, %c128] : memref<32x200xf32, #tpu.memory_space<vmem>>, vector<32x64xf32>
    %c0_4 = arith.constant 0 : index
    %c0_5 = arith.constant 0 : index
    %c0_6 = arith.constant 0 : index
    %4 = vector.load %arg1[%c0_4, %c0_5, %c0_6] : memref<2x12x32xf32, #tpu.memory_space<vmem>>, vector<1x12x32xf32>
    %5 = vector.shape_cast %4 : vector<1x12x32xf32> to vector<12x32xf32>
    %c0_7 = arith.constant 0 : index
    %c0_8 = arith.constant 0 : index
    %c0_9 = arith.constant 0 : index
    %6 = vector.load %arg2[%c0_7, %c0_8, %c0_9] : memref<2x32x328xbf16, #tpu.memory_space<vmem>>, vector<1x32x328xbf16>
    %7 = vector.shape_cast %6 : vector<1x32x328xbf16> to vector<32x328xbf16>
    %c0_10 = arith.constant 0 : index
    %c0_11 = arith.constant 0 : index
    %c0_12 = arith.constant 0 : index
    %8 = vector.load %arg3[%c0_10, %c0_11, %c0_12] : memref<2x68x32xbf16, #tpu.memory_space<vmem>>, vector<1x68x32xbf16>
    %9 = vector.shape_cast %8 : vector<1x68x32xbf16> to vector<68x32xbf16>
    %10 = vector.extract_strided_slice %5 {offsets = [0, 0], sizes = [1, 32], strides = [1, 1]} : vector<12x32xf32> to vector<1x32xf32>
    %11 = arith.mulf %0, %0 : vector<32x32xf32>
    %cst = arith.constant dense<0.000000e+00> : vector<32xf32>
    %12 = vector.multi_reduction <add>, %11, %cst [1] : vector<32x32xf32> to vector<32xf32>
    %13 = vector.shape_cast %12 : vector<32xf32> to vector<32x1xf32>
    %cst_13 = arith.constant 3.200000e+01 : f32
    %14 = vector.broadcast %cst_13 : f32 to vector<32x1xf32>
    %15 = arith.divf %13, %14 : vector<32x1xf32>
    %cst_14 = arith.constant 9.99999974E-6 : f32
    %16 = vector.broadcast %cst_14 : f32 to vector<32x1xf32>
    %17 = arith.addf %15, %16 : vector<32x1xf32>
    %18 = math.rsqrt %17 : vector<32x1xf32>
    %19 = vector.broadcast %18 : vector<32x1xf32> to vector<32x32xf32>
    %20 = arith.mulf %0, %19 : vector<32x32xf32>
    %21 = vector.broadcast %10 : vector<1x32xf32> to vector<32x32xf32>
    %22 = arith.mulf %20, %21 : vector<32x32xf32>
    %23 = arith.truncf %22 : vector<32x32xf32> to vector<32x32xbf16>
    %24 = vector.extract_strided_slice %7 {offsets = [0, 0], sizes = [32, 160], strides = [1, 1]} : vector<32x328xbf16> to vector<32x160xbf16>
    %cst_15 = arith.constant dense<0.000000e+00> : vector<32x160xf32>
    %25 = tpu.matmul %23, %24, %cst_15 {dimension_numbers = #tpu.dot_dimension_numbers<[1], [0], [0], [1], [0, 0, 1, 1], [], []>} : vector<32x32xbf16>, vector<32x160xbf16>, vector<32x160xf32> -> vector<32x160xf32>
    %26 = vector.extract_strided_slice %25 {offsets = [0, 0], sizes = [32, 64], strides = [1, 1]} : vector<32x160xf32> to vector<32x64xf32>
    %27 = vector.extract_strided_slice %25 {offsets = [0, 64], sizes = [32, 32], strides = [1, 1]} : vector<32x160xf32> to vector<32x32xf32>
    %28 = vector.extract_strided_slice %25 {offsets = [0, 96], sizes = [32, 64], strides = [1, 1]} : vector<32x160xf32> to vector<32x64xf32>
    %29 = arith.mulf %26, %2 : vector<32x64xf32>
    %30 = arith.mulf %28, %3 : vector<32x64xf32>
    %31 = arith.addf %29, %30 : vector<32x64xf32>
    %32 = vector.extract_strided_slice %31 {offsets = [0, 0], sizes = [32, 32], strides = [1, 1]} : vector<32x64xf32> to vector<32x32xf32>
    %33 = vector.extract_strided_slice %31 {offsets = [0, 32], sizes = [32, 32], strides = [1, 1]} : vector<32x64xf32> to vector<32x32xf32>
    %34 = vector.extract_strided_slice %5 {offsets = [6, 0], sizes = [4, 32], strides = [1, 1]} : vector<12x32xf32> to vector<4x32xf32>
    %35 = tpu.transpose %34, [1, 0] : vector<4x32xf32> -> vector<32x4xf32>
    %cst_16 = arith.constant dense<0.000000e+00> : vector<32x4xf32>
    %36 = tpu.matmul %32, %35, %cst_16 {dimension_numbers = #tpu.dot_dimension_numbers<[1], [0], [0], [1], [0, 0, 1, 1], [], []>} : vector<32x32xf32>, vector<32x4xf32>, vector<32x4xf32> -> vector<32x4xf32>
    %cst_17 = arith.constant 2.500000e-01 : f32
    %37 = vector.broadcast %cst_17 : f32 to vector<32x4xf32>
    %38 = arith.mulf %36, %37 : vector<32x4xf32>
    %39 = vector.extract_strided_slice %32 {offsets = [0, 0], sizes = [32, 16], strides = [1, 1]} : vector<32x32xf32> to vector<32x16xf32>
    %40 = vector.extract_strided_slice %33 {offsets = [0, 0], sizes = [32, 16], strides = [1, 1]} : vector<32x32xf32> to vector<32x16xf32>
    %41 = vector.extract_strided_slice %27 {offsets = [0, 0], sizes = [32, 16], strides = [1, 1]} : vector<32x32xf32> to vector<32x16xf32>
    %42 = tpu.transpose %40, [1, 0] : vector<32x16xf32> -> vector<16x32xf32>
    %cst_18 = arith.constant dense<0.000000e+00> : vector<32x32xf32>
    %43 = tpu.matmul %39, %42, %cst_18 {dimension_numbers = #tpu.dot_dimension_numbers<[1], [0], [0], [1], [0, 0, 1, 1], [], []>} : vector<32x16xf32>, vector<16x32xf32>, vector<32x32xf32> -> vector<32x32xf32>
    %cst_19 = arith.constant 2.500000e-01 : f32
    %44 = vector.broadcast %cst_19 : f32 to vector<32x32xf32>
    %45 = arith.mulf %43, %44 : vector<32x32xf32>
    %46 = arith.addf %45, %1 : vector<32x32xf32>
    %47 = vector.extract_strided_slice %38 {offsets = [0, 0], sizes = [32, 2], strides = [1, 1]} : vector<32x4xf32> to vector<32x2xf32>
    %cst_20 = arith.constant dense<0xFF800000> : vector<32xf32>
    %48 = vector.multi_reduction <maximumf>, %46, %cst_20 [1] : vector<32x32xf32> to vector<32xf32>
    %49 = vector.shape_cast %48 : vector<32xf32> to vector<32x1xf32>
    %cst_21 = arith.constant dense<0xFF800000> : vector<32xf32>
    %50 = vector.multi_reduction <maximumf>, %47, %cst_21 [1] : vector<32x2xf32> to vector<32xf32>
    %51 = vector.shape_cast %50 : vector<32xf32> to vector<32x1xf32>
    %52 = arith.maximumf %49, %51 : vector<32x1xf32>
    %53 = vector.broadcast %52 : vector<32x1xf32> to vector<32x32xf32>
    %54 = arith.subf %46, %53 : vector<32x32xf32>
    %55 = math.exp %54 : vector<32x32xf32>
    %56 = vector.broadcast %52 : vector<32x1xf32> to vector<32x2xf32>
    %57 = arith.subf %47, %56 : vector<32x2xf32>
    %58 = math.exp %57 : vector<32x2xf32>
    %cst_22 = arith.constant dense<0.000000e+00> : vector<32xf32>
    %59 = vector.multi_reduction <add>, %55, %cst_22 [1] : vector<32x32xf32> to vector<32xf32>
    %60 = vector.shape_cast %59 : vector<32xf32> to vector<32x1xf32>
    %cst_23 = arith.constant dense<0.000000e+00> : vector<32xf32>
    %61 = vector.multi_reduction <add>, %58, %cst_23 [1] : vector<32x2xf32> to vector<32xf32>
    %62 = vector.shape_cast %61 : vector<32xf32> to vector<32x1xf32>
    %63 = arith.addf %60, %62 : vector<32x1xf32>
    %64 = tpu.reciprocal %63 {approx = true} : vector<32x1xf32> -> vector<32x1xf32>
    %cst_24 = arith.constant dense<0.000000e+00> : vector<32x16xf32>
    %65 = tpu.matmul %55, %41, %cst_24 {dimension_numbers = #tpu.dot_dimension_numbers<[1], [0], [0], [1], [0, 0, 1, 1], [], []>} : vector<32x32xf32>, vector<32x16xf32>, vector<32x16xf32> -> vector<32x16xf32>
    %66 = vector.extract_strided_slice %5 {offsets = [10, 0], sizes = [2, 16], strides = [1, 1]} : vector<12x32xf32> to vector<2x16xf32>
    %cst_25 = arith.constant dense<0.000000e+00> : vector<32x16xf32>
    %67 = tpu.matmul %58, %66, %cst_25 {dimension_numbers = #tpu.dot_dimension_numbers<[1], [0], [0], [1], [0, 0, 1, 1], [], []>} : vector<32x2xf32>, vector<2x16xf32>, vector<32x16xf32> -> vector<32x16xf32>
    %68 = arith.addf %65, %67 : vector<32x16xf32>
    %69 = vector.broadcast %64 : vector<32x1xf32> to vector<32x16xf32>
    %70 = arith.mulf %68, %69 : vector<32x16xf32>
    %71 = vector.extract_strided_slice %32 {offsets = [0, 16], sizes = [32, 16], strides = [1, 1]} : vector<32x32xf32> to vector<32x16xf32>
    %72 = vector.extract_strided_slice %33 {offsets = [0, 16], sizes = [32, 16], strides = [1, 1]} : vector<32x32xf32> to vector<32x16xf32>
    %73 = vector.extract_strided_slice %27 {offsets = [0, 16], sizes = [32, 16], strides = [1, 1]} : vector<32x32xf32> to vector<32x16xf32>
    %74 = tpu.transpose %72, [1, 0] : vector<32x16xf32> -> vector<16x32xf32>
    %cst_26 = arith.constant dense<0.000000e+00> : vector<32x32xf32>
    %75 = tpu.matmul %71, %74, %cst_26 {dimension_numbers = #tpu.dot_dimension_numbers<[1], [0], [0], [1], [0, 0, 1, 1], [], []>} : vector<32x16xf32>, vector<16x32xf32>, vector<32x32xf32> -> vector<32x32xf32>
    %cst_27 = arith.constant 2.500000e-01 : f32
    %76 = vector.broadcast %cst_27 : f32 to vector<32x32xf32>
    %77 = arith.mulf %75, %76 : vector<32x32xf32>
    %78 = arith.addf %77, %1 : vector<32x32xf32>
    %79 = vector.extract_strided_slice %38 {offsets = [0, 2], sizes = [32, 2], strides = [1, 1]} : vector<32x4xf32> to vector<32x2xf32>
    %cst_28 = arith.constant dense<0xFF800000> : vector<32xf32>
    %80 = vector.multi_reduction <maximumf>, %78, %cst_28 [1] : vector<32x32xf32> to vector<32xf32>
    %81 = vector.shape_cast %80 : vector<32xf32> to vector<32x1xf32>
    %cst_29 = arith.constant dense<0xFF800000> : vector<32xf32>
    %82 = vector.multi_reduction <maximumf>, %79, %cst_29 [1] : vector<32x2xf32> to vector<32xf32>
    %83 = vector.shape_cast %82 : vector<32xf32> to vector<32x1xf32>
    %84 = arith.maximumf %81, %83 : vector<32x1xf32>
    %85 = vector.broadcast %84 : vector<32x1xf32> to vector<32x32xf32>
    %86 = arith.subf %78, %85 : vector<32x32xf32>
    %87 = math.exp %86 : vector<32x32xf32>
    %88 = vector.broadcast %84 : vector<32x1xf32> to vector<32x2xf32>
    %89 = arith.subf %79, %88 : vector<32x2xf32>
    %90 = math.exp %89 : vector<32x2xf32>
    %cst_30 = arith.constant dense<0.000000e+00> : vector<32xf32>
    %91 = vector.multi_reduction <add>, %87, %cst_30 [1] : vector<32x32xf32> to vector<32xf32>
    %92 = vector.shape_cast %91 : vector<32xf32> to vector<32x1xf32>
    %cst_31 = arith.constant dense<0.000000e+00> : vector<32xf32>
    %93 = vector.multi_reduction <add>, %90, %cst_31 [1] : vector<32x2xf32> to vector<32xf32>
    %94 = vector.shape_cast %93 : vector<32xf32> to vector<32x1xf32>
    %95 = arith.addf %92, %94 : vector<32x1xf32>
    %96 = tpu.reciprocal %95 {approx = true} : vector<32x1xf32> -> vector<32x1xf32>
    %cst_32 = arith.constant dense<0.000000e+00> : vector<32x16xf32>
    %97 = tpu.matmul %87, %73, %cst_32 {dimension_numbers = #tpu.dot_dimension_numbers<[1], [0], [0], [1], [0, 0, 1, 1], [], []>} : vector<32x32xf32>, vector<32x16xf32>, vector<32x16xf32> -> vector<32x16xf32>
    %98 = vector.extract_strided_slice %5 {offsets = [10, 16], sizes = [2, 16], strides = [1, 1]} : vector<12x32xf32> to vector<2x16xf32>
    %cst_33 = arith.constant dense<0.000000e+00> : vector<32x16xf32>
    %99 = tpu.matmul %90, %98, %cst_33 {dimension_numbers = #tpu.dot_dimension_numbers<[1], [0], [0], [1], [0, 0, 1, 1], [], []>} : vector<32x2xf32>, vector<2x16xf32>, vector<32x16xf32> -> vector<32x16xf32>
    %100 = arith.addf %97, %99 : vector<32x16xf32>
    %101 = vector.broadcast %96 : vector<32x1xf32> to vector<32x16xf32>
    %102 = arith.mulf %100, %101 : vector<32x16xf32>
    %103 = tpu.concatenate %70, %102 in 1 : vector<32x16xf32>, vector<32x16xf32> -> vector<32x32xf32>
    %104 = arith.truncf %103 : vector<32x32xf32> to vector<32x32xbf16>
    %105 = vector.extract_strided_slice %7 {offsets = [0, 160], sizes = [32, 32], strides = [1, 1]} : vector<32x328xbf16> to vector<32x32xbf16>
    %cst_34 = arith.constant dense<0.000000e+00> : vector<32x32xf32>
    %106 = tpu.matmul %104, %105, %cst_34 {dimension_numbers = #tpu.dot_dimension_numbers<[1], [0], [0], [1], [0, 0, 1, 1], [], []>} : vector<32x32xbf16>, vector<32x32xbf16>, vector<32x32xf32> -> vector<32x32xf32>
    %107 = vector.extract_strided_slice %5 {offsets = [3, 0], sizes = [1, 32], strides = [1, 1]} : vector<12x32xf32> to vector<1x32xf32>
    %108 = vector.broadcast %107 : vector<1x32xf32> to vector<32x32xf32>
    %109 = arith.mulf %108, %106 : vector<32x32xf32>
    %110 = arith.addf %0, %109 : vector<32x32xf32>
    %111 = vector.extract_strided_slice %5 {offsets = [1, 0], sizes = [1, 32], strides = [1, 1]} : vector<12x32xf32> to vector<1x32xf32>
    %112 = arith.mulf %110, %110 : vector<32x32xf32>
    %cst_35 = arith.constant dense<0.000000e+00> : vector<32xf32>
    %113 = vector.multi_reduction <add>, %112, %cst_35 [1] : vector<32x32xf32> to vector<32xf32>
    %114 = vector.shape_cast %113 : vector<32xf32> to vector<32x1xf32>
    %cst_36 = arith.constant 3.200000e+01 : f32
    %115 = vector.broadcast %cst_36 : f32 to vector<32x1xf32>
    %116 = arith.divf %114, %115 : vector<32x1xf32>
    %cst_37 = arith.constant 9.99999974E-6 : f32
    %117 = vector.broadcast %cst_37 : f32 to vector<32x1xf32>
    %118 = arith.addf %116, %117 : vector<32x1xf32>
    %119 = math.rsqrt %118 : vector<32x1xf32>
    %120 = vector.broadcast %119 : vector<32x1xf32> to vector<32x32xf32>
    %121 = arith.mulf %110, %120 : vector<32x32xf32>
    %122 = vector.broadcast %111 : vector<1x32xf32> to vector<32x32xf32>
    %123 = arith.mulf %121, %122 : vector<32x32xf32>
    %124 = arith.truncf %123 : vector<32x32xf32> to vector<32x32xbf16>
    %125 = vector.extract_strided_slice %7 {offsets = [0, 192], sizes = [32, 128], strides = [1, 1]} : vector<32x328xbf16> to vector<32x128xbf16>
    %cst_38 = arith.constant dense<0.000000e+00> : vector<32x128xf32>
    %126 = tpu.matmul %124, %125, %cst_38 {dimension_numbers = #tpu.dot_dimension_numbers<[1], [0], [0], [1], [0, 0, 1, 1], [], []>} : vector<32x32xbf16>, vector<32x128xbf16>, vector<32x128xf32> -> vector<32x128xf32>
    %127 = vector.extract_strided_slice %126 {offsets = [0, 0], sizes = [32, 64], strides = [1, 1]} : vector<32x128xf32> to vector<32x64xf32>
    %128 = vector.extract_strided_slice %126 {offsets = [0, 64], sizes = [32, 64], strides = [1, 1]} : vector<32x128xf32> to vector<32x64xf32>
    %129 = arith.negf %127 : vector<32x64xf32>
    %130 = math.exp %129 : vector<32x64xf32>
    %cst_39 = arith.constant 1.000000e+00 : f32
    %131 = vector.broadcast %cst_39 : f32 to vector<32x64xf32>
    %132 = arith.addf %131, %130 : vector<32x64xf32>
    %133 = arith.divf %131, %132 : vector<32x64xf32>
    %134 = arith.mulf %127, %133 : vector<32x64xf32>
    %135 = arith.mulf %134, %128 : vector<32x64xf32>
    %136 = arith.truncf %135 : vector<32x64xf32> to vector<32x64xbf16>
    %137 = vector.extract_strided_slice %9 {offsets = [0, 0], sizes = [64, 32], strides = [1, 1]} : vector<68x32xbf16> to vector<64x32xbf16>
    %cst_40 = arith.constant dense<0.000000e+00> : vector<32x32xf32>
    %138 = tpu.matmul %136, %137, %cst_40 {dimension_numbers = #tpu.dot_dimension_numbers<[1], [0], [0], [1], [0, 0, 1, 1], [], []>} : vector<32x64xbf16>, vector<64x32xbf16>, vector<32x32xf32> -> vector<32x32xf32>
    %139 = vector.extract_strided_slice %5 {offsets = [4, 0], sizes = [1, 32], strides = [1, 1]} : vector<12x32xf32> to vector<1x32xf32>
    %140 = vector.broadcast %139 : vector<1x32xf32> to vector<32x32xf32>
    %141 = arith.mulf %140, %138 : vector<32x32xf32>
    %142 = arith.addf %110, %141 : vector<32x32xf32>
    %143 = vector.extract_strided_slice %5 {offsets = [2, 0], sizes = [1, 32], strides = [1, 1]} : vector<12x32xf32> to vector<1x32xf32>
    %144 = arith.mulf %142, %142 : vector<32x32xf32>
    %cst_41 = arith.constant dense<0.000000e+00> : vector<32xf32>
    %145 = vector.multi_reduction <add>, %144, %cst_41 [1] : vector<32x32xf32> to vector<32xf32>
    %146 = vector.shape_cast %145 : vector<32xf32> to vector<32x1xf32>
    %cst_42 = arith.constant 3.200000e+01 : f32
    %147 = vector.broadcast %cst_42 : f32 to vector<32x1xf32>
    %148 = arith.divf %146, %147 : vector<32x1xf32>
    %cst_43 = arith.constant 9.99999974E-6 : f32
    %149 = vector.broadcast %cst_43 : f32 to vector<32x1xf32>
    %150 = arith.addf %148, %149 : vector<32x1xf32>
    %151 = math.rsqrt %150 : vector<32x1xf32>
    %152 = vector.broadcast %151 : vector<32x1xf32> to vector<32x32xf32>
    %153 = arith.mulf %142, %152 : vector<32x32xf32>
    %154 = vector.broadcast %143 : vector<1x32xf32> to vector<32x32xf32>
    %155 = arith.mulf %153, %154 : vector<32x32xf32>
    %156 = arith.truncf %155 : vector<32x32xf32> to vector<32x32xbf16>
    %157 = vector.extract_strided_slice %7 {offsets = [0, 320], sizes = [32, 8], strides = [1, 1]} : vector<32x328xbf16> to vector<32x8xbf16>
    %cst_44 = arith.constant dense<0.000000e+00> : vector<32x8xf32>
    %158 = tpu.matmul %156, %157, %cst_44 {dimension_numbers = #tpu.dot_dimension_numbers<[1], [0], [0], [1], [0, 0, 1, 1], [], []>} : vector<32x32xbf16>, vector<32x8xbf16>, vector<32x8xf32> -> vector<32x8xf32>
    %159 = vector.extract_strided_slice %158 {offsets = [0, 0], sizes = [32, 4], strides = [1, 1]} : vector<32x8xf32> to vector<32x4xf32>
    %cst_45 = arith.constant 0.353553385 : f32
    %160 = vector.broadcast %cst_45 : f32 to vector<32x4xf32>
    %161 = arith.mulf %159, %160 : vector<32x4xf32>
    %162 = vector.extract_strided_slice %158 {offsets = [0, 4], sizes = [32, 4], strides = [1, 1]} : vector<32x8xf32> to vector<32x4xf32>
    %cst_46 = arith.constant 0.353553385 : f32
    %163 = vector.broadcast %cst_46 : f32 to vector<32x4xf32>
    %164 = arith.mulf %162, %163 : vector<32x4xf32>
    %cst_47 = arith.constant 0.541324854 : f32
    %165 = vector.broadcast %cst_47 : f32 to vector<32x4xf32>
    %166 = arith.addf %164, %165 : vector<32x4xf32>
    %cst_48 = arith.constant 0.000000e+00 : f32
    %167 = vector.broadcast %cst_48 : f32 to vector<32x4xf32>
    %168 = arith.maximumf %166, %167 : vector<32x4xf32>
    %169 = math.absf %166 : vector<32x4xf32>
    %cst_49 = arith.constant 0.000000e+00 : f32
    %170 = vector.broadcast %cst_49 : f32 to vector<32x4xf32>
    %171 = arith.subf %170, %169 : vector<32x4xf32>
    %172 = math.exp %171 : vector<32x4xf32>
    %cst_50 = arith.constant 1.000000e+00 : f32
    %173 = vector.broadcast %cst_50 : f32 to vector<32x4xf32>
    %174 = arith.addf %173, %172 : vector<32x4xf32>
    %175 = math.log %174 : vector<32x4xf32>
    %176 = arith.addf %168, %175 : vector<32x4xf32>
    %c0_51 = arith.constant 0 : index
    %c192 = arith.constant 192 : index
    %177 = vector.load %arg0[%c0_51, %c192] : memref<32x200xf32, #tpu.memory_space<vmem>>, vector<32x4xf32>
    %178 = arith.mulf %176, %177 : vector<32x4xf32>
    %179 = arith.addf %161, %178 : vector<32x4xf32>
    %180 = arith.truncf %179 : vector<32x4xf32> to vector<32x4xbf16>
    %181 = vector.extract_strided_slice %9 {offsets = [64, 0], sizes = [4, 32], strides = [1, 1]} : vector<68x32xbf16> to vector<4x32xbf16>
    %cst_52 = arith.constant dense<0.000000e+00> : vector<32x32xf32>
    %182 = tpu.matmul %180, %181, %cst_52 {dimension_numbers = #tpu.dot_dimension_numbers<[1], [0], [0], [1], [0, 0, 1, 1], [], []>} : vector<32x4xbf16>, vector<4x32xbf16>, vector<32x32xf32> -> vector<32x32xf32>
    %183 = vector.extract_strided_slice %5 {offsets = [5, 0], sizes = [1, 32], strides = [1, 1]} : vector<12x32xf32> to vector<1x32xf32>
    %184 = vector.broadcast %183 : vector<1x32xf32> to vector<32x32xf32>
    %185 = arith.mulf %184, %182 : vector<32x32xf32>
    %186 = arith.addf %142, %185 : vector<32x32xf32>
    %c0_53 = arith.constant 0 : index
    %c0_54 = arith.constant 0 : index
    %c0_55 = arith.constant 0 : index
    %187 = vector.load %arg4[%c0_53, %c0_54, %c0_55] : memref<2x32x12xf32, #tpu.memory_space<vmem>>, vector<1x32x4xf32>
    %188 = vector.shape_cast %187 : vector<1x32x4xf32> to vector<32x4xf32>
    %189 = vector.shape_cast %161 : vector<32x4xf32> to vector<1x32x4xf32>
    tpu.vector_store %arg4[%c0_53, %c0_54, %c0_55], %189 {strides = array<i32>} : memref<2x32x12xf32, #tpu.memory_space<vmem>>, vector<1x32x4xf32>,
    %c0_56 = arith.constant 0 : index
    %c0_57 = arith.constant 0 : index
    %c4 = arith.constant 4 : index
    %190 = vector.load %arg4[%c0_56, %c0_57, %c4] : memref<2x32x12xf32, #tpu.memory_space<vmem>>, vector<1x32x4xf32>
    %191 = vector.shape_cast %190 : vector<1x32x4xf32> to vector<32x4xf32>
    %192 = vector.shape_cast %176 : vector<32x4xf32> to vector<1x32x4xf32>
    tpu.vector_store %arg4[%c0_56, %c0_57, %c4], %192 {strides = array<i32>} : memref<2x32x12xf32, #tpu.memory_space<vmem>>, vector<1x32x4xf32>,
    %c0_58 = arith.constant 0 : index
    %c0_59 = arith.constant 0 : index
    %c8 = arith.constant 8 : index
    %193 = vector.load %arg4[%c0_58, %c0_59, %c8] : memref<2x32x12xf32, #tpu.memory_space<vmem>>, vector<1x32x4xf32>
    %194 = vector.shape_cast %193 : vector<1x32x4xf32> to vector<32x4xf32>
    %195 = vector.shape_cast %179 : vector<32x4xf32> to vector<1x32x4xf32>
    tpu.vector_store %arg4[%c0_58, %c0_59, %c8], %195 {strides = array<i32>} : memref<2x32x12xf32, #tpu.memory_space<vmem>>, vector<1x32x4xf32>,
    %c1 = arith.constant 1 : index
    %c0_60 = arith.constant 0 : index
    %c0_61 = arith.constant 0 : index
    %196 = vector.load %arg1[%c1, %c0_60, %c0_61] : memref<2x12x32xf32, #tpu.memory_space<vmem>>, vector<1x12x32xf32>
    %197 = vector.shape_cast %196 : vector<1x12x32xf32> to vector<12x32xf32>
    %c1_62 = arith.constant 1 : index
    %c0_63 = arith.constant 0 : index
    %c0_64 = arith.constant 0 : index
    %198 = vector.load %arg2[%c1_62, %c0_63, %c0_64] : memref<2x32x328xbf16, #tpu.memory_space<vmem>>, vector<1x32x328xbf16>
    %199 = vector.shape_cast %198 : vector<1x32x328xbf16> to vector<32x328xbf16>
    %c1_65 = arith.constant 1 : index
    %c0_66 = arith.constant 0 : index
    %c0_67 = arith.constant 0 : index
    %200 = vector.load %arg3[%c1_65, %c0_66, %c0_67] : memref<2x68x32xbf16, #tpu.memory_space<vmem>>, vector<1x68x32xbf16>
    %201 = vector.shape_cast %200 : vector<1x68x32xbf16> to vector<68x32xbf16>
    %202 = vector.extract_strided_slice %197 {offsets = [0, 0], sizes = [1, 32], strides = [1, 1]} : vector<12x32xf32> to vector<1x32xf32>
    %203 = arith.mulf %186, %186 : vector<32x32xf32>
    %cst_68 = arith.constant dense<0.000000e+00> : vector<32xf32>
    %204 = vector.multi_reduction <add>, %203, %cst_68 [1] : vector<32x32xf32> to vector<32xf32>
    %205 = vector.shape_cast %204 : vector<32xf32> to vector<32x1xf32>
    %cst_69 = arith.constant 3.200000e+01 : f32
    %206 = vector.broadcast %cst_69 : f32 to vector<32x1xf32>
    %207 = arith.divf %205, %206 : vector<32x1xf32>
    %cst_70 = arith.constant 9.99999974E-6 : f32
    %208 = vector.broadcast %cst_70 : f32 to vector<32x1xf32>
    %209 = arith.addf %207, %208 : vector<32x1xf32>
    %210 = math.rsqrt %209 : vector<32x1xf32>
    %211 = vector.broadcast %210 : vector<32x1xf32> to vector<32x32xf32>
    %212 = arith.mulf %186, %211 : vector<32x32xf32>
    %213 = vector.broadcast %202 : vector<1x32xf32> to vector<32x32xf32>
    %214 = arith.mulf %212, %213 : vector<32x32xf32>
    %215 = arith.truncf %214 : vector<32x32xf32> to vector<32x32xbf16>
    %216 = vector.extract_strided_slice %199 {offsets = [0, 0], sizes = [32, 160], strides = [1, 1]} : vector<32x328xbf16> to vector<32x160xbf16>
    %cst_71 = arith.constant dense<0.000000e+00> : vector<32x160xf32>
    %217 = tpu.matmul %215, %216, %cst_71 {dimension_numbers = #tpu.dot_dimension_numbers<[1], [0], [0], [1], [0, 0, 1, 1], [], []>} : vector<32x32xbf16>, vector<32x160xbf16>, vector<32x160xf32> -> vector<32x160xf32>
    %218 = vector.extract_strided_slice %217 {offsets = [0, 0], sizes = [32, 64], strides = [1, 1]} : vector<32x160xf32> to vector<32x64xf32>
    %219 = vector.extract_strided_slice %217 {offsets = [0, 64], sizes = [32, 32], strides = [1, 1]} : vector<32x160xf32> to vector<32x32xf32>
    %220 = vector.extract_strided_slice %217 {offsets = [0, 96], sizes = [32, 64], strides = [1, 1]} : vector<32x160xf32> to vector<32x64xf32>
    %221 = arith.mulf %218, %2 : vector<32x64xf32>
    %222 = arith.mulf %220, %3 : vector<32x64xf32>
    %223 = arith.addf %221, %222 : vector<32x64xf32>
    %224 = vector.extract_strided_slice %223 {offsets = [0, 0], sizes = [32, 32], strides = [1, 1]} : vector<32x64xf32> to vector<32x32xf32>
    %225 = vector.extract_strided_slice %223 {offsets = [0, 32], sizes = [32, 32], strides = [1, 1]} : vector<32x64xf32> to vector<32x32xf32>
    %226 = vector.extract_strided_slice %197 {offsets = [6, 0], sizes = [4, 32], strides = [1, 1]} : vector<12x32xf32> to vector<4x32xf32>
    %227 = tpu.transpose %226, [1, 0] : vector<4x32xf32> -> vector<32x4xf32>
    %cst_72 = arith.constant dense<0.000000e+00> : vector<32x4xf32>
    %228 = tpu.matmul %224, %227, %cst_72 {dimension_numbers = #tpu.dot_dimension_numbers<[1], [0], [0], [1], [0, 0, 1, 1], [], []>} : vector<32x32xf32>, vector<32x4xf32>, vector<32x4xf32> -> vector<32x4xf32>
    %cst_73 = arith.constant 2.500000e-01 : f32
    %229 = vector.broadcast %cst_73 : f32 to vector<32x4xf32>
    %230 = arith.mulf %228, %229 : vector<32x4xf32>
    %231 = vector.extract_strided_slice %224 {offsets = [0, 0], sizes = [32, 16], strides = [1, 1]} : vector<32x32xf32> to vector<32x16xf32>
    %232 = vector.extract_strided_slice %225 {offsets = [0, 0], sizes = [32, 16], strides = [1, 1]} : vector<32x32xf32> to vector<32x16xf32>
    %233 = vector.extract_strided_slice %219 {offsets = [0, 0], sizes = [32, 16], strides = [1, 1]} : vector<32x32xf32> to vector<32x16xf32>
    %234 = tpu.transpose %232, [1, 0] : vector<32x16xf32> -> vector<16x32xf32>
    %cst_74 = arith.constant dense<0.000000e+00> : vector<32x32xf32>
    %235 = tpu.matmul %231, %234, %cst_74 {dimension_numbers = #tpu.dot_dimension_numbers<[1], [0], [0], [1], [0, 0, 1, 1], [], []>} : vector<32x16xf32>, vector<16x32xf32>, vector<32x32xf32> -> vector<32x32xf32>
    %cst_75 = arith.constant 2.500000e-01 : f32
    %236 = vector.broadcast %cst_75 : f32 to vector<32x32xf32>
    %237 = arith.mulf %235, %236 : vector<32x32xf32>
    %238 = arith.addf %237, %1 : vector<32x32xf32>
    %239 = vector.extract_strided_slice %230 {offsets = [0, 0], sizes = [32, 2], strides = [1, 1]} : vector<32x4xf32> to vector<32x2xf32>
    %cst_76 = arith.constant dense<0xFF800000> : vector<32xf32>
    %240 = vector.multi_reduction <maximumf>, %238, %cst_76 [1] : vector<32x32xf32> to vector<32xf32>
    %241 = vector.shape_cast %240 : vector<32xf32> to vector<32x1xf32>
    %cst_77 = arith.constant dense<0xFF800000> : vector<32xf32>
    %242 = vector.multi_reduction <maximumf>, %239, %cst_77 [1] : vector<32x2xf32> to vector<32xf32>
    %243 = vector.shape_cast %242 : vector<32xf32> to vector<32x1xf32>
    %244 = arith.maximumf %241, %243 : vector<32x1xf32>
    %245 = vector.broadcast %244 : vector<32x1xf32> to vector<32x32xf32>
    %246 = arith.subf %238, %245 : vector<32x32xf32>
    %247 = math.exp %246 : vector<32x32xf32>
    %248 = vector.broadcast %244 : vector<32x1xf32> to vector<32x2xf32>
    %249 = arith.subf %239, %248 : vector<32x2xf32>
    %250 = math.exp %249 : vector<32x2xf32>
    %cst_78 = arith.constant dense<0.000000e+00> : vector<32xf32>
    %251 = vector.multi_reduction <add>, %247, %cst_78 [1] : vector<32x32xf32> to vector<32xf32>
    %252 = vector.shape_cast %251 : vector<32xf32> to vector<32x1xf32>
    %cst_79 = arith.constant dense<0.000000e+00> : vector<32xf32>
    %253 = vector.multi_reduction <add>, %250, %cst_79 [1] : vector<32x2xf32> to vector<32xf32>
    %254 = vector.shape_cast %253 : vector<32xf32> to vector<32x1xf32>
    %255 = arith.addf %252, %254 : vector<32x1xf32>
    %256 = tpu.reciprocal %255 {approx = true} : vector<32x1xf32> -> vector<32x1xf32>
    %cst_80 = arith.constant dense<0.000000e+00> : vector<32x16xf32>
    %257 = tpu.matmul %247, %233, %cst_80 {dimension_numbers = #tpu.dot_dimension_numbers<[1], [0], [0], [1], [0, 0, 1, 1], [], []>} : vector<32x32xf32>, vector<32x16xf32>, vector<32x16xf32> -> vector<32x16xf32>
    %258 = vector.extract_strided_slice %197 {offsets = [10, 0], sizes = [2, 16], strides = [1, 1]} : vector<12x32xf32> to vector<2x16xf32>
    %cst_81 = arith.constant dense<0.000000e+00> : vector<32x16xf32>
    %259 = tpu.matmul %250, %258, %cst_81 {dimension_numbers = #tpu.dot_dimension_numbers<[1], [0], [0], [1], [0, 0, 1, 1], [], []>} : vector<32x2xf32>, vector<2x16xf32>, vector<32x16xf32> -> vector<32x16xf32>
    %260 = arith.addf %257, %259 : vector<32x16xf32>
    %261 = vector.broadcast %256 : vector<32x1xf32> to vector<32x16xf32>
    %262 = arith.mulf %260, %261 : vector<32x16xf32>
    %263 = vector.extract_strided_slice %224 {offsets = [0, 16], sizes = [32, 16], strides = [1, 1]} : vector<32x32xf32> to vector<32x16xf32>
    %264 = vector.extract_strided_slice %225 {offsets = [0, 16], sizes = [32, 16], strides = [1, 1]} : vector<32x32xf32> to vector<32x16xf32>
    %265 = vector.extract_strided_slice %219 {offsets = [0, 16], sizes = [32, 16], strides = [1, 1]} : vector<32x32xf32> to vector<32x16xf32>
    %266 = tpu.transpose %264, [1, 0] : vector<32x16xf32> -> vector<16x32xf32>
    %cst_82 = arith.constant dense<0.000000e+00> : vector<32x32xf32>
    %267 = tpu.matmul %263, %266, %cst_82 {dimension_numbers = #tpu.dot_dimension_numbers<[1], [0], [0], [1], [0, 0, 1, 1], [], []>} : vector<32x16xf32>, vector<16x32xf32>, vector<32x32xf32> -> vector<32x32xf32>
    %cst_83 = arith.constant 2.500000e-01 : f32
    %268 = vector.broadcast %cst_83 : f32 to vector<32x32xf32>
    %269 = arith.mulf %267, %268 : vector<32x32xf32>
    %270 = arith.addf %269, %1 : vector<32x32xf32>
    %271 = vector.extract_strided_slice %230 {offsets = [0, 2], sizes = [32, 2], strides = [1, 1]} : vector<32x4xf32> to vector<32x2xf32>
    %cst_84 = arith.constant dense<0xFF800000> : vector<32xf32>
    %272 = vector.multi_reduction <maximumf>, %270, %cst_84 [1] : vector<32x32xf32> to vector<32xf32>
    %273 = vector.shape_cast %272 : vector<32xf32> to vector<32x1xf32>
    %cst_85 = arith.constant dense<0xFF800000> : vector<32xf32>
    %274 = vector.multi_reduction <maximumf>, %271, %cst_85 [1] : vector<32x2xf32> to vector<32xf32>
    %275 = vector.shape_cast %274 : vector<32xf32> to vector<32x1xf32>
    %276 = arith.maximumf %273, %275 : vector<32x1xf32>
    %277 = vector.broadcast %276 : vector<32x1xf32> to vector<32x32xf32>
    %278 = arith.subf %270, %277 : vector<32x32xf32>
    %279 = math.exp %278 : vector<32x32xf32>
    %280 = vector.broadcast %276 : vector<32x1xf32> to vector<32x2xf32>
    %281 = arith.subf %271, %280 : vector<32x2xf32>
    %282 = math.exp %281 : vector<32x2xf32>
    %cst_86 = arith.constant dense<0.000000e+00> : vector<32xf32>
    %283 = vector.multi_reduction <add>, %279, %cst_86 [1] : vector<32x32xf32> to vector<32xf32>
    %284 = vector.shape_cast %283 : vector<32xf32> to vector<32x1xf32>
    %cst_87 = arith.constant dense<0.000000e+00> : vector<32xf32>
    %285 = vector.multi_reduction <add>, %282, %cst_87 [1] : vector<32x2xf32> to vector<32xf32>
    %286 = vector.shape_cast %285 : vector<32xf32> to vector<32x1xf32>
    %287 = arith.addf %284, %286 : vector<32x1xf32>
    %288 = tpu.reciprocal %287 {approx = true} : vector<32x1xf32> -> vector<32x1xf32>
    %cst_88 = arith.constant dense<0.000000e+00> : vector<32x16xf32>
    %289 = tpu.matmul %279, %265, %cst_88 {dimension_numbers = #tpu.dot_dimension_numbers<[1], [0], [0], [1], [0, 0, 1, 1], [], []>} : vector<32x32xf32>, vector<32x16xf32>, vector<32x16xf32> -> vector<32x16xf32>
    %290 = vector.extract_strided_slice %197 {offsets = [10, 16], sizes = [2, 16], strides = [1, 1]} : vector<12x32xf32> to vector<2x16xf32>
    %cst_89 = arith.constant dense<0.000000e+00> : vector<32x16xf32>
    %291 = tpu.matmul %282, %290, %cst_89 {dimension_numbers = #tpu.dot_dimension_numbers<[1], [0], [0], [1], [0, 0, 1, 1], [], []>} : vector<32x2xf32>, vector<2x16xf32>, vector<32x16xf32> -> vector<32x16xf32>
    %292 = arith.addf %289, %291 : vector<32x16xf32>
    %293 = vector.broadcast %288 : vector<32x1xf32> to vector<32x16xf32>
    %294 = arith.mulf %292, %293 : vector<32x16xf32>
    %295 = tpu.concatenate %262, %294 in 1 : vector<32x16xf32>, vector<32x16xf32> -> vector<32x32xf32>
    %296 = arith.truncf %295 : vector<32x32xf32> to vector<32x32xbf16>
    %297 = vector.extract_strided_slice %199 {offsets = [0, 160], sizes = [32, 32], strides = [1, 1]} : vector<32x328xbf16> to vector<32x32xbf16>
    %cst_90 = arith.constant dense<0.000000e+00> : vector<32x32xf32>
    %298 = tpu.matmul %296, %297, %cst_90 {dimension_numbers = #tpu.dot_dimension_numbers<[1], [0], [0], [1], [0, 0, 1, 1], [], []>} : vector<32x32xbf16>, vector<32x32xbf16>, vector<32x32xf32> -> vector<32x32xf32>
    %299 = vector.extract_strided_slice %197 {offsets = [3, 0], sizes = [1, 32], strides = [1, 1]} : vector<12x32xf32> to vector<1x32xf32>
    %300 = vector.broadcast %299 : vector<1x32xf32> to vector<32x32xf32>
    %301 = arith.mulf %300, %298 : vector<32x32xf32>
    %302 = arith.addf %186, %301 : vector<32x32xf32>
    %303 = vector.extract_strided_slice %197 {offsets = [1, 0], sizes = [1, 32], strides = [1, 1]} : vector<12x32xf32> to vector<1x32xf32>
    %304 = arith.mulf %302, %302 : vector<32x32xf32>
    %cst_91 = arith.constant dense<0.000000e+00> : vector<32xf32>
    %305 = vector.multi_reduction <add>, %304, %cst_91 [1] : vector<32x32xf32> to vector<32xf32>
    %306 = vector.shape_cast %305 : vector<32xf32> to vector<32x1xf32>
    %cst_92 = arith.constant 3.200000e+01 : f32
    %307 = vector.broadcast %cst_92 : f32 to vector<32x1xf32>
    %308 = arith.divf %306, %307 : vector<32x1xf32>
    %cst_93 = arith.constant 9.99999974E-6 : f32
    %309 = vector.broadcast %cst_93 : f32 to vector<32x1xf32>
    %310 = arith.addf %308, %309 : vector<32x1xf32>
    %311 = math.rsqrt %310 : vector<32x1xf32>
    %312 = vector.broadcast %311 : vector<32x1xf32> to vector<32x32xf32>
    %313 = arith.mulf %302, %312 : vector<32x32xf32>
    %314 = vector.broadcast %303 : vector<1x32xf32> to vector<32x32xf32>
    %315 = arith.mulf %313, %314 : vector<32x32xf32>
    %316 = arith.truncf %315 : vector<32x32xf32> to vector<32x32xbf16>
    %317 = vector.extract_strided_slice %199 {offsets = [0, 192], sizes = [32, 128], strides = [1, 1]} : vector<32x328xbf16> to vector<32x128xbf16>
    %cst_94 = arith.constant dense<0.000000e+00> : vector<32x128xf32>
    %318 = tpu.matmul %316, %317, %cst_94 {dimension_numbers = #tpu.dot_dimension_numbers<[1], [0], [0], [1], [0, 0, 1, 1], [], []>} : vector<32x32xbf16>, vector<32x128xbf16>, vector<32x128xf32> -> vector<32x128xf32>
    %319 = vector.extract_strided_slice %318 {offsets = [0, 0], sizes = [32, 64], strides = [1, 1]} : vector<32x128xf32> to vector<32x64xf32>
    %320 = vector.extract_strided_slice %318 {offsets = [0, 64], sizes = [32, 64], strides = [1, 1]} : vector<32x128xf32> to vector<32x64xf32>
    %321 = arith.negf %319 : vector<32x64xf32>
    %322 = math.exp %321 : vector<32x64xf32>
    %cst_95 = arith.constant 1.000000e+00 : f32
    %323 = vector.broadcast %cst_95 : f32 to vector<32x64xf32>
    %324 = arith.addf %323, %322 : vector<32x64xf32>
    %325 = arith.divf %323, %324 : vector<32x64xf32>
    %326 = arith.mulf %319, %325 : vector<32x64xf32>
    %327 = arith.mulf %326, %320 : vector<32x64xf32>
    %328 = arith.truncf %327 : vector<32x64xf32> to vector<32x64xbf16>
    %329 = vector.extract_strided_slice %201 {offsets = [0, 0], sizes = [64, 32], strides = [1, 1]} : vector<68x32xbf16> to vector<64x32xbf16>
    %cst_96 = arith.constant dense<0.000000e+00> : vector<32x32xf32>
    %330 = tpu.matmul %328, %329, %cst_96 {dimension_numbers = #tpu.dot_dimension_numbers<[1], [0], [0], [1], [0, 0, 1, 1], [], []>} : vector<32x64xbf16>, vector<64x32xbf16>, vector<32x32xf32> -> vector<32x32xf32>
    %331 = vector.extract_strided_slice %197 {offsets = [4, 0], sizes = [1, 32], strides = [1, 1]} : vector<12x32xf32> to vector<1x32xf32>
    %332 = vector.broadcast %331 : vector<1x32xf32> to vector<32x32xf32>
    %333 = arith.mulf %332, %330 : vector<32x32xf32>
    %334 = arith.addf %302, %333 : vector<32x32xf32>
    %335 = vector.extract_strided_slice %197 {offsets = [2, 0], sizes = [1, 32], strides = [1, 1]} : vector<12x32xf32> to vector<1x32xf32>
    %336 = arith.mulf %334, %334 : vector<32x32xf32>
    %cst_97 = arith.constant dense<0.000000e+00> : vector<32xf32>
    %337 = vector.multi_reduction <add>, %336, %cst_97 [1] : vector<32x32xf32> to vector<32xf32>
    %338 = vector.shape_cast %337 : vector<32xf32> to vector<32x1xf32>
    %cst_98 = arith.constant 3.200000e+01 : f32
    %339 = vector.broadcast %cst_98 : f32 to vector<32x1xf32>
    %340 = arith.divf %338, %339 : vector<32x1xf32>
    %cst_99 = arith.constant 9.99999974E-6 : f32
    %341 = vector.broadcast %cst_99 : f32 to vector<32x1xf32>
    %342 = arith.addf %340, %341 : vector<32x1xf32>
    %343 = math.rsqrt %342 : vector<32x1xf32>
    %344 = vector.broadcast %343 : vector<32x1xf32> to vector<32x32xf32>
    %345 = arith.mulf %334, %344 : vector<32x32xf32>
    %346 = vector.broadcast %335 : vector<1x32xf32> to vector<32x32xf32>
    %347 = arith.mulf %345, %346 : vector<32x32xf32>
    %348 = arith.truncf %347 : vector<32x32xf32> to vector<32x32xbf16>
    %349 = vector.extract_strided_slice %199 {offsets = [0, 320], sizes = [32, 8], strides = [1, 1]} : vector<32x328xbf16> to vector<32x8xbf16>
    %cst_100 = arith.constant dense<0.000000e+00> : vector<32x8xf32>
    %350 = tpu.matmul %348, %349, %cst_100 {dimension_numbers = #tpu.dot_dimension_numbers<[1], [0], [0], [1], [0, 0, 1, 1], [], []>} : vector<32x32xbf16>, vector<32x8xbf16>, vector<32x8xf32> -> vector<32x8xf32>
    %351 = vector.extract_strided_slice %350 {offsets = [0, 0], sizes = [32, 4], strides = [1, 1]} : vector<32x8xf32> to vector<32x4xf32>
    %cst_101 = arith.constant 0.353553385 : f32
    %352 = vector.broadcast %cst_101 : f32 to vector<32x4xf32>
    %353 = arith.mulf %351, %352 : vector<32x4xf32>
    %354 = vector.extract_strided_slice %350 {offsets = [0, 4], sizes = [32, 4], strides = [1, 1]} : vector<32x8xf32> to vector<32x4xf32>
    %cst_102 = arith.constant 0.353553385 : f32
    %355 = vector.broadcast %cst_102 : f32 to vector<32x4xf32>
    %356 = arith.mulf %354, %355 : vector<32x4xf32>
    %cst_103 = arith.constant 0.541324854 : f32
    %357 = vector.broadcast %cst_103 : f32 to vector<32x4xf32>
    %358 = arith.addf %356, %357 : vector<32x4xf32>
    %cst_104 = arith.constant 0.000000e+00 : f32
    %359 = vector.broadcast %cst_104 : f32 to vector<32x4xf32>
    %360 = arith.maximumf %358, %359 : vector<32x4xf32>
    %361 = math.absf %358 : vector<32x4xf32>
    %cst_105 = arith.constant 0.000000e+00 : f32
    %362 = vector.broadcast %cst_105 : f32 to vector<32x4xf32>
    %363 = arith.subf %362, %361 : vector<32x4xf32>
    %364 = math.exp %363 : vector<32x4xf32>
    %cst_106 = arith.constant 1.000000e+00 : f32
    %365 = vector.broadcast %cst_106 : f32 to vector<32x4xf32>
    %366 = arith.addf %365, %364 : vector<32x4xf32>
    %367 = math.log %366 : vector<32x4xf32>
    %368 = arith.addf %360, %367 : vector<32x4xf32>
    %c0_107 = arith.constant 0 : index
    %c196 = arith.constant 196 : index
    %369 = vector.load %arg0[%c0_107, %c196] : memref<32x200xf32, #tpu.memory_space<vmem>>, vector<32x4xf32>
    %370 = arith.mulf %368, %369 : vector<32x4xf32>
    %371 = arith.addf %353, %370 : vector<32x4xf32>
    %c1_108 = arith.constant 1 : index
    %c0_109 = arith.constant 0 : index
    %c0_110 = arith.constant 0 : index
    %372 = vector.load %arg4[%c1_108, %c0_109, %c0_110] : memref<2x32x12xf32, #tpu.memory_space<vmem>>, vector<1x32x4xf32>
    %373 = vector.shape_cast %372 : vector<1x32x4xf32> to vector<32x4xf32>
    %374 = vector.shape_cast %353 : vector<32x4xf32> to vector<1x32x4xf32>
    tpu.vector_store %arg4[%c1_108, %c0_109, %c0_110], %374 {strides = array<i32>} : memref<2x32x12xf32, #tpu.memory_space<vmem>>, vector<1x32x4xf32>,
    %c1_111 = arith.constant 1 : index
    %c0_112 = arith.constant 0 : index
    %c4_113 = arith.constant 4 : index
    %375 = vector.load %arg4[%c1_111, %c0_112, %c4_113] : memref<2x32x12xf32, #tpu.memory_space<vmem>>, vector<1x32x4xf32>
    %376 = vector.shape_cast %375 : vector<1x32x4xf32> to vector<32x4xf32>
    %377 = vector.shape_cast %368 : vector<32x4xf32> to vector<1x32x4xf32>
    tpu.vector_store %arg4[%c1_111, %c0_112, %c4_113], %377 {strides = array<i32>} : memref<2x32x12xf32, #tpu.memory_space<vmem>>, vector<1x32x4xf32>,
    %c1_114 = arith.constant 1 : index
    %c0_115 = arith.constant 0 : index
    %c8_116 = arith.constant 8 : index
    %378 = vector.load %arg4[%c1_114, %c0_115, %c8_116] : memref<2x32x12xf32, #tpu.memory_space<vmem>>, vector<1x32x4xf32>
    %379 = vector.shape_cast %378 : vector<1x32x4xf32> to vector<32x4xf32>
    %380 = vector.shape_cast %371 : vector<32x4xf32> to vector<1x32x4xf32>
    tpu.vector_store %arg4[%c1_114, %c0_115, %c8_116], %380 {strides = array<i32>} : memref<2x32x12xf32, #tpu.memory_space<vmem>>, vector<1x32x4xf32>,
    return
  }
}

</mosaic_0001>

<bundles_post_ra>
// kernel: tpu_custom_call.1
= control target key start
LH: loop header
LB: loop body
LE: loop exit
PB: predicated region body
PF: predicated region fallthrough
CT: control target
= control target key end

     0   :  { %vm49_vm0 = vcmask 261120   ;;  %v4571_v13 = vmov 0   ;;  %s4572_s9 = smov 96   ;;  %s4573_s12 = smov 64   ;;  %v79_v31 = vlaneseq  ;;  %vm250_vm1 = vcmask 1041408   ;;  %s5710_s0 = inlined_call_operand.vmem [shape: f32[32,200], index: 0, kind: input, shape index: {}]   ;;  %s5711_s2 = inlined_call_operand.vmem [shape: bf16[2,32,328], index: 2, kind: input, shape index: {}]   ;;  %s5712_s1 = inlined_call_operand.vmem [shape: f32[2,12,32], index: 1, kind: input, shape index: {}]   ;;  %s5713_s3 = inlined_call_operand.vmem [shape: bf16[2,68,32], index: 3, kind: input, shape index: {}]   ;;  %s5714_s4 = inlined_call_operand.vmem [shape: f32[2,32,12], index: 4, kind: output, shape index: {}]  }
   0x1   :  { %v4611_v0 = vld [vmem:[%s5710_s0] sm:$0xff]  ;;  %v4621_v2 = vld [vmem:[%s5710_s0 + $0x10] sm:$0xff]  ;;  %147 = vmatprep.mubr.bf16.mxu0 %v4571_v13  ;;  %v4653_v15 = vld [vmem:[%s5711_s2 + $0x1c] ss:$12 sps:$4 sm:$0xff]   ;;  %s4574_s19 = smov 32   ;;  %s4575_s20 = smov 80  }
   0x2   :  { %v4616_v1 = vld [vmem:[%s5710_s0 + $0x20] sm:$0xff]  ;;  %v45_v3 = vmul.f32 %v4611_v0, %v4611_v0  ;;  %v46_v5 = vmul.f32 %v4621_v2, %v4621_v2  ;;  %v4632_v6 = vld [vmem:[%s5710_s0 + $0x30] sm:$0xff]  ;;  %v23_v17 = vld [vmem:[%s5710_s0 + $0x18] sm:$0xff]  ;;  %v4683_v34 = vshrl.u32 %v79_v31, 7  ;;  %vm365_vm2 = vcmask 130048   ;;  %s4576_s21 = smov 112  }
   0x3   :  { %v47_v4 = vmul.f32 %v4616_v1, %v4616_v1  ;;  %v48_v7 = vmul.f32 %v4632_v6, %v4632_v6  ;;  %v4643_v12 = vld [vmem:[%s5711_s2 + $0x4] ss:$12 sps:$4 sm:$0xff]   ;;  %v4330_v14 = vld [vmem:[%s5711_s2] ss:$12 sps:$4 sm:$0xff]   ;;  %v25_v20 = vld [vmem:[%s5710_s0 + $0x38] sm:$0xff]  ;;  %vm926_vm4 = vcmask 31760  }
   0x4   :  { %v50_v8 = vsel %vm49_vm0, %v45_v3, 0.0  ;;  %v53_v10 = vsel %vm49_vm0, %v46_v5, 0.0  ;;  %115 = vmatprep.subr.bf16.mxu0 %v4643_v12  ;;  %v4333_v16 = vld [vmem:[%s5711_s2 + $0x18] ss:$12 sps:$4 sm:$0xff]   ;;  %v22_v18 = vld [vmem:[%s5710_s0 + $0x8] sm:$0xff]  ;;  %v81_v35 = vsub.s32 0, %v4683_v34  ;;  %vm4778_vm3 = vmpackc.low %vm365_vm2, %vm365_vm2 }
   0x5   :  { %v56_v9 = vsel %vm49_vm0, %v47_v4, 0.0  ;;  %51 = vadd.xlane.f32.xlu0 %v50_v8  ;;  %v59_v11 = vsel %vm49_vm0, %v48_v7, 0.0  ;;  %116 = vmatpush1.bf16.msra.mxu0 %v4330_v14  ;;  %v24_v19 = vld [vmem:[%s5710_s0 + $0x28] sm:$0xff]  ;;  %v4689_v37 = vld [vmem:[%s5712_s1] sm:$0xff]  ;;  %vm499_vm5 = vcmask 15360   ;;  %s4577_s22 = smov 48  }
   0x6   :  { %57 = vadd.xlane.f32.xlu1 %v56_v9  ;;  %117 = vmatprep.subr.bf16.mxu0 %v4653_v15  ;;  %v82_v39 = vrot.slane %v4689_v37, %v81_v35  ;;  %v4704_v52 = vld [vmem:[%s5712_s1 + $0x8] sm:$0xf]  ;;  %v251_v53 = vrot.slane %v4689_v37, 6  ;;  %s4578_s23 = smov 126   ;;  %s4579_s24 = smov 16   ;;  %vm1380_vm6 = vcmask 523264  }
   0x7   :  { %v252_v54 = vrot.slane %v4704_v52, 6  ;;  %s4580_s7 = smov 68   ;;  %vm1763_vm7 = vcmask 31744   ;;  %vm1838_vm8 = vcmask 64544   ;;  %s4581_s14 = smov 124   ;;  %vm1859_vm9 = vcmask 97344  }
   0x8   :  { %s4582_s11 = smov 8  }
   0x9   :  { %54 = vadd.xlane.f32.xlu0 %v53_v10  ;;  %118 = vmatpush1.bf16.msra.mxu0 %v4333_v16  ;;  %v253_v55 = vsel %vm250_vm1, %v251_v53, %v252_v54 }
   0xa   :  { %60 = vadd.xlane.f32.xlu1 %v59_v11  ;;  %3881 = vmatprep.subr.msk.mxu1 %vm49_vm0, %v253_v55 }
   0xb   :  { %3882 = vmatpush3.xpose.msk.msra.mxu1 %vm49_vm0, %v253_v55 }
  0x1b   :  { %194 = vrot.lane.b32.xlu1 %v23_v17, %s4572_s9 }
  0x1f   :  { %192 = vrot.lane.b32.xlu0 %v22_v18, %s4572_s9  ;;  %196 = vrot.lane.b32.xlu1 %v24_v19, %s4572_s9 }
  0x23   :  { %172 = vrot.lane.b32.xlu0 %v4611_v0, %s4573_s12  ;;  %198 = vrot.lane.b32.xlu1 %v25_v20, %s4572_s9 }
  0x27   :  { %176 = vrot.lane.b32.xlu0 %v4616_v1, %s4573_s12  ;;  %174 = vrot.lane.b32.xlu1 %v4621_v2, %s4573_s12 }
  0x2b   :  { %178 = vrot.lane.b32.xlu1 %v4632_v6, %s4573_s12 }
  0x92   :  { %v52_v21 = vpop.xlane.xlu0 %51 }
  0x93   :  { %v58_v22 = vpop.xlane.xlu1 %57  ;;  %v63_v23 = vmul.f32 0.03125, %v52_v21 }
  0x94   :  { %v65_v24 = vmul.f32 0.03125, %v58_v22 }
  0x95   :  { %v67_v25 = vadd.f32 1e-05, %v63_v23 }
  0x96   :  { %v55_v26 = vpop.xlane.xlu0 %54  ;;  %v69_v30 = vadd.f32 1e-05, %v65_v24 }
  0x97   :  { %v61_v27 = vpop.xlane.xlu1 %60  ;;  %4352 = vrsqrt.f32 %v67_v25  ;;  %v64_v28 = vmul.f32 0.03125, %v55_v26 }
  0x98   :  { %v66_v29 = vmul.f32 0.03125, %v61_v27 }
  0x99   :  { %v68_v32 = vadd.f32 1e-05, %v64_v28 }
  0x9a   :  { %v70_v33 = vadd.f32 1e-05, %v66_v29  ;;  %v4713_v57 = vpop.permute.xlu0 %192 }
  0x9b   :  { %4354 = vrsqrt.f32 %v68_v32  ;;  %v4711_v56 = vpop.permute.xlu1 %194 }
  0x9c   :  { %4356 = vrsqrt.f32 %v69_v30 }
  0x9d   :  { %4358 = vrsqrt.f32 %v70_v33 }
  0x9e   :  { %v4739_v21 = vpop.permute.xlu0 %172 }
  0x9f   :  { %v4722_v5 = vpop.permute.xlu1 %196 }
  0xa1   :  { %v4353_v36 = vpop.eup %4352 }
  0xa2   :  { %v75_v38 = vmul.f32 %v4353_v36, %v4611_v0  ;;  %v4743_v23 = vpop.permute.xlu0 %176 }
  0xa3   :  { %v4732_v18 = vpop.permute.xlu1 %198 }
  0xa4   :  { %v83_v44 = vmul.f32 %v82_v39, %v75_v38 }
  0xa5   :  { %v4355_v40 = vpop.eup %4354 }
  0xa6   :  { %v4357_v41 = vpop.eup %4356  ;;  %v76_v42 = vmul.f32 %v4355_v40, %v4621_v2 }
  0xa7   :  { %v4359_v43 = vpop.eup %4358  ;;  %v77_v47 = vmul.f32 %v4357_v41, %v4616_v1  ;;  %v4741_v22 = vpop.permute.xlu1 %174 }
  0xa8   :  { %v84_v45 = vmul.f32 %v82_v39, %v76_v42  ;;  %v78_v48 = vmul.f32 %v4359_v43, %v4632_v6 }
  0xa9   :  { %v85_v49 = vmul.f32 %v82_v39, %v77_v47 }
  0xaa   :  { %v87_v46 = vpack.c.bf16 %v84_v45, %v83_v44  ;;  %v86_v50 = vmul.f32 %v82_v39, %v78_v48 }
  0xab   :  { %v4745_v24 = vpop.permute.xlu1 %178 }
  0xac   :  { %3594 = vmatmul.mubr.msk.bf16.vlgmr.msra.gmra.mrb[0].mxu0 %vm49_vm0, %v87_v46  ;;  %v88_v51 = vpack.c.bf16 %v86_v50, %v85_v49 }
  0xad   :  { %157 = vmatprep.mubr.bf16.mxu0 %v4571_v13 }
  0xb4   :  { %3595 = vmatmul.mubr.msk.bf16.gmra.mrb[4].mxu0 %vm49_vm0, %v88_v51 }
 0x17f   :  { %v149_v58 = vpop.f32.mrb[0].mxu0 }
 0x180   :  { %v151_v59 = vpop.f32.mrb[1].mxu0  ;;  %v204_v60 = vmul.f32 %v4713_v57, %v149_v58  ;;  %v184_v26 = vmul.f32 %v4739_v21, %v149_v58 }
 0x181   :  { %v205_v61 = vmul.f32 %v4713_v57, %v151_v59  ;;  %v153_v62 = vpop.f32.mrb[2].mxu0 }
 0x182   :  { %v155_v63 = vpop.f32.mrb[3].mxu0  ;;  %220 = vrot.lane.b32.xlu0 %v204_v60, %s4574_s19  ;;  %v4718_v3 = vpack.i.bf16 %v153_v62, %v149_v58  ;;  %v206_v4 = vmul.f32 %v4711_v56, %v153_v62  ;;  %v185_v31 = vmul.f32 %v4741_v22, %v153_v62 }
 0x183   :  { %222 = vrot.lane.b32.xlu1 %v205_v61, %s4574_s19  ;;  %v207_v7 = vmul.f32 %v4711_v56, %v155_v63 }
 0x186   :  { %224 = vrot.lane.b32.xlu0 %v206_v4, %s4574_s19 }
 0x187   :  { %v159_v8 = vpop.f32.mrb[4].mxu0  ;;  %226 = vrot.lane.b32.xlu1 %v207_v7, %s4574_s19  ;;  %v572_v7 = vrot.slane %v4704_v52, 2 }
 0x188   :  { %v161_v9 = vpop.f32.mrb[5].mxu0  ;;  %v208_v10 = vmul.f32 %v4722_v5, %v159_v8  ;;  %v186_v39 = vmul.f32 %v4743_v23, %v159_v8 }
 0x189   :  { %v209_v11 = vmul.f32 %v4722_v5, %v161_v9  ;;  %v163_v14 = vpop.f32.mrb[6].mxu0  ;;  %3903 = vmatprep.subr.msk.mxu0 %vm250_vm1, %v572_v7 }
 0x18a   :  { %v165_v16 = vpop.f32.mrb[7].mxu0  ;;  %228 = vrot.lane.b32.xlu0 %v208_v10, %s4574_s19  ;;  %v4730_v17 = vpack.i.bf16 %v163_v14, %v159_v8  ;;  %v210_v19 = vmul.f32 %v4732_v18, %v163_v14  ;;  %v187_v45 = vmul.f32 %v4745_v24, %v163_v14  ;;  %3904 = vmatpush3.msk.msra.mxu0 %vm250_vm1, %v572_v7 }
 0x18b   :  { %230 = vrot.lane.b32.xlu1 %v209_v11, %s4574_s19  ;;  %v211_v20 = vmul.f32 %v4732_v18, %v165_v16 }
 0x18e   :  { %232 = vrot.lane.b32.xlu0 %v210_v19, %s4574_s19 }
 0x18f   :  { %234 = vrot.lane.b32.xlu1 %v211_v20, %s4574_s19 }
 0x1f4   :  { %v221_v25 = vpop.permute.xlu0 %220 }
 0x1f5   :  { %v223_v27 = vpop.permute.xlu1 %222 }
 0x1f6   :  { %v236_v28 = vsel %vm49_vm0, %v221_v25, %v223_v27 }
 0x1f7   :  { %v244_v29 = vadd.f32 %v236_v28, %v184_v26 }
 0x1f8   :  { %v225_v30 = vpop.permute.xlu0 %224 }
 0x1f9   :  { %v227_v32 = vpop.permute.xlu1 %226  ;;  %3883 = vmatprep.mubr.msk.f32.mxu1 %vm49_vm0, %v244_v29 }
 0x1fa   :  { %v237_v33 = vsel %vm49_vm0, %v225_v30, %v227_v32 }
 0x1fb   :  { %v245_v36 = vadd.f32 %v237_v33, %v185_v31 }
 0x1fc   :  { %v229_v38 = vpop.permute.xlu0 %228 }
 0x1fd   :  { %v231_v40 = vpop.permute.xlu1 %230  ;;  %3884 = vmatmul.mubr.msk.f32.vlgmr.msra.gmra.mrb[0].mxu1 %vm49_vm0, %v245_v36  ;;  %v4228_v41 = vpack.i.bf16 %v245_v36, %v244_v29 }
 0x1fe   :  { %v238_v42 = vsel %vm49_vm0, %v229_v38, %v231_v40 }
 0x1ff   :  { %v246_v43 = vadd.f32 %v238_v42, %v186_v39  ;;  %4229 = vrot.lane.b32.xlu0 %v4228_v41, %s4572_s9 }
 0x200   :  { %v233_v44 = vpop.permute.xlu0 %232 }
 0x201   :  { %v235_v46 = vpop.permute.xlu1 %234  ;;  %3886 = vmatprep.mubr.msk.f32.mxu1 %vm49_vm0, %v246_v43 }
 0x202   :  { %v239_v47 = vsel %vm49_vm0, %v233_v44, %v235_v46 }
 0x203   :  { %v247_v48 = vadd.f32 %v239_v47, %v187_v45  ;;  %4239 = vrot.lane.b32.xlu0 %v4228_v41, %s4575_s20 }
 0x205   :  { %3887 = vmatmul.mubr.msk.f32.gmra.mrb[2].mxu1 %vm49_vm0, %v247_v48  ;;  %v4233_v49 = vpack.i.bf16 %v247_v48, %v246_v43 }
 0x206   :  { %3897 = vmatprep.mubr.msk.f32.mxu1 %vm365_vm2, %v244_v29 }
 0x207   :  { %789 = vrot.lane.b32.xlu0 %v244_v29, %s4576_s21  ;;  %4234 = vrot.lane.b32.xlu1 %v4233_v49, %s4572_s9 }
 0x20b   :  { %793 = vrot.lane.b32.xlu0 %v246_v43, %s4576_s21  ;;  %4244 = vrot.lane.b32.xlu1 %v4233_v49, %s4575_s20 }
 0x20f   :  { %791 = vrot.lane.b32.xlu1 %v245_v36, %s4576_s21  ;;  %471 = vrot.lane.b32.xlu0 %v4611_v0, %s4572_s9 }
 0x213   :  { %795 = vrot.lane.b32.xlu1 %v247_v48, %s4576_s21  ;;  %475 = vrot.lane.b32.xlu0 %v4616_v1, %s4572_s9 }
 0x217   :  { %473 = vrot.lane.b32.xlu1 %v4621_v2, %s4572_s9 }
 0x21b   :  { %477 = vrot.lane.b32.xlu1 %v4632_v6, %s4572_s9 }
 0x271   :  { %v4230_v50 = vpop.permute.xlu0 %4229 }
 0x272   :  { %v4232_v51 = vunpack.i.h.bf16 %v4230_v50  ;;  %v4231_v53 = vunpack.i.l.bf16 %v4230_v50 }
 0x274   :  { %v4119_v0 = vpack.c.bf16 %v4232_v51, %v4231_v53 }
 0x275   :  { %v4240_v1 = vpop.permute.xlu0 %4239 }
 0x276   :  { %4121 = vmatprep.subr.msk.bf16.mxu1 %vm4778_vm3, %v4119_v0  ;;  %v4242_v55 = vunpack.i.h.bf16 %v4240_v1  ;;  %v4241_v6 = vunpack.i.l.bf16 %v4240_v1 }
 0x277   :  { %4124 = vmatpush3.bf16.xpose.msk.msra.mxu1 %vm4778_vm3, %v4119_v0 }
 0x278   :  { %v4139_v61 = vpack.c.bf16 %v4242_v55, %v4241_v6 }
 0x279   :  { %v4235_v2 = vpop.permute.xlu1 %4234  ;;  %v790_v9 = vpop.permute.xlu0 %789 }
 0x27a   :  { %v4237_v58 = vunpack.i.h.bf16 %v4235_v2  ;;  %v4236_v59 = vunpack.i.l.bf16 %v4235_v2 }
 0x27c   :  { %v4125_v60 = vpack.c.bf16 %v4237_v58, %v4236_v59 }
 0x27d   :  { %v4245_v62 = vpop.permute.xlu1 %4244  ;;  %v794_v10 = vpop.permute.xlu0 %793 }
 0x27e   :  { %4127 = vmatprep.subr.msk.bf16.mxu1 %vm4778_vm3, %v4125_v60  ;;  %v4247_v63 = vunpack.i.h.bf16 %v4245_v62  ;;  %v4246_v4 = vunpack.i.l.bf16 %v4245_v62 }
 0x27f   :  { %4130 = vmatpush3.bf16.xpose.msk.msra.mxu1 %vm4778_vm3, %v4125_v60 }
 0x280   :  { %4141 = vmatprep.subr.msk.bf16.mxu1 %vm4778_vm3, %v4139_v61  ;;  %v4145_v8 = vpack.c.bf16 %v4247_v63, %v4246_v4 }
 0x281   :  { %v792_v52 = vpop.permute.xlu1 %791  ;;  %v4837_v47 = vpop.permute.xlu0 %471 }
 0x285   :  { %v796_v11 = vpop.permute.xlu1 %795  ;;  %v4849_v55 = vpop.permute.xlu0 %475 }
 0x286   :  { %3898 = vmatmul.mubr.msk.f32.vlgmr.msra.gmra.mrb[4].mxu1 %vm365_vm2, %v245_v36 }
 0x287   :  { %3900 = vmatprep.mubr.msk.f32.mxu1 %vm365_vm2, %v246_v43  ;;  %4144 = vmatpush3.bf16.xpose.msk.msra.mxu1 %vm4778_vm3, %v4139_v61 }
 0x288   :  { %4147 = vmatprep.subr.msk.bf16.mxu1 %vm4778_vm3, %v4145_v8 }
 0x28a   :  { %3901 = vmatmul.mubr.msk.f32.gmra.mrb[6].mxu1 %vm365_vm2, %v247_v48  ;;  %v4839_v48 = vpop.permute.xlu1 %473 }
 0x28b   :  { %3933 = vmatprep.mubr.msk.f32.mxu1 %vm365_vm2, %v790_v9 }
 0x28e   :  { %v4856_v60 = vpop.permute.xlu1 %477 }
 0x28f   :  { %4150 = vmatpush3.bf16.xpose.msk.msra.mxu1 %vm4778_vm3, %v4145_v8 }
 0x296   :  { %3934 = vmatmul.mubr.msk.f32.vlgmr.msra.gmra.mrb[8].mxu1 %vm365_vm2, %v792_v52 }
 0x297   :  { %3936 = vmatprep.mubr.msk.f32.mxu1 %vm365_vm2, %v794_v10 }
 0x29a   :  { %3937 = vmatmul.mubr.msk.f32.gmra.mrb[10].mxu1 %vm365_vm2, %v796_v11 }
 0x2d0   :  { %v3885_v14 = vpop.f32.mrb[0].mxu1 }
 0x2d1   :  { %v4808_v16 = vmul.f32 0.25, %v3885_v14  ;;  %v334_v19 = vpop.f32.mrb[1].mxu1 }
 0x2d2   :  { %v4810_v20 = vmul.f32 0.25, %v334_v19 }
 0x2d3   :  { %v930_v25 = vsel %vm926_vm4, %v4808_v16, -inf  ;;  %v503_v36 = vsel %vm499_vm5, %v4808_v16, -inf }
 0x2d4   :  { %931 = vmax.xlane.f32.xlu0 %v930_v25  ;;  %v927_v26 = vsel %vm926_vm4, %v4810_v20, -inf  ;;  %v500_v33 = vsel %vm499_vm5, %v4810_v20, -inf }
 0x2d5   :  { %928 = vmax.xlane.f32.xlu1 %v927_v26 }
 0x2d8   :  { %v3888_v27 = vpop.f32.mrb[2].mxu1 }
 0x2d9   :  { %v344_v28 = vpop.f32.mrb[3].mxu1  ;;  %v4818_v30 = vmul.f32 0.25, %v3888_v27 }
 0x2da   :  { %v4816_v29 = vmul.f32 0.25, %v344_v28 }
 0x2db   :  { %v936_v32 = vsel %vm926_vm4, %v4818_v30, -inf  ;;  %v509_v39 = vsel %vm499_vm5, %v4818_v30, -inf }
 0x2dc   :  { %v933_v31 = vsel %vm926_vm4, %v4816_v29, -inf  ;;  %v506_v38 = vsel %vm499_vm5, %v4816_v29, -inf }
 0x2dd   :  { %934 = vmax.xlane.f32.xlu1 %v933_v31 }
 0x2e1   :  { %937 = vmax.xlane.f32.xlu1 %v936_v32 }
 0x2e5   :  { %501 = vmax.xlane.f32.xlu1 %v500_v33 }
 0x2e9   :  { %504 = vmax.xlane.f32.xlu1 %v503_v36 }
 0x2ed   :  { %507 = vmax.xlane.f32.xlu1 %v506_v38 }
 0x2f1   :  { %510 = vmax.xlane.f32.xlu1 %v509_v39 }
 0x302   :  { %4254 = vrot.lane.b32.xlu1 %v4730_v17, %s4573_s12 }
 0x306   :  { %1015 = vrot.lane.b32.xlu1 %v572_v7, %s4576_s21 }
 0x30a   :  { %4259 = vrot.lane.b32.xlu1 %v4718_v3, %s4577_s22 }
 0x359   :  { %v3899_v40 = vpop.f32.mrb[4].mxu1 }
 0x35a   :  { %v448_v41 = vpop.f32.mrb[5].mxu1  ;;  %v468_v4 = vmul.f32 0.25, %v3899_v40 }
 0x35b   :  { %v467_v61 = vmul.f32 0.25, %v448_v41 }
 0x35c   :  { %v4871_v10 = vadd.f32 %v4839_v48, %v468_v4 }
 0x35d   :  { %v3902_v42 = vpop.f32.mrb[6].mxu1  ;;  %v4866_v8 = vadd.f32 %v4837_v47, %v467_v61 }
 0x35e   :  { %v458_v43 = vpop.f32.mrb[7].mxu1  ;;  %v470_v11 = vmul.f32 0.25, %v3902_v42  ;;  %v490_v14 = vsel %vm49_vm0, %v4871_v10, -inf }
 0x35f   :  { %v469_v9 = vmul.f32 0.25, %v458_v43  ;;  %v487_v52 = vsel %vm49_vm0, %v4866_v8, -inf }
 0x360   :  { %v4881_v26 = vadd.f32 %v4856_v60, %v470_v11 }
 0x361   :  { %v4876_v19 = vadd.f32 %v4849_v55, %v469_v9  ;;  %v932_v31 = vpop.xlane.xlu0 %931 }
 0x362   :  { %v496_v27 = vsel %vm49_vm0, %v4881_v26, -inf  ;;  %v929_v28 = vpop.xlane.xlu1 %928 }
 0x363   :  { %v493_v25 = vsel %vm49_vm0, %v4876_v19, -inf }
 0x369   :  { %v3935_v44 = vpop.f32.mrb[8].mxu1 }
 0x36a   :  { %v907_v45 = vmul.f32 0.25, %v3935_v44  ;;  %v887_v46 = vpop.f32.mrb[9].mxu1  ;;  %v935_v32 = vpop.xlane.xlu1 %934 }
 0x36b   :  { %v906_v49 = vmul.f32 0.25, %v887_v46 }
 0x36c   :  { %v4842_v50 = vadd.f32 %v907_v45, %v4839_v48 }
 0x36d   :  { %v3938_v51 = vpop.f32.mrb[10].mxu1  ;;  %v4847_v1 = vadd.f32 %v906_v49, %v4837_v47 }
 0x36e   :  { %v897_v53 = vpop.f32.mrb[11].mxu1  ;;  %v917_v0 = vsel %vm49_vm0, %v4842_v50, -inf  ;;  %v909_v6 = vmul.f32 0.25, %v3938_v51  ;;  %v938_v38 = vpop.xlane.xlu1 %937 }
 0x36f   :  { %v908_v2 = vmul.f32 0.25, %v897_v53  ;;  %918 = vmax.xlane.f32.xlu0 %v917_v0  ;;  %v914_v58 = vsel %vm49_vm0, %v4847_v1, -inf }
 0x370   :  { %v4861_v63 = vadd.f32 %v909_v6, %v4856_v60 }
 0x371   :  { %v4854_v59 = vadd.f32 %v908_v2, %v4849_v55 }
 0x372   :  { %v923_v7 = vsel %vm49_vm0, %v4861_v63, -inf  ;;  %v502_v44 = vpop.xlane.xlu1 %501 }
 0x373   :  { %915 = vmax.xlane.f32.xlu0 %v914_v58  ;;  %v920_v62 = vsel %vm49_vm0, %v4854_v59, -inf }
 0x376   :  { %v505_v2 = vpop.xlane.xlu1 %504 }
 0x377   :  { %921 = vmax.xlane.f32.xlu0 %v920_v62 }
 0x37a   :  { %v508_v9 = vpop.xlane.xlu1 %507 }
 0x37b   :  { %924 = vmax.xlane.f32.xlu0 %v923_v7 }
 0x37f   :  { %488 = vmax.xlane.f32.xlu0 %v487_v52 }
 0x383   :  { %491 = vmax.xlane.f32.xlu0 %v490_v14 }
 0x387   :  { %494 = vmax.xlane.f32.xlu0 %v493_v25 }
 0x38b   :  { %497 = vmax.xlane.f32.xlu0 %v496_v27 }
 0x3a1   :  { %4249 = vrot.lane.b32.xlu0 %v4718_v3, %s4573_s12 }
 0x3fc   :  { %v919_v33 = vpop.xlane.xlu0 %918 }
 0x3fd   :  { %v4887_v36 = vmax.f32 %v919_v33, %v932_v31 }
 0x3ff   :  { %v956_v39 = vsub.f32 %v4808_v16, %v4887_v36 }
 0x400   :  { %v916_v40 = vpop.xlane.xlu0 %915 }
 0x401   :  { %v961_v41 = vmul.f32 1.442695, %v956_v39  ;;  %v4891_v42 = vmax.f32 %v916_v40, %v929_v28 }
 0x403   :  { %v955_v43 = vsub.f32 %v4810_v20, %v4891_v42  ;;  %4360 = vpow2.f32 %v961_v41 }
 0x404   :  { %v922_v3 = vpop.xlane.xlu0 %921 }
 0x405   :  { %v959_v45 = vmul.f32 1.442695, %v955_v43  ;;  %v4895_v46 = vmax.f32 %v922_v3, %v935_v32 }
 0x407   :  { %v957_v49 = vsub.f32 %v4816_v29, %v4895_v46  ;;  %4362 = vpow2.f32 %v959_v45 }
 0x408   :  { %v925_v51 = vpop.xlane.xlu0 %924 }
 0x409   :  { %v963_v53 = vmul.f32 1.442695, %v957_v49  ;;  %v4899_v0 = vmax.f32 %v925_v51, %v938_v38  ;;  %v511_v38 = vpop.xlane.xlu1 %510 }
 0x40b   :  { %v958_v6 = vsub.f32 %v4818_v30, %v4899_v0  ;;  %4364 = vpow2.f32 %v963_v53 }
 0x40c   :  { %v489_v58 = vpop.xlane.xlu0 %488 }
 0x40d   :  { %v965_v61 = vmul.f32 1.442695, %v958_v6  ;;  %v512_v62 = vmax.f32 %v489_v58, %v502_v44  ;;  %v4361_v4 = vpop.eup %4360  ;;  %v4255_v3 = vpop.permute.xlu1 %4254 }
 0x40e   :  { %985 = vrot.lane.b32.xlu1 %v4361_v4, %s4578_s23  ;;  %v4257_v6 = vunpack.i.h.bf16 %v4255_v3  ;;  %v4256_v58 = vunpack.i.l.bf16 %v4255_v3 }
 0x40f   :  { %v528_v7 = vsub.f32 %v4810_v20, %v512_v62  ;;  %4366 = vpow2.f32 %v965_v61  ;;  %v516_v39 = vsub.f32 %v4866_v8, %v512_v62 }
 0x410   :  { %v492_v52 = vpop.xlane.xlu0 %491 }
 0x411   :  { %v532_v11 = vmul.f32 1.442695, %v528_v7  ;;  %v513_v14 = vmax.f32 %v492_v52, %v505_v2  ;;  %v4363_v25 = vpop.eup %4362  ;;  %v520_v45 = vmul.f32 1.442695, %v516_v39  ;;  %v4135_v7 = vpack.c.bf16 %v4257_v6, %v4256_v58 }
 0x412   :  { %983 = vrot.lane.b32.xlu0 %v4363_v25, %s4578_s23 }
 0x413   :  { %v529_v27 = vsub.f32 %v4808_v16, %v513_v14  ;;  %4368 = vpow2.f32 %v532_v11 }
 0x414   :  { %v495_v28 = vpop.xlane.xlu0 %494 }
 0x415   :  { %v534_v31 = vmul.f32 1.442695, %v529_v27  ;;  %v514_v32 = vmax.f32 %v495_v28, %v508_v9  ;;  %v4365_v33 = vpop.eup %4364  ;;  %v944_v9 = vsub.f32 %v4842_v50, %v4887_v36  ;;  %v946_v27 = vsub.f32 %v4861_v63, %v4899_v0 }
 0x416   :  { %987 = vrot.lane.b32.xlu1 %v4365_v33, %s4578_s23  ;;  %4264 = vrot.lane.b32.xlu0 %v4730_v17, %s4577_s22  ;;  %v945_v36 = vsub.f32 %v4854_v59, %v4895_v46 }
 0x417   :  { %v530_v20 = vsub.f32 %v4816_v29, %v514_v32  ;;  %4370 = vpow2.f32 %v534_v31  ;;  %v517_v29 = vsub.f32 %v4871_v10, %v513_v14  ;;  %v518_v51 = vsub.f32 %v4876_v19, %v514_v32  ;;  %v1016_v19 = vpop.permute.xlu1 %1015 }
 0x418   :  { %v498_v40 = vpop.xlane.xlu0 %497  ;;  %v949_v25 = vmul.f32 1.442695, %v944_v9  ;;  %v953_v32 = vmul.f32 1.442695, %v946_v27  ;;  %v951_v63 = vmul.f32 1.442695, %v945_v36 }
 0x419   :  { %v536_v16 = vmul.f32 1.442695, %v530_v20  ;;  %v515_v41 = vmax.f32 %v498_v40, %v511_v38  ;;  %v4367_v43 = vpop.eup %4366  ;;  %v522_v61 = vmul.f32 1.442695, %v517_v29  ;;  %v524_v10 = vmul.f32 1.442695, %v518_v51 }
 0x41a   :  { %989 = vrot.lane.b32.xlu0 %v4367_v43, %s4578_s23 }
 0x41b   :  { %v531_v44 = vsub.f32 %v4818_v30, %v515_v41  ;;  %4372 = vpow2.f32 %v536_v16  ;;  %v519_v62 = vsub.f32 %v4881_v26, %v515_v41  ;;  %v943_v26 = vsub.f32 %v4847_v1, %v4891_v42  ;;  %v4260_v14 = vpop.permute.xlu1 %4259 }
 0x41c   :  { %v4250_v49 = vpop.permute.xlu0 %4249  ;;  %v4262_v28 = vunpack.i.h.bf16 %v4260_v14  ;;  %v4261_v31 = vunpack.i.l.bf16 %v4260_v14 }
 0x41d   :  { %v538_v17 = vmul.f32 1.442695, %v531_v44  ;;  %v4252_v53 = vunpack.i.h.bf16 %v4250_v49  ;;  %v4251_v8 = vunpack.i.l.bf16 %v4250_v49  ;;  %v4916_v2 = vpop.eup %4368  ;;  %v526_v52 = vmul.f32 1.442695, %v519_v62 }
 0x41e   :  { %3905 = vmatprep.mubr.msk.f32.mxu0 %vm499_vm5, %v4916_v2  ;;  %v947_v50 = vmul.f32 1.442695, %v943_v26  ;;  %v4151_v59 = vpack.c.bf16 %v4262_v28, %v4261_v31 }
 0x41f   :  { %v4131_v30 = vpack.c.bf16 %v4252_v53, %v4251_v8  ;;  %4374 = vpow2.f32 %v538_v17 }
 0x420   :  { %4376 = vpow2.f32 %v520_v45 }
 0x421   :  { %4132 = vmatprep.subr.bf16.mxu0 %v4131_v30  ;;  %v4921_v4 = vpop.eup %4370  ;;  %4378 = vpow2.f32 %v522_v61 }
 0x422   :  { %3906 = vmatmul.mubr.msk.f32.vlgmr.msra.gmra.mrb[8].mxu0 %vm499_vm5, %v4921_v4  ;;  %4380 = vpow2.f32 %v524_v10  ;;  %v552_v10 = vsel %vm499_vm5, %v4916_v2, 0.0  ;;  %v555_v9 = vsel %vm499_vm5, %v4921_v4, 0.0 }
 0x423   :  { %4134 = vmatpush3.bf16.msra.mxu0 %v4131_v30  ;;  %4382 = vpow2.f32 %v526_v52 }
 0x424   :  { %4136 = vmatprep.subr.bf16.mxu0 %v4135_v7  ;;  %4384 = vpow2.f32 %v949_v25 }
 0x425   :  { %v4929_v11 = vpop.eup %4372  ;;  %4386 = vpow2.f32 %v947_v50 }
 0x426   :  { %3908 = vmatprep.mubr.msk.f32.mxu0 %vm499_vm5, %v4929_v11  ;;  %4388 = vpow2.f32 %v953_v32  ;;  %v558_v2 = vsel %vm499_vm5, %v4929_v11, 0.0 }
 0x427   :  { %4138 = vmatpush3.bf16.msra.mxu0 %v4135_v7  ;;  %4390 = vpow2.f32 %v951_v63 }
 0x428   :  { %3939 = vmatprep.subr.msk.mxu0 %vm250_vm1, %v1016_v19 }
 0x429   :  { %v4938_v1 = vpop.eup %4374 }
 0x42a   :  { %v4377_v42 = vpop.eup %4376  ;;  %3909 = vmatmul.mubr.msk.f32.gmra.mrb[10].mxu0 %vm499_vm5, %v4938_v1  ;;  %v561_v26 = vsel %vm499_vm5, %v4938_v1, 0.0 }
 0x42b   :  { %3919 = vmatprep.mubr.msk.f32.mxu0 %vm49_vm0, %v4377_v42  ;;  %v4379_v0 = vpop.eup %4378  ;;  %v540_v61 = vsel %vm49_vm0, %v4377_v42, 0.0 }
 0x42c   :  { %v4381_v33 = vpop.eup %4380 }
 0x42d   :  { %v4383_v46 = vpop.eup %4382  ;;  %v546_v7 = vsel %vm49_vm0, %v4381_v33, 0.0 }
 0x42e   :  { %3920 = vmatmul.mubr.msk.f32.vlgmr.msra.gmra.mrb[8].mxu0 %vm49_vm0, %v4379_v0  ;;  %v4385_v38 = vpop.eup %4384  ;;  %v549_v52 = vsel %vm49_vm0, %v4383_v46, 0.0 }
 0x42f   :  { %3940 = vmatpush3.msk.msra.mxu0 %vm250_vm1, %v1016_v19  ;;  %3922 = vmatprep.mubr.msk.f32.mxu0 %vm49_vm0, %v4381_v33  ;;  %v4387_v20 = vpop.eup %4386  ;;  %v970_v39 = vsel %vm49_vm0, %v4385_v38, 0.0  ;;  %v543_v19 = vsel %vm49_vm0, %v4379_v0, 0.0 }
 0x430   :  { %4152 = vmatprep.subr.bf16.mxu0 %v4151_v59  ;;  %v4389_v40 = vpop.eup %4388  ;;  %v967_v16 = vsel %vm49_vm0, %v4387_v20, 0.0 }
 0x431   :  { %v4391_v41 = vpop.eup %4390  ;;  %v976_v43 = vsel %vm49_vm0, %v4389_v40, 0.0 }
 0x432   :  { %3923 = vmatmul.mubr.msk.f32.gmra.mrb[10].mxu0 %vm49_vm0, %v4383_v46  ;;  %v973_v44 = vsel %vm49_vm0, %v4391_v41, 0.0 }
 0x439   :  { %971 = vadd.xlane.f32.xlu0 %v970_v39 }
 0x43a   :  { %968 = vadd.xlane.f32.xlu1 %v967_v16 }
 0x43d   :  { %977 = vadd.xlane.f32.xlu0 %v976_v43 }
 0x43e   :  { %974 = vadd.xlane.f32.xlu1 %v973_v44 }
 0x480   :  { %v986_v3 = vpop.permute.xlu1 %985 }
 0x481   :  { %v998_v45 = vsel %vm499_vm5, %v986_v3, 0.0 }
 0x482   :  { %999 = vadd.xlane.f32.xlu0 %v998_v45 }
 0x484   :  { %v984_v29 = vpop.permute.xlu0 %983 }
 0x485   :  { %3941 = vmatprep.mubr.msk.f32.mxu0 %vm499_vm5, %v984_v29  ;;  %v995_v49 = vsel %vm499_vm5, %v984_v29, 0.0 }
 0x486   :  { %996 = vadd.xlane.f32.xlu0 %v995_v49  ;;  %3942 = vmatmul.mubr.msk.f32.vlgmr.msra.gmra.mrb[12].mxu0 %vm499_vm5, %v986_v3 }
 0x487   :  { %4154 = vmatpush3.bf16.msra.mxu0 %v4151_v59 }
 0x488   :  { %v988_v51 = vpop.permute.xlu1 %987  ;;  %v4265_v17 = vpop.permute.xlu0 %4264 }
 0x489   :  { %v4267_v53 = vunpack.i.h.bf16 %v4265_v17  ;;  %v4266_v8 = vunpack.i.l.bf16 %v4265_v17  ;;  %3944 = vmatprep.mubr.msk.f32.mxu0 %vm499_vm5, %v988_v51  ;;  %v1001_v6 = vsel %vm499_vm5, %v988_v51, 0.0 }
 0x48a   :  { %1002 = vadd.xlane.f32.xlu1 %v1001_v6 }
 0x48b   :  { %v4155_v58 = vpack.c.bf16 %v4267_v53, %v4266_v8 }
 0x48c   :  { %v990_v30 = vpop.permute.xlu0 %989 }
 0x48d   :  { %3945 = vmatmul.mubr.msk.f32.gmra.mrb[14].mxu0 %vm499_vm5, %v990_v30  ;;  %4156 = vmatprep.subr.bf16.mxu0 %v4155_v58  ;;  %v1004_v62 = vsel %vm499_vm5, %v990_v30, 0.0 }
 0x48e   :  { %541 = vadd.xlane.f32.xlu1 %v540_v61  ;;  %1005 = vadd.xlane.f32.xlu0 %v1004_v62 }
 0x48f   :  { %4158 = vmatpush3.bf16.msra.mxu0 %v4155_v58  ;;  %3955 = vmatprep.mubr.msk.f32.mxu0 %vm49_vm0, %v4387_v20 }
 0x492   :  { %3956 = vmatmul.mubr.msk.f32.vlgmr.msra.gmra.mrb[12].mxu0 %vm49_vm0, %v4385_v38  ;;  %553 = vadd.xlane.f32.xlu1 %v552_v10 }
 0x493   :  { %544 = vadd.xlane.f32.xlu0 %v543_v19  ;;  %3958 = vmatprep.mubr.msk.f32.mxu0 %vm49_vm0, %v4391_v41 }
 0x496   :  { %3959 = vmatmul.mubr.msk.f32.gmra.mrb[14].mxu0 %vm49_vm0, %v4389_v40  ;;  %547 = vadd.xlane.f32.xlu1 %v546_v7 }
 0x497   :  { %556 = vadd.xlane.f32.xlu0 %v555_v9 }
 0x49a   :  { %559 = vadd.xlane.f32.xlu1 %v558_v2 }
 0x49b   :  { %550 = vadd.xlane.f32.xlu0 %v549_v52 }
 0x49f   :  { %562 = vadd.xlane.f32.xlu0 %v561_v26 }
 0x4ab   :  { %1247 = vrot.lane.b32.xlu1 %v4643_v12, %s4572_s9 }
 0x4af   :  { %1249 = vrot.lane.b32.xlu1 %v4653_v15, %s4572_s9 }
 0x4c6   :  { %v972_v15 = vpop.xlane.xlu0 %971 }
 0x4c7   :  { %v969_v27 = vpop.xlane.xlu1 %968 }
 0x4ca   :  { %v978_v0 = vpop.xlane.xlu0 %977 }
 0x4cb   :  { %v975_v50 = vpop.xlane.xlu1 %974 }
 0x501   :  { %v4979_v14 = vpop.f32.mrb[8].mxu0 }
 0x502   :  { %v4981_v4 = vpop.f32.mrb[9].mxu0 }
 0x505   :  { %v4983_v25 = vpop.f32.mrb[10].mxu0 }
 0x506   :  { %v4985_v11 = vpop.f32.mrb[11].mxu0 }
 0x50f   :  { %v1000_v33 = vpop.xlane.xlu0 %999 }
 0x510   :  { %v1008_v46 = vadd.f32 %v1000_v33, %v972_v15 }
 0x512   :  { %4392 = vrcp.f32 %v1008_v46 }
 0x513   :  { %v997_v59 = vpop.xlane.xlu0 %996 }
 0x514   :  { %v1007_v38 = vadd.f32 %v997_v59, %v969_v27 }
 0x516   :  { %4394 = vrcp.f32 %v1007_v38 }
 0x517   :  { %v1003_v36 = vpop.xlane.xlu1 %1002 }
 0x518   :  { %v1009_v40 = vadd.f32 %v1003_v36, %v975_v50 }
 0x51b   :  { %v542_v42 = vpop.xlane.xlu1 %541  ;;  %v1006_v20 = vpop.xlane.xlu0 %1005 }
 0x51c   :  { %v1010_v39 = vadd.f32 %v1006_v20, %v978_v0  ;;  %v4393_v16 = vpop.eup %4392  ;;  %v1310_v20 = vsub.s32 3, %v4683_v34 }
 0x51e   :  { %4396 = vrcp.f32 %v1010_v39  ;;  %v1311_v39 = vrot.slane %v4689_v37, %v1310_v20 }
 0x51f   :  { %v554_v1 = vpop.xlane.xlu1 %553  ;;  %4398 = vrcp.f32 %v1009_v40 }
 0x520   :  { %v4395_v43 = vpop.eup %4394  ;;  %v545_v30 = vpop.xlane.xlu0 %544  ;;  %v564_v10 = vadd.f32 %v554_v1, %v542_v42 }
 0x522   :  { %4400 = vrcp.f32 %v564_v10 }
 0x523   :  { %v548_v28 = vpop.xlane.xlu1 %547 }
 0x524   :  { %v557_v61 = vpop.xlane.xlu0 %556 }
 0x525   :  { %v565_v19 = vadd.f32 %v557_v61, %v545_v30 }
 0x527   :  { %v560_v31 = vpop.xlane.xlu1 %559  ;;  %4402 = vrcp.f32 %v565_v19 }
 0x528   :  { %v4397_v29 = vpop.eup %4396  ;;  %v551_v62 = vpop.xlane.xlu0 %550  ;;  %v566_v9 = vadd.f32 %v560_v31, %v548_v28 }
 0x529   :  { %v4399_v17 = vpop.eup %4398 }
 0x52a   :  { %4404 = vrcp.f32 %v566_v9  ;;  %v4564_v9 = vld [vmem:[%s5711_s2 + $0x1c] ss:$12 sps:$4 sm:$0xff]  }
 0x52b   :  { %v1248_v32 = vpop.permute.xlu1 %1247 }
 0x52c   :  { %3961 = vmatprep.subr.bf16.mxu1 %v1248_v32  ;;  %v563_v7 = vpop.xlane.xlu0 %562  ;;  %v4401_v52 = vpop.eup %4400 }
 0x52d   :  { %3962 = vmatpush3.bf16.msra.mxu1 %v1248_v32  ;;  %v567_v2 = vadd.f32 %v563_v7, %v551_v62  ;;  %v785_v36 = vmul.f32 %v4401_v52, %v4981_v4  ;;  %v4334_v52 = vld [vmem:[%s5711_s2 + $0x8] ss:$12 sps:$4 sm:$0xff]  }
 0x52f   :  { %v1250_v63 = vpop.permute.xlu1 %1249  ;;  %4406 = vrcp.f32 %v567_v2  ;;  %v4335_v2 = vld [vmem:[%s5711_s2 + $0x20] ss:$12 sps:$4 sm:$0xff]  }
 0x530   :  { %3963 = vmatprep.subr.bf16.mxu1 %v1250_v63 }
 0x531   :  { %3964 = vmatpush3.bf16.msra.mxu1 %v1250_v63  ;;  %v4403_v26 = vpop.eup %4402 }
 0x534   :  { %v4405_v50 = vpop.eup %4404 }
 0x535   :  { %v787_v46 = vmul.f32 %v4405_v50, %v4985_v11 }
 0x539   :  { %v4407_v15 = vpop.eup %4406 }
 0x53a   :  { %v788_v0 = vmul.f32 %v4407_v15, %v4983_v25 }
 0x565   :  { %v3957_v41 = vpop.f32.mrb[12].mxu0 }
 0x566   :  { %v1222_v44 = vmul.f32 %v4393_v16, %v3957_v41  ;;  %v1202_v3 = vpop.f32.mrb[13].mxu0 }
 0x567   :  { %v1221_v45 = vmul.f32 %v4395_v43, %v1202_v3  ;;  %v4560_v43 = vld [vmem:[%s5710_s0 + $0x20] sm:$0xff] }
 0x569   :  { %v4268_v49 = vpack.i.bf16 %v1222_v44, %v1221_v45  ;;  %v3960_v51 = vpop.f32.mrb[14].mxu0 }
 0x56a   :  { %v1224_v53 = vmul.f32 %v4397_v29, %v3960_v51  ;;  %v1212_v8 = vpop.f32.mrb[15].mxu0  ;;  %v4561_v29 = vld [vmem:[%s5710_s0] sm:$0xff]  ;;  %v4562_v51 = vld [vmem:[%s5710_s0 + $0x30] sm:$0xff] }
 0x56b   :  { %v1223_v6 = vmul.f32 %v4399_v17, %v1212_v8  ;;  %4269 = vrot.lane.b32.xlu0 %v4268_v49, %s4579_s24 }
 0x56d   :  { %v4273_v58 = vpack.i.bf16 %v1224_v53, %v1223_v6  ;;  %v4563_v6 = vld [vmem:[%s5710_s0 + $0x10] sm:$0xff] }
 0x56f   :  { %4274 = vrot.lane.b32.xlu1 %v4273_v58, %s4579_s24 }
 0x573   :  { %1372 = vrot.lane.b32.xlu1 %v4643_v12, %s4573_s12  ;;  %v786_v12 = vmul.f32 %v4403_v26, %v4979_v14 }
 0x5dd   :  { %v4270_v27 = vpop.permute.xlu0 %4269 }
 0x5de   :  { %v4272_v32 = vunpack.i.h.bf16 %v4270_v27  ;;  %v4271_v63 = vunpack.i.l.bf16 %v4270_v27 }
 0x5e0   :  { %v1242_v42 = vsel %vm365_vm2, %v786_v12, %v4272_v32  ;;  %v1241_v1 = vsel %vm365_vm2, %v785_v36, %v4271_v63 }
 0x5e1   :  { %v4275_v28 = vpop.permute.xlu1 %4274  ;;  %v1245_v31 = vpack.c.bf16 %v1242_v42, %v1241_v1 }
 0x5e2   :  { %v4277_v33 = vunpack.i.h.bf16 %v4275_v28  ;;  %v4276_v59 = vunpack.i.l.bf16 %v4275_v28 }
 0x5e3   :  { %3965 = vmatprep.mubr.msk.bf16.mxu1 %vm49_vm0, %v1245_v31 }
 0x5e4   :  { %v1244_v4 = vsel %vm365_vm2, %v788_v0, %v4277_v33  ;;  %v1243_v14 = vsel %vm365_vm2, %v787_v46, %v4276_v59 }
 0x5e5   :  { %v1246_v38 = vpack.c.bf16 %v1244_v4, %v1243_v14  ;;  %v1373_v26 = vpop.permute.xlu1 %1372 }
 0x5e7   :  { %3966 = vmatmul.mubr.msk.bf16.vlgmr.msra.gmra.mrb[12].mxu1 %vm49_vm0, %v1246_v38 }
 0x6ba   :  { %v3967_v25 = vpop.f32.mrb[12].mxu1 }
 0x6bb   :  { %v1314_v40 = vmul.f32 %v3967_v25, %v1311_v39  ;;  %v1293_v16 = vpop.f32.mrb[13].mxu1 }
 0x6bc   :  { %v1312_v41 = vmul.f32 %v1311_v39, %v1293_v16  ;;  %v3968_v11 = vpop.f32.mrb[14].mxu1 }
 0x6bd   :  { %v5008_v44 = vadd.f32 %v4560_v43, %v1314_v40  ;;  %v1315_v3 = vmul.f32 %v3968_v11, %v1311_v39  ;;  %v1296_v45 = vpop.f32.mrb[15].mxu1  ;;  %v5057_v11 = vld [vmem:[%s5712_s1] sm:$0xff] }
 0x6be   :  { %v5013_v49 = vadd.f32 %v4561_v29, %v1312_v41  ;;  %v1313_v37 = vmul.f32 %v1311_v39, %v1296_v45  ;;  %v1354_v39 = vsub.s32 1, %v4683_v34 }
 0x6bf   :  { %v5018_v17 = vadd.f32 %v4562_v51, %v1315_v3  ;;  %v1322_v53 = vmul.f32 %v5008_v44, %v5008_v44 }
 0x6c0   :  { %v1320_v8 = vmul.f32 %v5013_v49, %v5013_v49  ;;  %v5027_v58 = vadd.f32 %v4563_v6, %v1313_v37  ;;  %v1355_v43 = vrot.slane %v5057_v11, %v1354_v39 }
 0x6c1   :  { %v1330_v30 = vsel %vm49_vm0, %v1322_v53, 0.0  ;;  %v1323_v61 = vmul.f32 %v5018_v17, %v5018_v17 }
 0x6c2   :  { %1331 = vadd.xlane.f32.xlu0 %v1330_v30  ;;  %v1324_v62 = vsel %vm49_vm0, %v1320_v8, 0.0  ;;  %v1321_v19 = vmul.f32 %v5027_v58, %v5027_v58 }
 0x6c3   :  { %1325 = vadd.xlane.f32.xlu1 %v1324_v62  ;;  %v1333_v10 = vsel %vm49_vm0, %v1323_v61, 0.0  ;;  %v4336_v61 = vld [vmem:[%s5713_s3] sm:$0xff]   ;;  %v4337_v62 = vld [vmem:[%s5713_s3 + $0x8] sm:$0xff]  }
 0x6c4   :  { %v1327_v7 = vsel %vm49_vm0, %v1321_v19, 0.0  ;;  %3977 = vmatprep.subr.bf16.mxu0 %v4336_v61  ;;  %v4339_v19 = vld [vmem:[%s5713_s3 + $0x18] sm:$0xff]  }
 0x6c5   :  { %3978 = vmatpush3.bf16.msra.mxu0 %v4336_v61 }
 0x6c6   :  { %1334 = vadd.xlane.f32.xlu0 %v1333_v10  ;;  %3979 = vmatprep.subr.bf16.mxu0 %v4337_v62  ;;  %v4338_v10 = vld [vmem:[%s5713_s3 + $0x10] sm:$0xff]  }
 0x6c9   :  { %3980 = vmatpush3.bf16.msra.mxu0 %v4337_v62 }
 0x6ca   :  { %1328 = vadd.xlane.f32.xlu0 %v1327_v7  ;;  %3981 = vmatprep.subr.bf16.mxu0 %v4338_v10 }
 0x6cd   :  { %3982 = vmatpush3.bf16.msra.mxu0 %v4338_v10 }
 0x6ce   :  { %3983 = vmatprep.subr.bf16.mxu0 %v4339_v19 }
 0x6d1   :  { %3984 = vmatpush3.bf16.msra.mxu0 %v4339_v19 }
 0x6d4   :  { %1376 = vrot.lane.b32.xlu1 %v4564_v9, %s4573_s12 }
 0x6d8   :  { %1378 = vrot.lane.b32.xlu1 %v4335_v2, %s4573_s12 }
 0x6e0   :  { %1374 = vrot.lane.b32.xlu0 %v4334_v52, %s4573_s12 }
 0x74f   :  { %v1332_v27 = vpop.xlane.xlu0 %1331 }
 0x750   :  { %v1326_v50 = vpop.xlane.xlu1 %1325  ;;  %v1338_v36 = vmul.f32 0.03125, %v1332_v27 }
 0x751   :  { %v1336_v12 = vmul.f32 0.03125, %v1326_v50 }
 0x752   :  { %v1342_v1 = vadd.f32 1e-05, %v1338_v36 }
 0x753   :  { %v1340_v32 = vadd.f32 1e-05, %v1336_v12  ;;  %v1335_v63 = vpop.xlane.xlu0 %1334 }
 0x754   :  { %v1339_v15 = vmul.f32 0.03125, %v1335_v63  ;;  %v1377_v42 = vpop.permute.xlu1 %1376 }
 0x755   :  { %4408 = vrsqrt.f32 %v1340_v32 }
 0x756   :  { %v1343_v28 = vadd.f32 1e-05, %v1339_v15 }
 0x757   :  { %v1329_v31 = vpop.xlane.xlu0 %1328 }
 0x758   :  { %4410 = vrsqrt.f32 %v1343_v28  ;;  %v1337_v0 = vmul.f32 0.03125, %v1329_v31  ;;  %v1379_v33 = vpop.permute.xlu1 %1378 }
 0x759   :  { %4412 = vrsqrt.f32 %v1342_v1  ;;  %v1382_v14 = vsel %vm1380_vm6, %v1377_v42, %v1379_v33 }
 0x75a   :  { %v1341_v59 = vadd.f32 1e-05, %v1337_v0 }
 0x75b   :  { %v1375_v46 = vpop.permute.xlu0 %1374 }
 0x75c   :  { %4414 = vrsqrt.f32 %v1341_v59  ;;  %v1381_v4 = vsel %vm1380_vm6, %v1373_v26, %v1375_v46 }
 0x75d   :  { %3969 = vmatprep.subr.bf16.mxu1 %v1381_v4 }
 0x75e   :  { %3970 = vmatpush3.bf16.msra.mxu1 %v1381_v4 }
 0x75f   :  { %3971 = vmatprep.subr.bf16.mxu1 %v1382_v14  ;;  %v4409_v38 = vpop.eup %4408 }
 0x760   :  { %v1348_v41 = vmul.f32 %v4409_v38, %v5013_v49 }
 0x762   :  { %v4411_v25 = vpop.eup %4410  ;;  %3972 = vmatpush3.bf16.msra.mxu1 %v1382_v14  ;;  %v1356_v51 = vmul.f32 %v1355_v43, %v1348_v41 }
 0x763   :  { %v4413_v40 = vpop.eup %4412  ;;  %3989 = vmatprep.subr.bf16.mxu1 %v1375_v46  ;;  %v1351_v16 = vmul.f32 %v4411_v25, %v5018_v17 }
 0x764   :  { %v1350_v45 = vmul.f32 %v4413_v40, %v5008_v44 }
 0x765   :  { %v1359_v37 = vmul.f32 %v1355_v43, %v1351_v16 }
 0x766   :  { %v4415_v3 = vpop.eup %4414  ;;  %v1358_v8 = vmul.f32 %v1355_v43, %v1350_v45 }
 0x767   :  { %v1349_v29 = vmul.f32 %v4415_v3, %v5027_v58 }
 0x768   :  { %v1361_v30 = vpack.c.bf16 %v1359_v37, %v1358_v8  ;;  %v1572_v8 = vsub.s32 4, %v4683_v34 }
 0x769   :  { %v1357_v53 = vmul.f32 %v1355_v43, %v1349_v29 }
 0x76b   :  { %v1360_v6 = vpack.c.bf16 %v1357_v53, %v1356_v51 }
 0x76d   :  { %3973 = vmatprep.mubr.msk.bf16.mxu1 %vm49_vm0, %v1360_v6  ;;  %v1573_v6 = vrot.slane %v5057_v11, %v1572_v8 }
 0x76e   :  { %3974 = vmatmul.mubr.msk.bf16.vlgmr.msra.gmra.mrb[16].mxu1 %vm49_vm0, %v1361_v30 }
 0x76f   :  { %3990 = vmatpush3.bf16.msra.mxu1 %v1375_v46 }
 0x770   :  { %3991 = vmatprep.subr.bf16.mxu1 %v1379_v33 }
 0x773   :  { %3992 = vmatpush3.bf16.msra.mxu1 %v1379_v33 }
 0x841   :  { %v3975_v7 = vpop.f32.mrb[16].mxu1 }
 0x842   :  { %v1425_v9 = vpop.f32.mrb[17].mxu1  ;;  %v3643_v50 = vmul.f32 -1.442695, %v3975_v7 }
 0x843   :  { %1472 = vrot.lane.b32.xlu1 %v1425_v9, %s4573_s12  ;;  %v3976_v2 = vpop.f32.mrb[18].mxu1  ;;  %v3641_v26 = vmul.f32 -1.442695, %v1425_v9 }
 0x844   :  { %v1428_v52 = vpop.f32.mrb[19].mxu1  ;;  %v3644_v36 = vmul.f32 -1.442695, %v3976_v2 }
 0x845   :  { %1474 = vrot.lane.b32.xlu0 %v1428_v52, %s4573_s12  ;;  %v3642_v27 = vmul.f32 -1.442695, %v1428_v52  ;;  %4416 = vpow2.f32 %v3641_v26 }
 0x847   :  { %1476 = vrot.lane.b32.xlu1 %v3975_v7, %s4573_s12  ;;  %4418 = vpow2.f32 %v3642_v27 }
 0x848   :  { %4420 = vpow2.f32 %v3643_v50 }
 0x849   :  { %1478 = vrot.lane.b32.xlu0 %v3976_v2, %s4573_s12  ;;  %4422 = vpow2.f32 %v3644_v36 }
 0x84f   :  { %v4417_v12 = vpop.eup %4416 }
 0x850   :  { %v1452_v63 = vadd.f32 1.0, %v4417_v12 }
 0x851   :  { %v4419_v32 = vpop.eup %4418 }
 0x852   :  { %v4421_v15 = vpop.eup %4420  ;;  %v1453_v42 = vadd.f32 1.0, %v4419_v32  ;;  %4424 = vrcp.f32 %v1452_v63 }
 0x853   :  { %v4423_v1 = vpop.eup %4422  ;;  %v1454_v28 = vadd.f32 1.0, %v4421_v15 }
 0x854   :  { %v1455_v31 = vadd.f32 1.0, %v4423_v1  ;;  %4426 = vrcp.f32 %v1453_v42  ;;  %v4567_v42 = vld [vmem:[%s5710_s0 + $0x18] sm:$0xff]  ;;  %v4568_v1 = vld [vmem:[%s5710_s0 + $0x28] sm:$0xff] }
 0x855   :  { %4428 = vrcp.f32 %v1454_v28  ;;  %v4569_v28 = vld [vmem:[%s5710_s0 + $0x38] sm:$0xff] }
 0x856   :  { %4430 = vrcp.f32 %v1455_v31 }
 0x85c   :  { %v4425_v0 = vpop.eup %4424 }
 0x85d   :  { %v1464_v4 = vmul.f32 %v4425_v0, %v1425_v9 }
 0x85e   :  { %v4427_v33 = vpop.eup %4426 }
 0x85f   :  { %v4429_v46 = vpop.eup %4428  ;;  %v1465_v14 = vmul.f32 %v4427_v33, %v1428_v52 }
 0x860   :  { %v4431_v38 = vpop.eup %4430  ;;  %v1466_v43 = vmul.f32 %v4429_v46, %v3975_v7 }
 0x861   :  { %v1467_v3 = vmul.f32 %v4431_v38, %v3976_v2 }
 0x8b5   :  { %v1473_v59 = vpop.permute.xlu1 %1472 }
 0x8b6   :  { %v1484_v40 = vmul.f32 %v1473_v59, %v1464_v4 }
 0x8b7   :  { %v1475_v25 = vpop.permute.xlu0 %1474 }
 0x8b8   :  { %v1485_v16 = vmul.f32 %v1475_v25, %v1465_v14 }
 0x8b9   :  { %v1477_v41 = vpop.permute.xlu1 %1476 }
 0x8ba   :  { %v1488_v45 = vpack.c.bf16 %v1485_v16, %v1484_v40  ;;  %v1486_v37 = vmul.f32 %v1477_v41, %v1466_v43  ;;  %v1616_v43 = vsub.s32 2, %v4683_v34 }
 0x8bb   :  { %v1479_v29 = vpop.permute.xlu0 %1478 }
 0x8bc   :  { %v1487_v51 = vmul.f32 %v1479_v29, %v1467_v3  ;;  %3985 = vmatprep.mubr.msk.bf16.mxu0 %vm1380_vm6, %v1488_v45 }
 0x8be   :  { %v1489_v53 = vpack.c.bf16 %v1487_v51, %v1486_v37  ;;  %v1617_v37 = vrot.slane %v5057_v11, %v1616_v43 }
 0x8c0   :  { %3986 = vmatmul.mubr.msk.bf16.vlgmr.msra.gmra.mrb[16].mxu0 %vm1380_vm6, %v1489_v53 }
 0x8c1   :  { %1985 = vmatprep.mubr.bf16.mxu0 %v4571_v13 }
 0x993   :  { %v3987_v30 = vpop.f32.mrb[16].mxu0 }
 0x994   :  { %v1576_v61 = vmul.f32 %v3987_v30, %v1573_v6  ;;  %v1555_v62 = vpop.f32.mrb[17].mxu0 }
 0x995   :  { %v1574_v10 = vmul.f32 %v1573_v6, %v1555_v62  ;;  %v3988_v19 = vpop.f32.mrb[18].mxu0 }
 0x996   :  { %v5090_v7 = vadd.f32 %v1576_v61, %v5008_v44  ;;  %v1577_v9 = vmul.f32 %v3988_v19, %v1573_v6  ;;  %v1558_v2 = vpop.f32.mrb[19].mxu0 }
 0x997   :  { %v5093_v52 = vadd.f32 %v1574_v10, %v5013_v49  ;;  %v1575_v26 = vmul.f32 %v1573_v6, %v1558_v2 }
 0x998   :  { %v1584_v27 = vmul.f32 %v5090_v7, %v5090_v7  ;;  %v5103_v12 = vadd.f32 %v1577_v9, %v5018_v17  ;;  %v4566_v17 = vld [vmem:[%s5710_s0 + $0x8] sm:$0xff] }
 0x999   :  { %v5098_v50 = vadd.f32 %v1575_v26, %v5027_v58  ;;  %v1582_v36 = vmul.f32 %v5093_v52, %v5093_v52 }
 0x99a   :  { %v1592_v44 = vsel %vm49_vm0, %v1584_v27, 0.0  ;;  %v1585_v58 = vmul.f32 %v5103_v12, %v5103_v12 }
 0x99b   :  { %1593 = vadd.xlane.f32.xlu0 %v1592_v44  ;;  %v1586_v32 = vsel %vm49_vm0, %v1582_v36, 0.0  ;;  %v1583_v49 = vmul.f32 %v5098_v50, %v5098_v50 }
 0x99c   :  { %1587 = vadd.xlane.f32.xlu1 %v1586_v32  ;;  %v1595_v15 = vsel %vm49_vm0, %v1585_v58, 0.0 }
 0x99d   :  { %v1589_v63 = vsel %vm49_vm0, %v1583_v49, 0.0 }
 0x99f   :  { %1590 = vadd.xlane.f32.xlu0 %v1589_v63 }
 0x9a3   :  { %1596 = vadd.xlane.f32.xlu0 %v1595_v15 }
 0x9ad   :  { %1725 = vrot.lane.b32.xlu1 %v4566_v17, %s4580_s7 }
 0x9b1   :  { %1729 = vrot.lane.b32.xlu1 %v4568_v1, %s4580_s7 }
 0x9b5   :  { %1731 = vrot.lane.b32.xlu1 %v4569_v28, %s4580_s7 }
 0x9b9   :  { %1727 = vrot.lane.b32.xlu0 %v4567_v42, %s4580_s7 }
 0xa28   :  { %v1594_v31 = vpop.xlane.xlu0 %1593 }
 0xa29   :  { %v1600_v0 = vmul.f32 0.03125, %v1594_v31  ;;  %v1588_v33 = vpop.xlane.xlu1 %1587 }
 0xa2a   :  { %v1598_v59 = vmul.f32 0.03125, %v1588_v33 }
 0xa2b   :  { %v1604_v46 = vadd.f32 1e-05, %v1600_v0 }
 0xa2c   :  { %v1602_v4 = vadd.f32 1e-05, %v1598_v59  ;;  %v1591_v14 = vpop.xlane.xlu0 %1590 }
 0xa2d   :  { %v1599_v38 = vmul.f32 0.03125, %v1591_v14 }
 0xa2e   :  { %4432 = vrsqrt.f32 %v1602_v4 }
 0xa2f   :  { %v1603_v25 = vadd.f32 1e-05, %v1599_v38  ;;  %4434 = vrsqrt.f32 %v1604_v46 }
 0xa30   :  { %v1597_v40 = vpop.xlane.xlu0 %1596 }
 0xa31   :  { %4436 = vrsqrt.f32 %v1603_v25  ;;  %v1601_v16 = vmul.f32 0.03125, %v1597_v40 }
 0xa33   :  { %v1605_v41 = vadd.f32 1e-05, %v1601_v16 }
 0xa35   :  { %4438 = vrsqrt.f32 %v1605_v41 }
 0xa38   :  { %v4433_v3 = vpop.eup %4432 }
 0xa39   :  { %v4435_v45 = vpop.eup %4434  ;;  %v1610_v29 = vmul.f32 %v4433_v3, %v5093_v52 }
 0xa3a   :  { %v1612_v6 = vmul.f32 %v4435_v45, %v5090_v7 }
 0xa3b   :  { %v4437_v51 = vpop.eup %4436  ;;  %v1618_v30 = vmul.f32 %v1617_v37, %v1610_v29 }
 0xa3c   :  { %v1611_v53 = vmul.f32 %v4437_v51, %v5098_v50  ;;  %v1620_v9 = vmul.f32 %v1617_v37, %v1612_v6 }
 0xa3e   :  { %v1619_v61 = vmul.f32 %v1617_v37, %v1611_v53 }
 0xa3f   :  { %v4439_v62 = vpop.eup %4438 }
 0xa40   :  { %v1613_v10 = vmul.f32 %v4439_v62, %v5103_v12  ;;  %v1622_v19 = vpack.c.bf16 %v1619_v61, %v1618_v30  ;;  %v1726_v61 = vpop.permute.xlu1 %1725  ;;  %v44_v62 = vld [vmem:[%s5713_s3 + $0x20] sm:$0x3] }
 0xa41   :  { %4215 = vmatprep.subr.msk.bf16.mxu1 %vm250_vm1, %v44_v62 }
 0xa42   :  { %3993 = vmatprep.mubr.msk.bf16.mxu1 %vm49_vm0, %v1622_v19  ;;  %v1621_v2 = vmul.f32 %v1617_v37, %v1613_v10  ;;  %v1771_v19 = vsel %vm250_vm1, %v44_v62, 0 }
 0xa44   :  { %v1623_v26 = vpack.c.bf16 %v1621_v2, %v1620_v9 }
 0xa46   :  { %3994 = vmatmul.mubr.msk.bf16.vlgmr.msra.gmra.mrb[20].mxu1 %vm49_vm0, %v1623_v26 }
 0xa47   :  { %3998 = vmatpush3.bf16.msra.mxu1 %v1771_v19 }
 0xb19   :  { %v3995_v27 = vpop.f32.mrb[20].mxu1 }
 0xb1a   :  { %v5135_v36 = vmul.f32 0.35355338, %v3995_v27  ;;  %v1666_v44 = vpop.f32.mrb[21].mxu1 }
 0xb1b   :  { %v5137_v32 = vmul.f32 0.35355338, %v1666_v44  ;;  %v3996_v49 = vpop.f32.mrb[22].mxu1 }
 0xb1c   :  { %v1687_v63 = vadd.f32 0.54132485, %v5135_v36  ;;  %1836 = vst.msk [vmem:[%s5714_s4 + $0x10] sm:$0xff] %vm1763_vm7, %v5135_v36  ;;  %v5145_v58 = vmul.f32 0.35355338, %v3996_v49 }
 0xb1d   :  { %v1669_v15 = vpop.f32.mrb[23].mxu1  ;;  %v1685_v17 = vadd.f32 0.54132485, %v5137_v32  ;;  %1834 = vst.msk [vmem:[%s5714_s4] sm:$0xff] %vm1763_vm7, %v5137_v32 }
 0xb1e   :  { %v5153_v42 = vmul.f32 0.35355338, %v1669_v15  ;;  %v1695_v1 = vand.u32 2147483647, %v1687_v63  ;;  %v1688_v28 = vadd.f32 0.54132485, %v5145_v58 }
 0xb1f   :  { %1837 = vst.msk [vmem:[%s5714_s4 + $0x18] sm:$0xff] %vm1763_vm7, %v5145_v58  ;;  %v1693_v31 = vand.u32 2147483647, %v1685_v17  ;;  %v1691_v2 = vmax.f32 %v1687_v63, 0.0  ;;  %v1689_v44 = vmax.f32 %v1685_v17, 0.0 }
 0xb20   :  { %v1686_v0 = vadd.f32 0.54132485, %v5153_v42  ;;  %1835 = vst.msk [vmem:[%s5714_s4 + $0x8] sm:$0xff] %vm1763_vm7, %v5153_v42  ;;  %v1699_v33 = vsub.f32 0.0, %v1695_v1  ;;  %v1696_v59 = vand.u32 2147483647, %v1688_v28  ;;  %v1730_v1 = vpop.permute.xlu1 %1729 }
 0xb21   :  { %v1697_v46 = vsub.f32 0.0, %v1693_v31 }
 0xb22   :  { %v1694_v4 = vand.u32 2147483647, %v1686_v0  ;;  %v1705_v14 = vmul.f32 1.442695, %v1699_v33  ;;  %v1700_v38 = vsub.f32 0.0, %v1696_v59  ;;  %v1692_v33 = vmax.f32 %v1688_v28, 0.0 }
 0xb23   :  { %v1701_v25 = vmul.f32 1.442695, %v1697_v46 }
 0xb24   :  { %v1698_v40 = vsub.f32 0.0, %v1694_v4  ;;  %4440 = vpow2.f32 %v1705_v14  ;;  %v1707_v16 = vmul.f32 1.442695, %v1700_v38  ;;  %v1690_v4 = vmax.f32 %v1686_v0, 0.0  ;;  %v1732_v28 = vpop.permute.xlu1 %1731 }
 0xb25   :  { %4442 = vpow2.f32 %v1701_v25  ;;  %v1728_v25 = vpop.permute.xlu0 %1727 }
 0xb26   :  { %v1703_v41 = vmul.f32 1.442695, %v1698_v40  ;;  %4444 = vpow2.f32 %v1707_v16 }
 0xb28   :  { %4446 = vpow2.f32 %v1703_v41 }
 0xb2e   :  { %v4441_v3 = vpop.eup %4440 }
 0xb2f   :  { %v4443_v45 = vpop.eup %4442  ;;  %v1711_v29 = vadd.f32 1.0, %v4441_v3 }
 0xb30   :  { %v4445_v37 = vpop.eup %4444  ;;  %v1709_v51 = vadd.f32 1.0, %v4443_v45 }
 0xb31   :  { %4448 = vlog2.f32 %v1711_v29  ;;  %v1712_v6 = vadd.f32 1.0, %v4445_v37 }
 0xb32   :  { %v4447_v53 = vpop.eup %4446  ;;  %4450 = vlog2.f32 %v1709_v51 }
 0xb33   :  { %v1710_v30 = vadd.f32 1.0, %v4447_v53  ;;  %4452 = vlog2.f32 %v1712_v6 }
 0xb35   :  { %4454 = vlog2.f32 %v1710_v30 }
 0xb3b   :  { %v4449_v10 = vpop.eup %4448 }
 0xb3c   :  { %v4451_v9 = vpop.eup %4450  ;;  %v1718_v26 = vmul.f32 0.6931472, %v4449_v10 }
 0xb3d   :  { %v4453_v27 = vpop.eup %4452  ;;  %v1714_v49 = vmul.f32 0.6931472, %v4451_v9 }
 0xb3e   :  { %v1723_v31 = vadd.f32 %v1718_v26, %v1691_v2  ;;  %v1720_v59 = vmul.f32 0.6931472, %v4453_v27 }
 0xb3f   :  { %v4455_v15 = vpop.eup %4454  ;;  %v1721_v46 = vadd.f32 %v1714_v49, %v1689_v44 }
 0xb40   :  { %v1716_v14 = vmul.f32 0.6931472, %v4455_v15  ;;  %v1724_v38 = vadd.f32 %v1720_v59, %v1692_v33  ;;  %1841 = vst.msk [vmem:[%s5714_s4 + $0x10] sm:$0xff] %vm1838_vm8, %v1723_v31  ;;  %v1739_v0 = vmul.f32 %v1730_v1, %v1723_v31 }
 0xb41   :  { %v1737_v63 = vmul.f32 %v1726_v61, %v1721_v46  ;;  %1839 = vst.msk [vmem:[%s5714_s4] sm:$0xff] %vm1838_vm8, %v1721_v46  ;;  %v4340_v46 = vld [vmem:[%s5711_s2 + $0x30] ss:$12 sps:$4 sm:$0xff]  }
 0xb42   :  { %v1722_v40 = vadd.f32 %v1716_v14, %v1690_v4  ;;  %1842 = vst.msk [vmem:[%s5714_s4 + $0x18] sm:$0xff] %vm1838_vm8, %v1724_v38  ;;  %v1740_v16 = vmul.f32 %v1732_v28, %v1724_v38  ;;  %v4343_v4 = vld [vmem:[%s5711_s2 + $0x48] ss:$12 sps:$4 sm:$0xff]   ;;  %v5251_v14 = vld [vmem:[%s5711_s2 + $0x4c] ss:$12 sps:$4 sm:$0xff]  }
 0xb43   :  { %1745 = vrot.lane.b32.xlu1 %v1737_v63, %s4581_s14 }
 0xb44   :  { %v1738_v17 = vmul.f32 %v1728_v25, %v1722_v40  ;;  %1840 = vst.msk [vmem:[%s5714_s4 + $0x8] sm:$0xff] %vm1838_vm8, %v1722_v40 }
 0xb46   :  { %1747 = vrot.lane.b32.xlu0 %v1738_v17, %s4581_s14 }
 0xb47   :  { %1749 = vrot.lane.b32.xlu1 %v1739_v0, %s4581_s14 }
 0xb4a   :  { %1751 = vrot.lane.b32.xlu0 %v1740_v16, %s4581_s14 }
 0xbb5   :  { %v1746_v41 = vpop.permute.xlu1 %1745 }
 0xbb6   :  { %v5193_v45 = vadd.f32 %v1746_v41, %v5137_v32 }
 0xbb8   :  { %v1748_v3 = vpop.permute.xlu0 %1747 }
 0xbb9   :  { %v5196_v29 = vadd.f32 %v1748_v3, %v5153_v42  ;;  %v1750_v37 = vpop.permute.xlu1 %1749  ;;  %v1824_v42 = vsub.s32 5, %v4683_v34 }
 0xbba   :  { %v5201_v6 = vadd.f32 %v1750_v37, %v5135_v36 }
 0xbbb   :  { %v1761_v51 = vpack.c.bf16 %v5196_v29, %v5193_v45  ;;  %v1825_v61 = vrot.slane %v5057_v11, %v1824_v42 }
 0xbbc   :  { %v1752_v53 = vpop.permute.xlu0 %1751 }
 0xbbd   :  { %v5204_v30 = vadd.f32 %v1752_v53, %v5145_v58  ;;  %3999 = vmatprep.mubr.msk.bf16.mxu1 %vm1763_vm7, %v1761_v51  ;;  %v5257_v51 = vld [vmem:[%s5712_s1 + $0x10] sm:$0xff] }
 0xbbe   :  { %v1920_v42 = vrot.slane %v5257_v51, %v81_v35 }
 0xbbf   :  { %v1762_v32 = vpack.c.bf16 %v5204_v30, %v5201_v6 }
 0xbc1   :  { %4000 = vmatmul.mubr.msk.bf16.vlgmr.msra.gmra.mrb[24].mxu1 %vm1763_vm7, %v1762_v32 }
 0xc94   :  { %v4001_v62 = vpop.f32.mrb[24].mxu1 }
 0xc95   :  { %v1807_v10 = vpop.f32.mrb[25].mxu1  ;;  %v1828_v19 = vmul.f32 %v4001_v62, %v1825_v61 }
 0xc96   :  { %v1826_v9 = vmul.f32 %v1825_v61, %v1807_v10  ;;  %v4002_v36 = vpop.f32.mrb[26].mxu1 }
 0xc97   :  { %v1810_v2 = vpop.f32.mrb[27].mxu1  ;;  %v5216_v27 = vadd.f32 %v1828_v19, %v5090_v7  ;;  %v1829_v44 = vmul.f32 %v4002_v36, %v1825_v61 }
 0xc98   :  { %v5213_v58 = vadd.f32 %v1826_v9, %v5093_v52  ;;  %v1827_v26 = vmul.f32 %v1825_v61, %v1810_v2 }
 0xc99   :  { %v5227_v52 = vadd.f32 %v1829_v44, %v5103_v12  ;;  %v1887_v7 = vmul.f32 %v5216_v27, %v5216_v27  ;;  %v5239_v12 = vld [vmem:[%s5711_s2 + $0x34] ss:$12 sps:$4 sm:$0xff]  }
 0xc9a   :  { %v5219_v49 = vadd.f32 %v1827_v26, %v5098_v50  ;;  %v1885_v11 = vmul.f32 %v5213_v58, %v5213_v58  ;;  %1953 = vmatprep.subr.bf16.mxu0 %v5239_v12 }
 0xc9b   :  { %v1895_v50 = vsel %vm49_vm0, %v1887_v7, 0.0  ;;  %v1888_v33 = vmul.f32 %v5227_v52, %v5227_v52  ;;  %1954 = vmatpush1.bf16.msra.mxu0 %v4340_v46  ;;  %v2056_v7 = vrot.slane %v5257_v51, 6 }
 0xc9c   :  { %v1889_v15 = vsel %vm49_vm0, %v1885_v11, 0.0  ;;  %v1886_v1 = vmul.f32 %v5219_v49, %v5219_v49  ;;  %1955 = vmatprep.subr.bf16.mxu0 %v5251_v14 }
 0xc9d   :  { %1890 = vadd.xlane.f32.xlu1 %v1889_v15  ;;  %v1898_v59 = vsel %vm49_vm0, %v1888_v33, 0.0 }
 0xc9e   :  { %v1892_v31 = vsel %vm49_vm0, %v1886_v1, 0.0 }
 0xc9f   :  { %1893 = vadd.xlane.f32.xlu0 %v1892_v31  ;;  %1956 = vmatpush1.bf16.msra.mxu0 %v4343_v4  ;;  %v5272_v31 = vld [vmem:[%s5712_s1 + $0x18] sm:$0xf] }
 0xca3   :  { %1896 = vadd.xlane.f32.xlu0 %v1895_v50  ;;  %v2057_v50 = vrot.slane %v5272_v31, 6 }
 0xca5   :  { %v2058_v33 = vsel %vm250_vm1, %v2056_v7, %v2057_v50 }
 0xca6   :  { %4003 = vmatprep.subr.msk.mxu1 %vm49_vm0, %v2058_v33 }
 0xca7   :  { %1899 = vadd.xlane.f32.xlu0 %v1898_v59  ;;  %4004 = vmatpush3.xpose.msk.msra.mxu1 %vm49_vm0, %v2058_v33 }
 0xd2a   :  { %v1891_v38 = vpop.xlane.xlu1 %1890 }
 0xd2b   :  { %v1901_v25 = vmul.f32 0.03125, %v1891_v38 }
 0xd2c   :  { %v1894_v63 = vpop.xlane.xlu0 %1893 }
 0xd2d   :  { %v1905_v40 = vadd.f32 1e-05, %v1901_v25  ;;  %v1902_v17 = vmul.f32 0.03125, %v1894_v63 }
 0xd2f   :  { %4456 = vrsqrt.f32 %v1905_v40  ;;  %v1906_v28 = vadd.f32 1e-05, %v1902_v17 }
 0xd30   :  { %v1897_v0 = vpop.xlane.xlu0 %1896 }
 0xd31   :  { %4458 = vrsqrt.f32 %v1906_v28  ;;  %v1903_v16 = vmul.f32 0.03125, %v1897_v0 }
 0xd33   :  { %v1907_v41 = vadd.f32 1e-05, %v1903_v16 }
 0xd34   :  { %v1900_v3 = vpop.xlane.xlu0 %1899 }
 0xd35   :  { %4460 = vrsqrt.f32 %v1907_v41  ;;  %v1904_v37 = vmul.f32 0.03125, %v1900_v3 }
 0xd37   :  { %v1908_v53 = vadd.f32 1e-05, %v1904_v37 }
 0xd39   :  { %v4457_v32 = vpop.eup %4456  ;;  %4462 = vrsqrt.f32 %v1908_v53 }
 0xd3a   :  { %v1913_v61 = vmul.f32 %v4457_v32, %v5213_v58 }
 0xd3b   :  { %v4459_v62 = vpop.eup %4458 }
 0xd3c   :  { %v1914_v10 = vmul.f32 %v4459_v62, %v5219_v49  ;;  %v1921_v19 = vmul.f32 %v1920_v42, %v1913_v61 }
 0xd3e   :  { %v1922_v9 = vmul.f32 %v1920_v42, %v1914_v10 }
 0xd3f   :  { %v4461_v36 = vpop.eup %4460 }
 0xd40   :  { %v1925_v2 = vpack.c.bf16 %v1922_v9, %v1921_v19  ;;  %v1915_v26 = vmul.f32 %v4461_v36, %v5216_v27 }
 0xd42   :  { %3677 = vmatmul.mubr.msk.bf16.vlgmr.msra.gmra.mrb[20].mxu0 %vm49_vm0, %v1925_v2  ;;  %v1923_v15 = vmul.f32 %v1920_v42, %v1915_v26 }
 0xd43   :  { %v4463_v44 = vpop.eup %4462  ;;  %1995 = vmatprep.mubr.bf16.mxu0 %v4571_v13 }
 0xd44   :  { %v1916_v11 = vmul.f32 %v4463_v44, %v5227_v52 }
 0xd46   :  { %v1924_v35 = vmul.f32 %v1920_v42, %v1916_v11 }
 0xd48   :  { %v1926_v1 = vpack.c.bf16 %v1924_v35, %v1923_v15 }
 0xd4a   :  { %3678 = vmatmul.mubr.msk.bf16.gmra.mrb[24].mxu0 %vm49_vm0, %v1926_v1 }
 0xe15   :  { %v1987_v13 = vpop.f32.mrb[20].mxu0 }
 0xe16   :  { %v2010_v59 = vmul.f32 %v1987_v13, %v4713_v57  ;;  %v1989_v46 = vpop.f32.mrb[21].mxu0  ;;  %v2006_v42 = vmul.f32 %v1987_v13, %v4739_v21 }
 0xe17   :  { %v2011_v4 = vmul.f32 %v1989_v46, %v4713_v57  ;;  %v1991_v38 = vpop.f32.mrb[22].mxu0 }
 0xe18   :  { %v5281_v25 = vpack.i.bf16 %v1991_v38, %v1987_v13  ;;  %2026 = vrot.lane.b32.xlu1 %v2010_v59, %s4574_s19  ;;  %v1993_v63 = vpop.f32.mrb[23].mxu0  ;;  %v2012_v40 = vmul.f32 %v1991_v38, %v4711_v56 }
 0xe19   :  { %2028 = vrot.lane.b32.xlu0 %v2011_v4, %s4574_s19  ;;  %v2013_v28 = vmul.f32 %v1993_v63, %v4711_v56 }
 0xe1c   :  { %2030 = vrot.lane.b32.xlu1 %v2012_v40, %s4574_s19 }
 0xe1d   :  { %v1997_v17 = vpop.f32.mrb[24].mxu0 }
 0xe1e   :  { %v1999_v0 = vpop.f32.mrb[25].mxu0  ;;  %v2014_v37 = vmul.f32 %v1997_v17, %v4722_v5  ;;  %v2008_v44 = vmul.f32 %v1997_v17, %v4743_v23 }
 0xe1f   :  { %v2015_v16 = vmul.f32 %v1999_v0, %v4722_v5  ;;  %v2001_v41 = vpop.f32.mrb[26].mxu0  ;;  %v2007_v5 = vmul.f32 %v1991_v38, %v4741_v22 }
 0xe20   :  { %v5289_v57 = vpack.i.bf16 %v2001_v41, %v1997_v17  ;;  %2032 = vrot.lane.b32.xlu1 %v2013_v28, %s4574_s19  ;;  %v2003_v3 = vpop.f32.mrb[27].mxu0  ;;  %v2016_v56 = vmul.f32 %v2001_v41, %v4732_v18  ;;  %v2009_v22 = vmul.f32 %v2001_v41, %v4745_v24 }
 0xe21   :  { %2036 = vrot.lane.b32.xlu0 %v2015_v16, %s4574_s19  ;;  %v2017_v53 = vmul.f32 %v2003_v3, %v4732_v18 }
 0xe24   :  { %2034 = vrot.lane.b32.xlu1 %v2014_v37, %s4574_s19 }
 0xe25   :  { %2040 = vrot.lane.b32.xlu0 %v2017_v53, %s4574_s19 }
 0xe28   :  { %2038 = vrot.lane.b32.xlu1 %v2016_v56, %s4574_s19 }
 0xe8a   :  { %v2027_v32 = vpop.permute.xlu1 %2026 }
 0xe8b   :  { %v2029_v61 = vpop.permute.xlu0 %2028 }
 0xe8c   :  { %v2042_v62 = vsel %vm49_vm0, %v2027_v32, %v2029_v61 }
 0xe8d   :  { %v2050_v10 = vadd.f32 %v2042_v62, %v2006_v42 }
 0xe8e   :  { %v2031_v19 = vpop.permute.xlu1 %2030 }
 0xe8f   :  { %4005 = vmatprep.mubr.msk.f32.mxu1 %vm49_vm0, %v2050_v10  ;;  %4019 = vmatprep.mubr.msk.f32.mxu0 %vm365_vm2, %v2050_v10 }
 0xe92   :  { %v2033_v9 = vpop.permute.xlu1 %2032 }
 0xe93   :  { %v2043_v36 = vsel %vm49_vm0, %v2031_v19, %v2033_v9  ;;  %v2037_v2 = vpop.permute.xlu0 %2036 }
 0xe94   :  { %v2051_v18 = vadd.f32 %v2043_v36, %v2007_v5 }
 0xe96   :  { %v2035_v26 = vpop.permute.xlu1 %2034  ;;  %4006 = vmatmul.mubr.msk.f32.vlgmr.msra.gmra.mrb[28].mxu1 %vm49_vm0, %v2051_v18  ;;  %v4278_v21 = vpack.i.bf16 %v2051_v18, %v2050_v10 }
 0xe97   :  { %v2044_v11 = vsel %vm49_vm0, %v2035_v26, %v2037_v2  ;;  %v2041_v35 = vpop.permute.xlu0 %2040  ;;  %v2363_v26 = vrot.slane %v5272_v31, 2 }
 0xe98   :  { %v2052_v15 = vadd.f32 %v2044_v11, %v2008_v44  ;;  %4279 = vrot.lane.b32.xlu1 %v4278_v21, %s4572_s9 }
 0xe99   :  { %4025 = vmatprep.subr.msk.mxu1 %vm250_vm1, %v2363_v26 }
 0xe9a   :  { %v2039_v1 = vpop.permute.xlu1 %2038  ;;  %4008 = vmatprep.mubr.msk.f32.mxu1 %vm49_vm0, %v2052_v15  ;;  %4026 = vmatpush3.msk.msra.mxu1 %vm250_vm1, %v2363_v26 }
 0xe9b   :  { %v2045_v7 = vsel %vm49_vm0, %v2039_v1, %v2041_v35 }
 0xe9c   :  { %v2053_v50 = vadd.f32 %v2045_v7, %v2009_v22  ;;  %4289 = vrot.lane.b32.xlu1 %v4278_v21, %s4575_s20 }
 0xe9e   :  { %4009 = vmatmul.mubr.msk.f32.gmra.mrb[30].mxu1 %vm49_vm0, %v2053_v50  ;;  %v4283_v23 = vpack.i.bf16 %v2053_v50, %v2052_v15 }
 0xea0   :  { %2580 = vrot.lane.b32.xlu1 %v2050_v10, %s4576_s21  ;;  %4284 = vrot.lane.b32.xlu0 %v4283_v23, %s4572_s9 }
 0xea4   :  { %2584 = vrot.lane.b32.xlu1 %v2052_v15, %s4576_s21  ;;  %4294 = vrot.lane.b32.xlu0 %v4283_v23, %s4575_s20 }
 0xea8   :  { %2582 = vrot.lane.b32.xlu0 %v2051_v18, %s4576_s21 }
 0xeac   :  { %2586 = vrot.lane.b32.xlu0 %v2053_v50, %s4576_s21 }
 0xf0a   :  { %v4280_v24 = vpop.permute.xlu1 %4279 }
 0xf0b   :  { %v4282_v33 = vunpack.i.h.bf16 %v4280_v24  ;;  %v4281_v13 = vunpack.i.l.bf16 %v4280_v24 }
 0xf0d   :  { %v4159_v59 = vpack.c.bf16 %v4282_v33, %v4281_v13 }
 0xf0e   :  { %v4290_v46 = vpop.permute.xlu1 %4289 }
 0xf0f   :  { %4161 = vmatprep.subr.msk.bf16.mxu0 %vm4778_vm3, %v4159_v59  ;;  %v4292_v38 = vunpack.i.h.bf16 %v4290_v46  ;;  %v4291_v63 = vunpack.i.l.bf16 %v4290_v46 }
 0xf10   :  { %4164 = vmatpush3.bf16.xpose.msk.msra.mxu0 %vm4778_vm3, %v4159_v59 }
 0xf11   :  { %v4179_v0 = vpack.c.bf16 %v4292_v38, %v4291_v63 }
 0xf12   :  { %v4285_v4 = vpop.permute.xlu0 %4284  ;;  %v2581_v53 = vpop.permute.xlu1 %2580 }
 0xf13   :  { %v4287_v40 = vunpack.i.h.bf16 %v4285_v4  ;;  %v4286_v17 = vunpack.i.l.bf16 %v4285_v4 }
 0xf15   :  { %v4165_v28 = vpack.c.bf16 %v4287_v40, %v4286_v17 }
 0xf16   :  { %v4295_v16 = vpop.permute.xlu0 %4294  ;;  %v2585_v32 = vpop.permute.xlu1 %2584 }
 0xf17   :  { %4167 = vmatprep.subr.msk.bf16.mxu0 %vm4778_vm3, %v4165_v28  ;;  %v4297_v41 = vunpack.i.h.bf16 %v4295_v16  ;;  %v4296_v3 = vunpack.i.l.bf16 %v4295_v16 }
 0xf18   :  { %4170 = vmatpush3.bf16.xpose.msk.msra.mxu0 %vm4778_vm3, %v4165_v28 }
 0xf19   :  { %4181 = vmatprep.subr.msk.bf16.mxu0 %vm4778_vm3, %v4179_v0  ;;  %v4185_v37 = vpack.c.bf16 %v4297_v41, %v4296_v3 }
 0xf1a   :  { %v2583_v56 = vpop.permute.xlu0 %2582 }
 0xf1e   :  { %v2587_v42 = vpop.permute.xlu0 %2586 }
 0xf1f   :  { %4020 = vmatmul.mubr.msk.f32.vlgmr.msra.gmra.mrb[28].mxu0 %vm365_vm2, %v2051_v18 }
 0xf20   :  { %4022 = vmatprep.mubr.msk.f32.mxu0 %vm365_vm2, %v2052_v15  ;;  %4184 = vmatpush3.bf16.xpose.msk.msra.mxu0 %vm4778_vm3, %v4179_v0 }
 0xf21   :  { %4187 = vmatprep.subr.msk.bf16.mxu0 %vm4778_vm3, %v4185_v37 }
 0xf23   :  { %4023 = vmatmul.mubr.msk.f32.gmra.mrb[30].mxu0 %vm365_vm2, %v2053_v50 }
 0xf24   :  { %4055 = vmatprep.mubr.msk.f32.mxu0 %vm365_vm2, %v2581_v53 }
 0xf28   :  { %4190 = vmatpush3.bf16.xpose.msk.msra.mxu0 %vm4778_vm3, %v4185_v37 }
 0xf2f   :  { %4056 = vmatmul.mubr.msk.f32.vlgmr.msra.gmra.mrb[32].mxu0 %vm365_vm2, %v2583_v56 }
 0xf30   :  { %4058 = vmatprep.mubr.msk.f32.mxu0 %vm365_vm2, %v2585_v32 }
 0xf33   :  { %4059 = vmatmul.mubr.msk.f32.gmra.mrb[34].mxu0 %vm365_vm2, %v2587_v42 }
 0xf69   :  { %v4007_v61 = vpop.f32.mrb[28].mxu1 }
 0xf6a   :  { %v5343_v62 = vmul.f32 0.25, %v4007_v61  ;;  %v2139_v10 = vpop.f32.mrb[29].mxu1 }
 0xf6b   :  { %v5345_v19 = vmul.f32 0.25, %v2139_v10 }
 0xf6c   :  { %v2720_v5 = vsel %vm926_vm4, %v5343_v62, -inf  ;;  %v2294_v37 = vsel %vm499_vm5, %v5343_v62, -inf }
 0xf6d   :  { %2721 = vmax.xlane.f32.xlu0 %v2720_v5  ;;  %v2717_v54 = vsel %vm926_vm4, %v5345_v19, -inf  ;;  %v2291_v0 = vsel %vm499_vm5, %v5345_v19, -inf }
 0xf71   :  { %2718 = vmax.xlane.f32.xlu0 %v2717_v54  ;;  %v4010_v9 = vpop.f32.mrb[30].mxu1 }
 0xf72   :  { %v2149_v36 = vpop.f32.mrb[31].mxu1  ;;  %v5364_v31 = vmul.f32 0.25, %v4010_v9 }
 0xf73   :  { %v5351_v18 = vmul.f32 0.25, %v2149_v36 }
 0xf74   :  { %v2726_v63 = vsel %vm926_vm4, %v5364_v31, -inf }
 0xf75   :  { %v2723_v2 = vsel %vm926_vm4, %v5351_v18, -inf }
 0xf76   :  { %2724 = vmax.xlane.f32.xlu0 %v2723_v2 }
 0xff2   :  { %v4021_v44 = vpop.f32.mrb[28].mxu0 }
 0xff3   :  { %v2252_v21 = vpop.f32.mrb[29].mxu0  ;;  %v2272_v16 = vmul.f32 0.25, %v4021_v44 }
 0xff4   :  { %v2271_v40 = vmul.f32 0.25, %v2252_v21 }
 0xff5   :  { %v5390_v53 = vadd.f32 %v2272_v16, %v4839_v48 }
 0xff6   :  { %v4024_v11 = vpop.f32.mrb[30].mxu0  ;;  %v5383_v41 = vadd.f32 %v2271_v40, %v4837_v47 }
 0xff7   :  { %v2262_v15 = vpop.f32.mrb[31].mxu0  ;;  %v2274_v42 = vmul.f32 0.25, %v4024_v11  ;;  %v2282_v10 = vsel %vm49_vm0, %v5390_v53, -inf }
 0xff8   :  { %v2273_v56 = vmul.f32 0.25, %v2262_v15  ;;  %v2279_v32 = vsel %vm49_vm0, %v5383_v41, -inf }
 0xff9   :  { %v5404_v5 = vadd.f32 %v2274_v42, %v4856_v60 }
 0xffa   :  { %v5397_v61 = vadd.f32 %v2273_v56, %v4849_v55 }
 0xffc   :  { %v2285_v54 = vsel %vm49_vm0, %v5397_v61, -inf }
0x1002   :  { %v4057_v35 = vpop.f32.mrb[32].mxu0 }
0x1003   :  { %v2698_v1 = vmul.f32 0.25, %v4057_v35  ;;  %v2678_v22 = vpop.f32.mrb[33].mxu0 }
0x1004   :  { %v2697_v7 = vmul.f32 0.25, %v2678_v22 }
0x1005   :  { %v5359_v50 = vadd.f32 %v2698_v1, %v4839_v48  ;;  %v2300_v48 = vsel %vm499_vm5, %v5364_v31, -inf }
0x1006   :  { %v5362_v23 = vadd.f32 %v2697_v7, %v4837_v47  ;;  %v4060_v24 = vpop.f32.mrb[34].mxu0  ;;  %v2297_v47 = vsel %vm499_vm5, %v5351_v18, -inf }
0x1007   :  { %v2688_v33 = vpop.f32.mrb[35].mxu0  ;;  %v2708_v13 = vsel %vm49_vm0, %v5359_v50, -inf  ;;  %v2700_v59 = vmul.f32 0.25, %v4060_v24 }
0x1008   :  { %v2699_v46 = vmul.f32 0.25, %v2688_v33  ;;  %2709 = vmax.xlane.f32.xlu0 %v2708_v13  ;;  %v2705_v4 = vsel %vm49_vm0, %v5362_v23, -inf }
0x1009   :  { %2706 = vmax.xlane.f32.xlu1 %v2705_v4  ;;  %v5376_v17 = vadd.f32 %v2700_v59, %v4856_v60  ;;  %v2722_v60 = vpop.xlane.xlu0 %2721 }
0x100a   :  { %v5371_v38 = vadd.f32 %v2699_v46, %v4849_v55  ;;  %v2288_v55 = vsel %vm49_vm0, %v5404_v5, -inf }
0x100b   :  { %v2714_v3 = vsel %vm49_vm0, %v5376_v17, -inf }
0x100c   :  { %2727 = vmax.xlane.f32.xlu0 %v2726_v63  ;;  %v2711_v28 = vsel %vm49_vm0, %v5371_v38, -inf }
0x100d   :  { %2712 = vmax.xlane.f32.xlu1 %v2711_v28  ;;  %v2719_v9 = vpop.xlane.xlu0 %2718 }
0x1010   :  { %2292 = vmax.xlane.f32.xlu0 %v2291_v0 }
0x1011   :  { %2715 = vmax.xlane.f32.xlu1 %v2714_v3  ;;  %v2725_v36 = vpop.xlane.xlu0 %2724 }
0x1014   :  { %2295 = vmax.xlane.f32.xlu0 %v2294_v37 }
0x1015   :  { %2280 = vmax.xlane.f32.xlu1 %v2279_v32 }
0x1018   :  { %2298 = vmax.xlane.f32.xlu0 %v2297_v47 }
0x1019   :  { %2283 = vmax.xlane.f32.xlu1 %v2282_v10 }
0x101c   :  { %2301 = vmax.xlane.f32.xlu0 %v2300_v48 }
0x101d   :  { %2286 = vmax.xlane.f32.xlu1 %v2285_v54 }
0x1021   :  { %2289 = vmax.xlane.f32.xlu1 %v2288_v55 }
0x1032   :  { %4299 = vrot.lane.b32.xlu1 %v5281_v25, %s4573_s12  ;;  %4304 = vrot.lane.b32.xlu0 %v5289_v57, %s4573_s12 }
0x1036   :  { %2805 = vrot.lane.b32.xlu1 %v2363_v26, %s4576_s21 }
0x103a   :  { %4309 = vrot.lane.b32.xlu1 %v5281_v25, %s4577_s22 }
0x1095   :  { %v2710_v2 = vpop.xlane.xlu0 %2709 }
0x1096   :  { %v5417_v44 = vmax.f32 %v2710_v2, %v2722_v60  ;;  %v2707_v21 = vpop.xlane.xlu1 %2706 }
0x1097   :  { %v5419_v11 = vmax.f32 %v2707_v21, %v2719_v9 }
0x1098   :  { %v2746_v15 = vsub.f32 %v5343_v62, %v5417_v44 }
0x1099   :  { %v2745_v35 = vsub.f32 %v5345_v19, %v5419_v11  ;;  %v2728_v1 = vpop.xlane.xlu0 %2727 }
0x109a   :  { %v2751_v26 = vmul.f32 1.442695, %v2746_v15  ;;  %v2713_v22 = vpop.xlane.xlu1 %2712 }
0x109b   :  { %v2749_v7 = vmul.f32 1.442695, %v2745_v35  ;;  %v5425_v25 = vmax.f32 %v2713_v22, %v2725_v36 }
0x109c   :  { %4464 = vpow2.f32 %v2751_v26 }
0x109d   :  { %v2747_v24 = vsub.f32 %v5351_v18, %v5425_v25  ;;  %v2293_v33 = vpop.xlane.xlu0 %2292  ;;  %4466 = vpow2.f32 %v2749_v7 }
0x109e   :  { %v2716_v13 = vpop.xlane.xlu1 %2715 }
0x109f   :  { %v2753_v59 = vmul.f32 1.442695, %v2747_v24  ;;  %v5429_v46 = vmax.f32 %v2716_v13, %v2728_v1  ;;  %v2733_v13 = vsub.f32 %v5362_v23, %v5419_v11  ;;  %v2735_v23 = vsub.f32 %v5371_v38, %v5425_v25 }
0x10a0   :  { %v2734_v38 = vsub.f32 %v5359_v50, %v5417_v44 }
0x10a1   :  { %v2748_v4 = vsub.f32 %v5364_v31, %v5429_v46  ;;  %v2296_v63 = vpop.xlane.xlu0 %2295  ;;  %4468 = vpow2.f32 %v2753_v59 }
0x10a2   :  { %v2281_v40 = vpop.xlane.xlu1 %2280 }
0x10a3   :  { %v2755_v28 = vmul.f32 1.442695, %v2748_v4  ;;  %v2303_v0 = vmax.f32 %v2281_v40, %v2293_v33 }
0x10a5   :  { %v2319_v16 = vsub.f32 %v5345_v19, %v2303_v0  ;;  %4470 = vpow2.f32 %v2755_v28  ;;  %v2299_v3 = vpop.xlane.xlu0 %2298  ;;  %v2307_v36 = vsub.f32 %v5383_v41, %v2303_v0  ;;  %v2737_v0 = vmul.f32 1.442695, %v2733_v13 }
0x10a6   :  { %v2284_v37 = vpop.xlane.xlu1 %2283  ;;  %v4465_v56 = vpop.eup %4464 }
0x10a7   :  { %v2323_v32 = vmul.f32 1.442695, %v2319_v16  ;;  %v2304_v47 = vmax.f32 %v2284_v37, %v2296_v63  ;;  %2775 = vrot.lane.b32.xlu0 %v4465_v56, %s4578_s23  ;;  %v4467_v42 = vpop.eup %4466  ;;  %v2311_v1 = vmul.f32 1.442695, %v2307_v36 }
0x10a8   :  { %2773 = vrot.lane.b32.xlu1 %v4467_v42, %s4578_s23 }
0x10a9   :  { %v2320_v10 = vsub.f32 %v5343_v62, %v2304_v47  ;;  %4472 = vpow2.f32 %v2323_v32  ;;  %v2302_v9 = vpop.xlane.xlu0 %2301  ;;  %v2308_v26 = vsub.f32 %v5390_v53, %v2304_v47 }
0x10aa   :  { %v2287_v48 = vpop.xlane.xlu1 %2286 }
0x10ab   :  { %v2325_v54 = vmul.f32 1.442695, %v2320_v10  ;;  %v2305_v55 = vmax.f32 %v2287_v48, %v2299_v3  ;;  %v4469_v60 = vpop.eup %4468  ;;  %v2313_v53 = vmul.f32 1.442695, %v2308_v26  ;;  %v2741_v3 = vmul.f32 1.442695, %v2735_v23 }
0x10ac   :  { %2777 = vrot.lane.b32.xlu0 %v4469_v60, %s4578_s23  ;;  %4314 = vrot.lane.b32.xlu1 %v5289_v57, %s4577_s22  ;;  %v2739_v10 = vmul.f32 1.442695, %v2734_v38  ;;  %v2736_v48 = vsub.f32 %v5376_v17, %v5429_v46 }
0x10ad   :  { %v2321_v19 = vsub.f32 %v5351_v18, %v2305_v55  ;;  %4474 = vpow2.f32 %v2325_v54  ;;  %v4305_v22 = vpop.permute.xlu0 %4304  ;;  %v2309_v41 = vsub.f32 %v5397_v61, %v2305_v55 }
0x10ae   :  { %v2290_v2 = vpop.xlane.xlu1 %2289  ;;  %v4307_v59 = vunpack.i.h.bf16 %v4305_v22  ;;  %v2743_v60 = vmul.f32 1.442695, %v2736_v48 }
0x10af   :  { %v2327_v62 = vmul.f32 1.442695, %v2321_v19  ;;  %v2306_v21 = vmax.f32 %v2290_v2, %v2302_v9  ;;  %v4471_v15 = vpop.eup %4470  ;;  %v2315_v61 = vmul.f32 1.442695, %v2309_v41 }
0x10b0   :  { %2779 = vrot.lane.b32.xlu1 %v4471_v15, %s4578_s23 }
0x10b1   :  { %v2322_v35 = vsub.f32 %v5364_v31, %v2306_v21  ;;  %4476 = vpow2.f32 %v2327_v62  ;;  %v4306_v31 = vunpack.i.l.bf16 %v4305_v22  ;;  %v2310_v63 = vsub.f32 %v5404_v5, %v2306_v21 }
0x10b2   :  { %v4300_v18 = vpop.permute.xlu1 %4299 }
0x10b3   :  { %v2329_v7 = vmul.f32 1.442695, %v2322_v35  ;;  %v4302_v24 = vunpack.i.h.bf16 %v4300_v18  ;;  %v4301_v33 = vunpack.i.l.bf16 %v4300_v18  ;;  %v5446_v57 = vpop.eup %4472  ;;  %v4175_v16 = vpack.c.bf16 %v4307_v59, %v4306_v31 }
0x10b4   :  { %4027 = vmatprep.mubr.msk.f32.mxu1 %vm499_vm5, %v5446_v57  ;;  %v2317_v11 = vmul.f32 1.442695, %v2310_v63 }
0x10b5   :  { %v4171_v4 = vpack.c.bf16 %v4302_v24, %v4301_v33  ;;  %4478 = vpow2.f32 %v2329_v7 }
0x10b6   :  { %4480 = vpow2.f32 %v2311_v1  ;;  %v2806_v28 = vpop.permute.xlu1 %2805 }
0x10b7   :  { %4172 = vmatprep.subr.bf16.mxu1 %v4171_v4  ;;  %v5453_v40 = vpop.eup %4474  ;;  %4482 = vpow2.f32 %v2313_v53 }
0x10b8   :  { %4028 = vmatmul.mubr.msk.f32.vlgmr.msra.gmra.mrb[32].mxu1 %vm499_vm5, %v5453_v40  ;;  %4484 = vpow2.f32 %v2315_v61  ;;  %v2346_v53 = vsel %vm499_vm5, %v5453_v40, 0.0 }
0x10b9   :  { %4174 = vmatpush3.bf16.msra.mxu1 %v4171_v4  ;;  %4486 = vpow2.f32 %v2737_v0  ;;  %v2343_v4 = vsel %vm499_vm5, %v5446_v57, 0.0 }
0x10ba   :  { %4176 = vmatprep.subr.bf16.mxu1 %v4175_v16  ;;  %4488 = vpow2.f32 %v2317_v11  ;;  %v4310_v37 = vpop.permute.xlu1 %4309 }
0x10bb   :  { %v5459_v5 = vpop.eup %4476  ;;  %v4312_v32 = vunpack.i.h.bf16 %v4310_v37  ;;  %v4311_v47 = vunpack.i.l.bf16 %v4310_v37  ;;  %4490 = vpow2.f32 %v2741_v3 }
0x10bc   :  { %4030 = vmatprep.mubr.msk.f32.mxu1 %vm499_vm5, %v5459_v5  ;;  %4492 = vpow2.f32 %v2739_v10 }
0x10bd   :  { %4178 = vmatpush3.bf16.msra.mxu1 %v4175_v16  ;;  %v4191_v55 = vpack.c.bf16 %v4312_v32, %v4311_v47  ;;  %4494 = vpow2.f32 %v2743_v60 }
0x10be   :  { %4061 = vmatprep.subr.msk.mxu1 %vm250_vm1, %v2806_v28 }
0x10bf   :  { %v5464_v56 = vpop.eup %4478 }
0x10c0   :  { %v4481_v25 = vpop.eup %4480  ;;  %4031 = vmatmul.mubr.msk.f32.gmra.mrb[34].mxu1 %vm499_vm5, %v5464_v56  ;;  %v2352_v57 = vsel %vm499_vm5, %v5464_v56, 0.0 }
0x10c1   :  { %4041 = vmatprep.mubr.msk.f32.mxu1 %vm49_vm0, %v4481_v25  ;;  %v4483_v42 = vpop.eup %4482  ;;  %v2331_v59 = vsel %vm49_vm0, %v4481_v25, 0.0 }
0x10c2   :  { %v4485_v54 = vpop.eup %4484  ;;  %v2334_v31 = vsel %vm49_vm0, %v4483_v42, 0.0 }
0x10c3   :  { %v4487_v50 = vpop.eup %4486  ;;  %v2337_v63 = vsel %vm49_vm0, %v4485_v54, 0.0 }
0x10c4   :  { %4042 = vmatmul.mubr.msk.f32.vlgmr.msra.gmra.mrb[32].mxu1 %vm49_vm0, %v4483_v42  ;;  %v4489_v44 = vpop.eup %4488  ;;  %v2757_v9 = vsel %vm49_vm0, %v4487_v50, 0.0 }
0x10c5   :  { %4062 = vmatpush3.msk.msra.mxu1 %vm250_vm1, %v2806_v28  ;;  %4044 = vmatprep.mubr.msk.f32.mxu1 %vm49_vm0, %v4485_v54  ;;  %v4491_v19 = vpop.eup %4490  ;;  %v2340_v61 = vsel %vm49_vm0, %v4489_v44, 0.0  ;;  %v2349_v28 = vsel %vm499_vm5, %v5459_v5, 0.0 }
0x10c6   :  { %4192 = vmatprep.subr.bf16.mxu1 %v4191_v55  ;;  %v2763_v17 = vsel %vm49_vm0, %v4491_v19, 0.0  ;;  %v4493_v46 = vpop.eup %4492 }
0x10c7   :  { %v2760_v36 = vsel %vm49_vm0, %v4493_v46, 0.0  ;;  %v4495_v2 = vpop.eup %4494 }
0x10c8   :  { %4045 = vmatmul.mubr.msk.f32.gmra.mrb[34].mxu1 %vm49_vm0, %v4489_v44  ;;  %v2766_v62 = vsel %vm49_vm0, %v4495_v2, 0.0 }
0x10cb   :  { %2758 = vadd.xlane.f32.xlu0 %v2757_v9 }
0x10cf   :  { %2764 = vadd.xlane.f32.xlu0 %v2763_v17 }
0x10d4   :  { %2761 = vadd.xlane.f32.xlu1 %v2760_v36 }
0x10d8   :  { %2767 = vadd.xlane.f32.xlu1 %v2766_v62 }
0x1119   :  { %v2776_v21 = vpop.permute.xlu0 %2775 }
0x111a   :  { %v2788_v15 = vsel %vm499_vm5, %v2776_v21, 0.0  ;;  %v2774_v35 = vpop.permute.xlu1 %2773 }
0x111b   :  { %2789 = vadd.xlane.f32.xlu0 %v2788_v15  ;;  %4063 = vmatprep.mubr.msk.f32.mxu1 %vm499_vm5, %v2774_v35  ;;  %v2785_v26 = vsel %vm499_vm5, %v2774_v35, 0.0 }
0x111c   :  { %4064 = vmatmul.mubr.msk.f32.vlgmr.msra.gmra.mrb[36].mxu1 %vm499_vm5, %v2776_v21 }
0x111d   :  { %4194 = vmatpush3.bf16.msra.mxu1 %v4191_v55 }
0x111e   :  { %v2778_v1 = vpop.permute.xlu0 %2777  ;;  %v4315_v22 = vpop.permute.xlu1 %4314 }
0x111f   :  { %2786 = vadd.xlane.f32.xlu0 %v2785_v26  ;;  %4066 = vmatprep.mubr.msk.f32.mxu1 %vm499_vm5, %v2778_v1  ;;  %v4317_v18 = vunpack.i.h.bf16 %v4315_v22  ;;  %v4316_v41 = vunpack.i.l.bf16 %v4315_v22  ;;  %v2791_v24 = vsel %vm499_vm5, %v2778_v1, 0.0 }
0x1121   :  { %v4195_v7 = vpack.c.bf16 %v4317_v18, %v4316_v41 }
0x1122   :  { %v2780_v33 = vpop.permute.xlu1 %2779 }
0x1123   :  { %2792 = vadd.xlane.f32.xlu0 %v2791_v24  ;;  %4067 = vmatmul.mubr.msk.f32.gmra.mrb[38].mxu1 %vm499_vm5, %v2780_v33  ;;  %v2794_v13 = vsel %vm499_vm5, %v2780_v33, 0.0 }
0x1124   :  { %4196 = vmatprep.subr.bf16.mxu1 %v4195_v7  ;;  %2795 = vadd.xlane.f32.xlu1 %v2794_v13 }
0x1125   :  { %4198 = vmatpush3.bf16.msra.mxu1 %v4195_v7  ;;  %4077 = vmatprep.mubr.msk.f32.mxu1 %vm49_vm0, %v4487_v50 }
0x1127   :  { %2332 = vadd.xlane.f32.xlu0 %v2331_v59 }
0x1128   :  { %4078 = vmatmul.mubr.msk.f32.vlgmr.msra.gmra.mrb[36].mxu1 %vm49_vm0, %v4493_v46  ;;  %2335 = vadd.xlane.f32.xlu1 %v2334_v31 }
0x1129   :  { %4080 = vmatprep.mubr.msk.f32.mxu1 %vm49_vm0, %v4491_v19 }
0x112b   :  { %2344 = vadd.xlane.f32.xlu0 %v2343_v4 }
0x112c   :  { %4081 = vmatmul.mubr.msk.f32.gmra.mrb[38].mxu1 %vm49_vm0, %v4495_v2  ;;  %2347 = vadd.xlane.f32.xlu1 %v2346_v53 }
0x112f   :  { %2338 = vadd.xlane.f32.xlu0 %v2337_v63 }
0x1130   :  { %2341 = vadd.xlane.f32.xlu1 %v2340_v61 }
0x1133   :  { %2350 = vadd.xlane.f32.xlu0 %v2349_v28 }
0x1134   :  { %2353 = vadd.xlane.f32.xlu1 %v2352_v57 }
0x1145   :  { %3039 = vrot.lane.b32.xlu1 %v5251_v14, %s4572_s9 }
0x1149   :  { %3037 = vrot.lane.b32.xlu0 %v5239_v12, %s4572_s9 }
0x1158   :  { %v2759_v11 = vpop.xlane.xlu0 %2758 }
0x115c   :  { %v2765_v3 = vpop.xlane.xlu0 %2764 }
0x1161   :  { %v2762_v37 = vpop.xlane.xlu1 %2761 }
0x1165   :  { %v2768_v25 = vpop.xlane.xlu1 %2767 }
0x1197   :  { %v4043_v40 = vpop.f32.mrb[32].mxu1 }
0x1198   :  { %v2557_v0 = vpop.f32.mrb[33].mxu1 }
0x119b   :  { %v4046_v16 = vpop.f32.mrb[34].mxu1 }
0x119c   :  { %v2567_v23 = vpop.f32.mrb[35].mxu1 }
0x11a8   :  { %v2790_v38 = vpop.xlane.xlu0 %2789 }
0x11a9   :  { %v2798_v7 = vadd.f32 %v2790_v38, %v2762_v37 }
0x11ac   :  { %v2787_v5 = vpop.xlane.xlu0 %2786 }
0x11ad   :  { %v2797_v24 = vadd.f32 %v2787_v5, %v2759_v11  ;;  %v4346_v11 = vld [vmem:[%s5711_s2 + $0x38] ss:$12 sps:$4 sm:$0xff]  }
0x11b0   :  { %v2793_v32 = vpop.xlane.xlu0 %2792 }
0x11b1   :  { %v2799_v47 = vadd.f32 %v2793_v32, %v2765_v3  ;;  %v2796_v56 = vpop.xlane.xlu1 %2795 }
0x11b2   :  { %v2800_v42 = vadd.f32 %v2796_v56, %v2768_v25 }
0x11b4   :  { %v2333_v10 = vpop.xlane.xlu0 %2332 }
0x11b5   :  { %v2336_v48 = vpop.xlane.xlu1 %2335 }
0x11b8   :  { %v2345_v54 = vpop.xlane.xlu0 %2344 }
0x11b9   :  { %v2355_v55 = vadd.f32 %v2345_v54, %v2333_v10  ;;  %v2348_v50 = vpop.xlane.xlu1 %2347 }
0x11ba   :  { %v2356_v44 = vadd.f32 %v2348_v50, %v2336_v48 }
0x11bb   :  { %4496 = vrcp.f32 %v2355_v55 }
0x11bc   :  { %v2339_v60 = vpop.xlane.xlu0 %2338  ;;  %4498 = vrcp.f32 %v2356_v44 }
0x11bd   :  { %v2342_v9 = vpop.xlane.xlu1 %2341 }
0x11c0   :  { %v2351_v19 = vpop.xlane.xlu0 %2350 }
0x11c1   :  { %v2357_v17 = vadd.f32 %v2351_v19, %v2339_v60  ;;  %v2354_v46 = vpop.xlane.xlu1 %2353 }
0x11c2   :  { %v2358_v36 = vadd.f32 %v2354_v46, %v2342_v9 }
0x11c3   :  { %4500 = vrcp.f32 %v2357_v17 }
0x11c4   :  { %v3038_v2 = vpop.permute.xlu0 %3037  ;;  %4502 = vrcp.f32 %v2358_v36 }
0x11c5   :  { %v4497_v62 = vpop.eup %4496  ;;  %4083 = vmatprep.subr.bf16.mxu0 %v3038_v2  ;;  %v3040_v21 = vpop.permute.xlu1 %3039  ;;  %4504 = vrcp.f32 %v2798_v7 }
0x11c6   :  { %4084 = vmatpush3.bf16.msra.mxu0 %v3038_v2  ;;  %v2576_v15 = vmul.f32 %v4497_v62, %v2557_v0  ;;  %v4499_v35 = vpop.eup %4498  ;;  %4506 = vrcp.f32 %v2797_v24 }
0x11c7   :  { %4085 = vmatprep.subr.bf16.mxu0 %v3040_v21  ;;  %v2577_v1 = vmul.f32 %v4499_v35, %v4043_v40  ;;  %4508 = vrcp.f32 %v2800_v42 }
0x11c8   :  { %4510 = vrcp.f32 %v2799_v47 }
0x11ca   :  { %4086 = vmatpush3.bf16.msra.mxu0 %v3040_v21 }
0x11cd   :  { %v4501_v26 = vpop.eup %4500 }
0x11ce   :  { %v2578_v22 = vmul.f32 %v4501_v26, %v2567_v23  ;;  %v4503_v18 = vpop.eup %4502  ;;  %v4347_v26 = vld [vmem:[%s5711_s2 + $0x50] ss:$12 sps:$4 sm:$0xff]  }
0x11cf   :  { %v2579_v41 = vmul.f32 %v4503_v18, %v4046_v16  ;;  %v4505_v33 = vpop.eup %4504 }
0x11d0   :  { %v4507_v59 = vpop.eup %4506 }
0x11d1   :  { %v4509_v63 = vpop.eup %4508 }
0x11d2   :  { %v4511_v57 = vpop.eup %4510 }
0x11fb   :  { %v4079_v13 = vpop.f32.mrb[36].mxu1 }
0x11fc   :  { %v3012_v31 = vmul.f32 %v4505_v33, %v4079_v13  ;;  %v2992_v4 = vpop.f32.mrb[37].mxu1 }
0x11fd   :  { %v3011_v53 = vmul.f32 %v4507_v59, %v2992_v4 }
0x11ff   :  { %v4318_v61 = vpack.i.bf16 %v3012_v31, %v3011_v53  ;;  %v4082_v28 = vpop.f32.mrb[38].mxu1 }
0x1200   :  { %v3014_v40 = vmul.f32 %v4509_v63, %v4082_v28  ;;  %v3002_v0 = vpop.f32.mrb[39].mxu1 }
0x1201   :  { %v3013_v23 = vmul.f32 %v4511_v57, %v3002_v0  ;;  %4319 = vrot.lane.b32.xlu1 %v4318_v61, %s4579_s24 }
0x1203   :  { %v4323_v16 = vpack.i.bf16 %v3014_v40, %v3013_v23 }
0x1205   :  { %4324 = vrot.lane.b32.xlu1 %v4323_v16, %s4579_s24 }
0x1209   :  { %3164 = vrot.lane.b32.xlu1 %v4346_v11, %s4573_s12 }
0x120d   :  { %3166 = vrot.lane.b32.xlu1 %v5251_v14, %s4573_s12  ;;  %v3101_v14 = vrot.slane %v5257_v51, %v1310_v20 }
0x1273   :  { %v4320_v3 = vpop.permute.xlu1 %4319 }
0x1274   :  { %v4322_v37 = vunpack.i.h.bf16 %v4320_v3  ;;  %v4321_v38 = vunpack.i.l.bf16 %v4320_v3  ;;  %v3145_v3 = vrot.slane %v5257_v51, %v1354_v39  ;;  %v4348_v39 = vld [vmem:[%s5713_s3 + $0x24] sm:$0xff]   ;;  %v4349_v51 = vld [vmem:[%s5713_s3 + $0x2c] sm:$0xff]  }
0x1275   :  { %4099 = vmatprep.subr.bf16.mxu0 %v4348_v39 }
0x1276   :  { %v3032_v5 = vsel %vm365_vm2, %v2577_v1, %v4322_v37  ;;  %v3031_v25 = vsel %vm365_vm2, %v2576_v15, %v4321_v38 }
0x1277   :  { %v3035_v32 = vpack.c.bf16 %v3032_v5, %v3031_v25  ;;  %v4325_v47 = vpop.permute.xlu1 %4324 }
0x1278   :  { %v4327_v56 = vunpack.i.h.bf16 %v4325_v47  ;;  %v4326_v42 = vunpack.i.l.bf16 %v4325_v47 }
0x1279   :  { %4087 = vmatprep.mubr.msk.bf16.mxu0 %vm49_vm0, %v3035_v32 }
0x127a   :  { %v3034_v10 = vsel %vm365_vm2, %v2579_v41, %v4327_v56  ;;  %v3033_v48 = vsel %vm365_vm2, %v2578_v22, %v4326_v42 }
0x127b   :  { %v3036_v54 = vpack.c.bf16 %v3034_v10, %v3033_v48  ;;  %v3165_v22 = vpop.permute.xlu1 %3164 }
0x127d   :  { %4088 = vmatmul.mubr.msk.bf16.vlgmr.msra.gmra.mrb[36].mxu0 %vm49_vm0, %v3036_v54 }
0x127e   :  { %4100 = vmatpush3.bf16.msra.mxu0 %v4348_v39 }
0x127f   :  { %v3167_v18 = vpop.permute.xlu1 %3166  ;;  %4101 = vmatprep.subr.bf16.mxu0 %v4349_v51 }
0x1282   :  { %4102 = vmatpush3.bf16.msra.mxu0 %v4349_v51 }
0x1350   :  { %v4089_v55 = vpop.f32.mrb[36].mxu0 }
0x1351   :  { %v3104_v50 = vmul.f32 %v4089_v55, %v3101_v14  ;;  %v3083_v44 = vpop.f32.mrb[37].mxu0  ;;  %v4351_v55 = vld [vmem:[%s5713_s3 + $0x3c] sm:$0xff]  }
0x1352   :  { %v3102_v60 = vmul.f32 %v3101_v14, %v3083_v44  ;;  %v4090_v9 = vpop.f32.mrb[38].mxu0 }
0x1353   :  { %v5527_v19 = vadd.f32 %v3104_v50, %v5216_v27  ;;  %v3105_v17 = vmul.f32 %v4090_v9, %v3101_v14  ;;  %v3086_v46 = vpop.f32.mrb[39].mxu0 }
0x1354   :  { %v5530_v36 = vadd.f32 %v3102_v60, %v5213_v58  ;;  %v3103_v2 = vmul.f32 %v3101_v14, %v3086_v46  ;;  %v4350_v14 = vld [vmem:[%s5713_s3 + $0x34] sm:$0xff]  }
0x1355   :  { %v3112_v62 = vmul.f32 %v5527_v19, %v5527_v19  ;;  %v5538_v20 = vadd.f32 %v3105_v17, %v5227_v52  ;;  %4103 = vmatprep.subr.bf16.mxu0 %v4350_v14 }
0x1356   :  { %v5535_v21 = vadd.f32 %v3103_v2, %v5219_v49  ;;  %v3110_v27 = vmul.f32 %v5530_v36, %v5530_v36  ;;  %4104 = vmatpush3.bf16.msra.mxu0 %v4350_v14 }
0x1357   :  { %v3120_v15 = vsel %vm49_vm0, %v3112_v62, 0.0  ;;  %v3113_v49 = vmul.f32 %v5538_v20, %v5538_v20  ;;  %4105 = vmatprep.subr.bf16.mxu0 %v4351_v55 }
0x1358   :  { %3121 = vadd.xlane.f32.xlu0 %v3120_v15  ;;  %v3111_v58 = vmul.f32 %v5535_v21, %v5535_v21  ;;  %v3114_v1 = vsel %vm49_vm0, %v3110_v27, 0.0 }
0x1359   :  { %v3123_v52 = vsel %vm49_vm0, %v3113_v49, 0.0 }
0x135a   :  { %v3117_v35 = vsel %vm49_vm0, %v3111_v58, 0.0  ;;  %4106 = vmatpush3.bf16.msra.mxu0 %v4351_v55 }
0x135b   :  { %3118 = vadd.xlane.f32.xlu1 %v3117_v35 }
0x135c   :  { %3115 = vadd.xlane.f32.xlu0 %v3114_v1 }
0x1360   :  { %3124 = vadd.xlane.f32.xlu0 %v3123_v52 }
0x136c   :  { %3168 = vrot.lane.b32.xlu1 %v4347_v26, %s4573_s12 }
0x1376   :  { %3162 = vrot.lane.b32.xlu0 %v5239_v12, %s4573_s12 }
0x13e5   :  { %v3122_v41 = vpop.xlane.xlu0 %3121 }
0x13e6   :  { %v3128_v7 = vmul.f32 0.03125, %v3122_v41 }
0x13e8   :  { %v3132_v24 = vadd.f32 1e-05, %v3128_v7  ;;  %v3119_v33 = vpop.xlane.xlu1 %3118 }
0x13e9   :  { %v3127_v13 = vmul.f32 0.03125, %v3119_v33  ;;  %v3116_v59 = vpop.xlane.xlu0 %3115 }
0x13ea   :  { %v3126_v31 = vmul.f32 0.03125, %v3116_v59  ;;  %4512 = vrsqrt.f32 %v3132_v24 }
0x13eb   :  { %v3131_v4 = vadd.f32 1e-05, %v3127_v13 }
0x13ec   :  { %v3130_v53 = vadd.f32 1e-05, %v3126_v31  ;;  %v3169_v57 = vpop.permute.xlu1 %3168 }
0x13ed   :  { %4514 = vrsqrt.f32 %v3131_v4  ;;  %v3125_v63 = vpop.xlane.xlu0 %3124  ;;  %v3171_v0 = vsel %vm1380_vm6, %v3167_v18, %v3169_v57 }
0x13ee   :  { %4516 = vrsqrt.f32 %v3130_v53  ;;  %v3129_v61 = vmul.f32 0.03125, %v3125_v63 }
0x13f0   :  { %v3133_v28 = vadd.f32 1e-05, %v3129_v61 }
0x13f1   :  { %v3163_v40 = vpop.permute.xlu0 %3162 }
0x13f2   :  { %4518 = vrsqrt.f32 %v3133_v28  ;;  %v3170_v12 = vsel %vm1380_vm6, %v3163_v40, %v3165_v22 }
0x13f3   :  { %4091 = vmatprep.subr.bf16.mxu1 %v3170_v12 }
0x13f4   :  { %4092 = vmatpush3.bf16.msra.mxu1 %v3170_v12  ;;  %v4513_v23 = vpop.eup %4512 }
0x13f5   :  { %4093 = vmatprep.subr.bf16.mxu1 %v3171_v0  ;;  %v3140_v25 = vmul.f32 %v4513_v23, %v5527_v19  ;;  %v4570_v23 = vld [vmem:[%s5712_s1 + $0x10] sm:$0xff] }
0x13f7   :  { %v4515_v16 = vpop.eup %4514  ;;  %v3148_v10 = vmul.f32 %v3145_v3, %v3140_v25 }
0x13f8   :  { %v4517_v11 = vpop.eup %4516  ;;  %4094 = vmatpush3.bf16.msra.mxu1 %v3171_v0  ;;  %v3139_v37 = vmul.f32 %v4515_v16, %v5535_v21  ;;  %v3361_v16 = vrot.slane %v4570_v23, %v1572_v8 }
0x13f9   :  { %4111 = vmatprep.subr.bf16.mxu1 %v3165_v22  ;;  %v3138_v38 = vmul.f32 %v4517_v11, %v5530_v36 }
0x13fa   :  { %v3147_v5 = vmul.f32 %v3145_v3, %v3139_v37 }
0x13fb   :  { %v3146_v32 = vmul.f32 %v3145_v3, %v3138_v38 }
0x13fc   :  { %v4519_v47 = vpop.eup %4518 }
0x13fd   :  { %v3141_v56 = vmul.f32 %v4519_v47, %v5538_v20  ;;  %v3150_v42 = vpack.c.bf16 %v3147_v5, %v3146_v32 }
0x13ff   :  { %v3149_v48 = vmul.f32 %v3145_v3, %v3141_v56  ;;  %4095 = vmatprep.mubr.msk.bf16.mxu1 %vm49_vm0, %v3150_v42 }
0x1401   :  { %v3151_v54 = vpack.c.bf16 %v3149_v48, %v3148_v10 }
0x1403   :  { %4096 = vmatmul.mubr.msk.bf16.vlgmr.msra.gmra.mrb[40].mxu1 %vm49_vm0, %v3151_v54 }
0x1404   :  { %4112 = vmatpush3.bf16.msra.mxu1 %v3165_v22 }
0x1405   :  { %4113 = vmatprep.subr.bf16.mxu1 %v3169_v57 }
0x1408   :  { %4114 = vmatpush3.bf16.msra.mxu1 %v3169_v57 }
0x14d6   :  { %v4097_v50 = vpop.f32.mrb[40].mxu1 }
0x14d7   :  { %v3214_v44 = vpop.f32.mrb[41].mxu1  ;;  %v3726_v2 = vmul.f32 -1.442695, %v4097_v50 }
0x14d8   :  { %3261 = vrot.lane.b32.xlu0 %v3214_v44, %s4573_s12  ;;  %v4098_v60 = vpop.f32.mrb[42].mxu1  ;;  %v3724_v17 = vmul.f32 -1.442695, %v3214_v44 }
0x14d9   :  { %v3217_v9 = vpop.f32.mrb[43].mxu1  ;;  %v3727_v62 = vmul.f32 -1.442695, %v4098_v60 }
0x14da   :  { %3263 = vrot.lane.b32.xlu1 %v3217_v9, %s4573_s12  ;;  %v3725_v46 = vmul.f32 -1.442695, %v3217_v9  ;;  %4520 = vpow2.f32 %v3724_v17 }
0x14dc   :  { %3265 = vrot.lane.b32.xlu0 %v4097_v50, %s4573_s12  ;;  %4522 = vpow2.f32 %v3725_v46 }
0x14dd   :  { %4524 = vpow2.f32 %v3726_v2 }
0x14de   :  { %3267 = vrot.lane.b32.xlu1 %v4098_v60, %s4573_s12  ;;  %4526 = vpow2.f32 %v3727_v62 }
0x14e4   :  { %v4521_v15 = vpop.eup %4520 }
0x14e5   :  { %v3241_v58 = vadd.f32 1.0, %v4521_v15 }
0x14e6   :  { %v4523_v27 = vpop.eup %4522 }
0x14e7   :  { %v4525_v35 = vpop.eup %4524  ;;  %v3242_v1 = vadd.f32 1.0, %v4523_v27  ;;  %4528 = vrcp.f32 %v3241_v58 }
0x14e8   :  { %v4527_v49 = vpop.eup %4526  ;;  %v3243_v52 = vadd.f32 1.0, %v4525_v35 }
0x14e9   :  { %v3244_v26 = vadd.f32 1.0, %v4527_v49  ;;  %4530 = vrcp.f32 %v3242_v1 }
0x14ea   :  { %4532 = vrcp.f32 %v3243_v52 }
0x14eb   :  { %4534 = vrcp.f32 %v3244_v26 }
0x14f1   :  { %v4529_v22 = vpop.eup %4528 }
0x14f2   :  { %v3253_v24 = vmul.f32 %v4529_v22, %v3214_v44  ;;  %v3516_v44 = vld [vmem:[%s5710_s0 + $0x38] sm:$0xff]  ;;  %v3405_v22 = vrot.slane %v4570_v23, %v1616_v43 }
0x14f3   :  { %v4531_v18 = vpop.eup %4530 }
0x14f4   :  { %v4533_v7 = vpop.eup %4532  ;;  %v3254_v33 = vmul.f32 %v4531_v18, %v3217_v9 }
0x14f5   :  { %v4535_v13 = vpop.eup %4534  ;;  %v3255_v61 = vmul.f32 %v4533_v7, %v4097_v50  ;;  %v3515_v50 = vld [vmem:[%s5710_s0 + $0x28] sm:$0xff] }
0x14f6   :  { %v3256_v28 = vmul.f32 %v4535_v13, %v4098_v60 }
0x154a   :  { %v3262_v41 = vpop.permute.xlu0 %3261 }
0x154b   :  { %v3273_v31 = vmul.f32 %v3262_v41, %v3253_v24 }
0x154c   :  { %v3264_v59 = vpop.permute.xlu1 %3263 }
0x154d   :  { %v3274_v4 = vmul.f32 %v3264_v59, %v3254_v33 }
0x154e   :  { %v3266_v53 = vpop.permute.xlu0 %3265 }
0x154f   :  { %v3277_v63 = vpack.c.bf16 %v3274_v4, %v3273_v31  ;;  %v3275_v40 = vmul.f32 %v3266_v53, %v3255_v61 }
0x1550   :  { %v3268_v57 = vpop.permute.xlu1 %3267 }
0x1551   :  { %v3276_v12 = vmul.f32 %v3268_v57, %v3256_v28  ;;  %4107 = vmatprep.mubr.msk.bf16.mxu0 %vm1380_vm6, %v3277_v63 }
0x1553   :  { %v3278_v0 = vpack.c.bf16 %v3276_v12, %v3275_v40 }
0x1555   :  { %4108 = vmatmul.mubr.msk.bf16.vlgmr.msra.gmra.mrb[40].mxu0 %vm1380_vm6, %v3278_v0 }
0x1628   :  { %v4109_v11 = vpop.f32.mrb[40].mxu0 }
0x1629   :  { %v3364_v3 = vmul.f32 %v4109_v11, %v3361_v16  ;;  %v3343_v37 = vpop.f32.mrb[41].mxu0 }
0x162a   :  { %v3362_v38 = vmul.f32 %v3361_v16, %v3343_v37  ;;  %v4110_v5 = vpop.f32.mrb[42].mxu0 }
0x162b   :  { %v3346_v25 = vpop.f32.mrb[43].mxu0  ;;  %v3368_v32 = vadd.f32 %v3364_v3, %v5527_v19  ;;  %v3365_v56 = vmul.f32 %v4110_v5, %v3361_v16 }
0x162c   :  { %v3366_v47 = vadd.f32 %v3362_v38, %v5530_v36  ;;  %v3363_v42 = vmul.f32 %v3361_v16, %v3346_v25 }
0x162d   :  { %v3369_v54 = vadd.f32 %v3365_v56, %v5538_v20  ;;  %v3372_v51 = vmul.f32 %v3368_v32, %v3368_v32  ;;  %v3513_v20 = vld [vmem:[%s5710_s0 + $0x8] sm:$0xff] }
0x162e   :  { %v3367_v10 = vadd.f32 %v3363_v42, %v5535_v21  ;;  %v3370_v48 = vmul.f32 %v3366_v47, %v3366_v47  ;;  %v3514_v21 = vld [vmem:[%s5710_s0 + $0x18] sm:$0xff] }
0x162f   :  { %v3380_v55 = vsel %vm49_vm0, %v3372_v51, 0.0  ;;  %v3373_v19 = vmul.f32 %v3369_v54, %v3369_v54 }
0x1630   :  { %v3374_v39 = vsel %vm49_vm0, %v3370_v48, 0.0  ;;  %v3371_v8 = vmul.f32 %v3367_v10, %v3367_v10 }
0x1631   :  { %3375 = vadd.xlane.f32.xlu0 %v3374_v39  ;;  %v3383_v36 = vsel %vm49_vm0, %v3373_v19, 0.0 }
0x1632   :  { %v3377_v14 = vsel %vm49_vm0, %v3371_v8, 0.0 }
0x1633   :  { %3378 = vadd.xlane.f32.xlu1 %v3377_v14 }
0x1635   :  { %3381 = vadd.xlane.f32.xlu0 %v3380_v55 }
0x1639   :  { %3384 = vadd.xlane.f32.xlu0 %v3383_v36 }
0x1644   :  { %3523 = vrot.lane.b32.xlu1 %v3514_v21, %s4573_s12 }
0x1648   :  { %3525 = vrot.lane.b32.xlu1 %v3515_v50, %s4573_s12 }
0x164c   :  { %3527 = vrot.lane.b32.xlu1 %v3516_v44, %s4573_s12 }
0x164f   :  { %3521 = vrot.lane.b32.xlu0 %v3513_v20, %s4573_s12 }
0x16be   :  { %v3376_v60 = vpop.xlane.xlu0 %3375 }
0x16bf   :  { %v3386_v9 = vmul.f32 0.03125, %v3376_v60 }
0x16c0   :  { %v3379_v17 = vpop.xlane.xlu1 %3378 }
0x16c1   :  { %v3390_v46 = vadd.f32 1e-05, %v3386_v9  ;;  %v3387_v2 = vmul.f32 0.03125, %v3379_v17 }
0x16c2   :  { %v3382_v62 = vpop.xlane.xlu0 %3381 }
0x16c3   :  { %4536 = vrsqrt.f32 %v3390_v46  ;;  %v3391_v15 = vadd.f32 1e-05, %v3387_v2  ;;  %v3388_v27 = vmul.f32 0.03125, %v3382_v62 }
0x16c4   :  { %v3524_v44 = vpop.permute.xlu1 %3523 }
0x16c5   :  { %4538 = vrsqrt.f32 %v3391_v15  ;;  %v3392_v58 = vadd.f32 1e-05, %v3388_v27 }
0x16c6   :  { %v3385_v35 = vpop.xlane.xlu0 %3384 }
0x16c7   :  { %4540 = vrsqrt.f32 %v3392_v58  ;;  %v3389_v1 = vmul.f32 0.03125, %v3385_v35 }
0x16c8   :  { %v3526_v35 = vpop.permute.xlu1 %3525 }
0x16c9   :  { %v3393_v49 = vadd.f32 1e-05, %v3389_v1 }
0x16ca   :  { %v3522_v1 = vpop.permute.xlu0 %3521 }
0x16cb   :  { %4542 = vrsqrt.f32 %v3393_v49 }
0x16cd   :  { %v4537_v52 = vpop.eup %4536 }
0x16ce   :  { %v3398_v26 = vmul.f32 %v4537_v52, %v3366_v47 }
0x16cf   :  { %v4539_v18 = vpop.eup %4538 }
0x16d0   :  { %v3399_v41 = vmul.f32 %v4539_v18, %v3367_v10  ;;  %v3406_v24 = vmul.f32 %v3405_v22, %v3398_v26 }
0x16d1   :  { %v4541_v7 = vpop.eup %4540 }
0x16d2   :  { %v3407_v33 = vmul.f32 %v3405_v22, %v3399_v41  ;;  %v3400_v13 = vmul.f32 %v4541_v7, %v3368_v32 }
0x16d4   :  { %v3410_v59 = vpack.c.bf16 %v3407_v33, %v3406_v24  ;;  %v3408_v53 = vmul.f32 %v3405_v22, %v3400_v13  ;;  %v3528_v13 = vpop.permute.xlu1 %3527 }
0x16d5   :  { %v4543_v31 = vpop.eup %4542 }
0x16d6   :  { %v3401_v4 = vmul.f32 %v4543_v31, %v3369_v54  ;;  %4115 = vmatprep.mubr.msk.bf16.mxu1 %vm49_vm0, %v3410_v59 }
0x16d8   :  { %v3409_v63 = vmul.f32 %v3405_v22, %v3401_v4 }
0x16da   :  { %v3411_v61 = vpack.c.bf16 %v3409_v63, %v3408_v53 }
0x16dc   :  { %4116 = vmatmul.mubr.msk.bf16.vlgmr.msra.gmra.mrb[44].mxu1 %vm49_vm0, %v3411_v61 }
0x17af   :  { %v4117_v28 = vpop.f32.mrb[44].mxu1 }
0x17b0   :  { %v5618_v57 = vmul.f32 0.35355338, %v4117_v28  ;;  %v3454_v34 = vpop.f32.mrb[45].mxu1 }
0x17b1   :  { %v5620_v43 = vmul.f32 0.35355338, %v3454_v34  ;;  %v4118_v40 = vpop.f32.mrb[46].mxu1 }
0x17b2   :  { %v3475_v12 = vadd.f32 0.54132485, %v5618_v57  ;;  %3738 = vst.msk [vmem:[%s5714_s4 + $0x30] sm:$0xff] %vm1763_vm7, %v5618_v57  ;;  %v5628_v0 = vmul.f32 0.35355338, %v4118_v40 }
0x17b3   :  { %v3457_v23 = vpop.f32.mrb[47].mxu1  ;;  %v3473_v16 = vadd.f32 0.54132485, %v5620_v43  ;;  %3736 = vst.msk [vmem:[%s5714_s4 + $0x20] sm:$0xff] %vm1763_vm7, %v5620_v43 }
0x17b4   :  { %v5636_v11 = vmul.f32 0.35355338, %v3457_v23  ;;  %v3483_v3 = vand.u32 2147483647, %v3475_v12  ;;  %v3476_v37 = vadd.f32 0.54132485, %v5628_v0 }
0x17b5   :  { %3739 = vst.msk [vmem:[%s5714_s4 + $0x38] sm:$0xff] %vm1763_vm7, %v5628_v0  ;;  %v3481_v38 = vand.u32 2147483647, %v3473_v16  ;;  %v3479_v17 = vmax.f32 %v3475_v12, 0.0  ;;  %v3477_v62 = vmax.f32 %v3473_v16, 0.0 }
0x17b6   :  { %v3474_v5 = vadd.f32 0.54132485, %v5636_v11  ;;  %3737 = vst.msk [vmem:[%s5714_s4 + $0x28] sm:$0xff] %vm1763_vm7, %v5636_v11  ;;  %v3487_v25 = vsub.f32 0.0, %v3483_v3  ;;  %v3484_v32 = vand.u32 2147483647, %v3476_v37 }
0x17b7   :  { %v3485_v47 = vsub.f32 0.0, %v3481_v38  ;;  %v3480_v49 = vmax.f32 %v3476_v37, 0.0 }
0x17b8   :  { %v3482_v56 = vand.u32 2147483647, %v3474_v5  ;;  %v3493_v42 = vmul.f32 1.442695, %v3487_v25  ;;  %v3488_v10 = vsub.f32 0.0, %v3484_v32  ;;  %v3478_v26 = vmax.f32 %v3474_v5, 0.0 }
0x17b9   :  { %v3489_v48 = vmul.f32 1.442695, %v3485_v47 }
0x17ba   :  { %v3486_v54 = vsub.f32 0.0, %v3482_v56  ;;  %4544 = vpow2.f32 %v3493_v42  ;;  %v3495_v39 = vmul.f32 1.442695, %v3488_v10 }
0x17bb   :  { %4546 = vpow2.f32 %v3489_v48 }
0x17bc   :  { %v3491_v8 = vmul.f32 1.442695, %v3486_v54  ;;  %4548 = vpow2.f32 %v3495_v39 }
0x17be   :  { %4550 = vpow2.f32 %v3491_v8 }
0x17c4   :  { %v4545_v51 = vpop.eup %4544 }
0x17c5   :  { %v4547_v14 = vpop.eup %4546  ;;  %v3499_v55 = vadd.f32 1.0, %v4545_v51 }
0x17c6   :  { %v4549_v19 = vpop.eup %4548  ;;  %v3497_v36 = vadd.f32 1.0, %v4547_v14 }
0x17c7   :  { %4552 = vlog2.f32 %v3499_v55  ;;  %v3500_v20 = vadd.f32 1.0, %v4549_v19 }
0x17c8   :  { %v4551_v21 = vpop.eup %4550  ;;  %4554 = vlog2.f32 %v3497_v36 }
0x17c9   :  { %v3498_v50 = vadd.f32 1.0, %v4551_v21  ;;  %4556 = vlog2.f32 %v3500_v20 }
0x17cb   :  { %4558 = vlog2.f32 %v3498_v50 }
0x17d1   :  { %v4553_v60 = vpop.eup %4552 }
0x17d2   :  { %v4555_v9 = vpop.eup %4554  ;;  %v3506_v46 = vmul.f32 0.6931472, %v4553_v60 }
0x17d3   :  { %v4557_v2 = vpop.eup %4556  ;;  %v3502_v15 = vmul.f32 0.6931472, %v4555_v9 }
0x17d4   :  { %v3511_v58 = vadd.f32 %v3506_v46, %v3479_v17  ;;  %v3508_v52 = vmul.f32 0.6931472, %v4557_v2 }
0x17d5   :  { %v4559_v27 = vpop.eup %4558  ;;  %v3509_v18 = vadd.f32 %v3502_v15, %v3477_v62 }
0x17d6   :  { %v3504_v22 = vmul.f32 0.6931472, %v4559_v27  ;;  %v3512_v41 = vadd.f32 %v3508_v52, %v3480_v49  ;;  %3742 = vst.msk [vmem:[%s5714_s4 + $0x30] sm:$0xff] %vm1838_vm8, %v3511_v58  ;;  %v3535_v59 = vmul.f32 %v3526_v35, %v3511_v58 }
0x17d7   :  { %v3533_v24 = vmul.f32 %v3522_v1, %v3509_v18  ;;  %3740 = vst.msk [vmem:[%s5714_s4 + $0x20] sm:$0xff] %vm1838_vm8, %v3509_v18 }
0x17d8   :  { %v3510_v7 = vadd.f32 %v3504_v22, %v3478_v26  ;;  %3743 = vst.msk [vmem:[%s5714_s4 + $0x38] sm:$0xff] %vm1838_vm8, %v3512_v41  ;;  %v3536_v31 = vmul.f32 %v3528_v13, %v3512_v41 }
0x17d9   :  { %3541 = vrot.lane.b32.xlu0 %v3533_v24, %s4581_s14 }
0x17da   :  { %v3534_v33 = vmul.f32 %v3524_v44, %v3510_v7  ;;  %3741 = vst.msk [vmem:[%s5714_s4 + $0x28] sm:$0xff] %vm1838_vm8, %v3510_v7 }
0x17dc   :  { %3543 = vrot.lane.b32.xlu1 %v3534_v33, %s4581_s14 }
0x17dd   :  { %3545 = vrot.lane.b32.xlu0 %v3535_v59, %s4581_s14 }
0x17e0   :  { %3547 = vrot.lane.b32.xlu1 %v3536_v31, %s4581_s14 }
0x17e1   :  { %1847 = vrot.lane.b32.xlu0 %v5193_v45, %s4582_s11 }
0x17e4   :  { %1849 = vrot.lane.b32.xlu1 %v5196_v29, %s4582_s11 }
0x17e5   :  { %1851 = vrot.lane.b32.xlu0 %v5201_v6, %s4582_s11 }
0x17e8   :  { %1853 = vrot.lane.b32.xlu1 %v5204_v30, %s4582_s11 }
0x184b   :  { %v3542_v4 = vpop.permute.xlu0 %3541 }
0x184c   :  { %v3553_v53 = vadd.f32 %v3542_v4, %v5620_v43 }
0x184e   :  { %v3544_v63 = vpop.permute.xlu1 %3543  ;;  %3570 = vrot.lane.b32.xlu0 %v3553_v53, %s4582_s11 }
0x184f   :  { %v3554_v61 = vadd.f32 %v3544_v63, %v5636_v11  ;;  %v3546_v28 = vpop.permute.xlu0 %3545 }
0x1850   :  { %v3555_v34 = vadd.f32 %v3546_v28, %v5618_v57 }
0x1851   :  { %3572 = vrot.lane.b32.xlu1 %v3554_v61, %s4582_s11 }
0x1852   :  { %v3548_v40 = vpop.permute.xlu1 %3547  ;;  %3574 = vrot.lane.b32.xlu0 %v3555_v34, %s4582_s11 }
0x1853   :  { %v3556_v45 = vadd.f32 %v3548_v40, %v5628_v0  ;;  %v1848_v29 = vpop.permute.xlu0 %1847 }
0x1854   :  { %1860 = vst.msk [vmem:[%s5714_s4] sm:$0xff] %vm1859_vm9, %v1848_v29 }
0x1855   :  { %3576 = vrot.lane.b32.xlu1 %v3556_v45, %s4582_s11 }
0x1856   :  { %v1850_v6 = vpop.permute.xlu1 %1849 }
0x1857   :  { %1861 = vst.msk [vmem:[%s5714_s4 + $0x8] sm:$0xff] %vm1859_vm9, %v1850_v6  ;;  %v1852_v30 = vpop.permute.xlu0 %1851 }
0x1858   :  { %1862 = vst.msk [vmem:[%s5714_s4 + $0x10] sm:$0xff] %vm1859_vm9, %v1852_v30 }
0x185a   :  { %v1854_v57 = vpop.permute.xlu1 %1853 }
0x185b   :  { %1863 = vst.msk [vmem:[%s5714_s4 + $0x18] sm:$0xff] %vm1859_vm9, %v1854_v57 }
0x18c0   :  { %v3571_v43 = vpop.permute.xlu0 %3570 }
0x18c1   :  { %3744 = vst.msk [vmem:[%s5714_s4 + $0x20] sm:$0xff] %vm1859_vm9, %v3571_v43 }
0x18c3   :  { %v3573_v12 = vpop.permute.xlu1 %3572 }
0x18c4   :  { %3745 = vst.msk [vmem:[%s5714_s4 + $0x28] sm:$0xff] %vm1859_vm9, %v3573_v12  ;;  %v3575_v0 = vpop.permute.xlu0 %3574 }
0x18c5   :  { %3746 = vst.msk [vmem:[%s5714_s4 + $0x30] sm:$0xff] %vm1859_vm9, %v3575_v0 }
0x18c7   :  { %v3577_v23 = vpop.permute.xlu1 %3576 }
0x18c8   :  { %3747 = vst.msk [vmem:[%s5714_s4 + $0x38] sm:$0xff] %vm1859_vm9, %v3577_v23 }

</bundles_post_ra>
